<compile_context>
chip_gen: v5e
topology: v5e:2x2
jax: 0.10.0
libtpu: 0.0.40
codegen_flags: <defaults>
</compile_context>

<pallas_src>
import functools
import math

import jax
import jax.numpy as jnp
from jax.experimental import pallas as pl
from jax.experimental.pallas import tpu as pltpu

# --- model hyper-parameters (PyTorch defaults) ---
D_MODEL = 64
NHEAD = 2
HEAD_DIM = D_MODEL // NHEAD
NUM_LAYERS = 2
PATCH = 4
INPUT_DIM = 4
FF_DIM = 2048                        # nn.TransformerEncoderLayer default dim_feedforward
D_OUT = PATCH * PATCH * INPUT_DIM    # fc output = 64
LN_EPS = 1e-5


def _layernorm(v, w, b):
    mu = jnp.mean(v, axis=-1, keepdims=True)
    var = jnp.mean((v - mu) ** 2, axis=-1, keepdims=True)
    return (v - mu) * jax.lax.rsqrt(var + LN_EPS) * w + b


def transformer_sr_kernel(x_ref,
                          wqkv_ref, bqkv_ref, wo_ref, bo_ref,
                          ln1w_ref, ln1b_ref, ln2w_ref, ln2b_ref,
                          w1_ref, b1_ref, w2_ref, b2_ref,
                          wfc_ref, bfc_ref,
                          o_ref, *, seq_len):
    """One grid step: a fused (B_BLK*S, D) token slab -> (B_BLK*S, D_OUT)."""
    rows, d = x_ref.shape            # rows = B_BLK * seq_len
    b_blk = rows // seq_len
    hd = d // NHEAD
    scale = 1.0 / math.sqrt(hd)

    x = x_ref[...]                   # (rows, d) f32 residual stream

    for l in range(NUM_LAYERS):
        xb = x.astype(jnp.bfloat16)

        # ---- multi-head self-attention (post-norm block) ----
        # Fused QKV projection: single (rows, 64) @ (64, 192) matmul.
        # Column layout of wqkv: [Q(head0|head1) | K(head0|head1) | V(head0|head1)].
        qkv = jnp.dot(xb, wqkv_ref[l],
                      preferred_element_type=jnp.float32) + bqkv_ref[l]   # (rows, 3d) f32

        head_outs = []
        for h in range(NHEAD):
            qh = qkv[:, h * hd:(h + 1) * hd] * scale
            kh = qkv[:, d + h * hd: d + (h + 1) * hd]
            vh = qkv[:, 2 * d + h * hd: 2 * d + (h + 1) * hd]
            # leading-dim split only (minor dim unchanged) -> cheap reshape
            q3 = qh.reshape(b_blk, seq_len, hd).astype(jnp.bfloat16)
            k3 = kh.reshape(b_blk, seq_len, hd).astype(jnp.bfloat16)
            v3 = vh.reshape(b_blk, seq_len, hd).astype(jnp.bfloat16)
            s = jnp.einsum('bqd,bkd->bqk', q3, k3,
                           preferred_element_type=jnp.float32)             # (b_blk, S, S)
            s = s - jnp.max(s, axis=-1, keepdims=True)
            p = jnp.exp(s)
            p = p * pl.reciprocal(jnp.sum(p, axis=-1, keepdims=True), approx=True)
            oh = jnp.einsum('bqk,bkd->bqd', p.astype(jnp.bfloat16), v3,
                            preferred_element_type=jnp.float32)            # (b_blk, S, hd)
            head_outs.append(oh.reshape(rows, hd))

        # concat(heads) @ W_o as ONE (rows,64)@(64,64) matmul (head order matches wqkv packing)
        attn_in = jnp.concatenate(head_outs, axis=-1).astype(jnp.bfloat16)  # (rows, d)
        attn = jnp.dot(attn_in, wo_ref[l],
                       preferred_element_type=jnp.float32) + bo_ref[l]

        x = _layernorm(x + attn, ln1w_ref[l], ln1b_ref[l])

        # ---- feed-forward block (post-norm) ----
        h1 = jnp.dot(x.astype(jnp.bfloat16), w1_ref[l],
                     preferred_element_type=jnp.float32) + b1_ref[l]
        h1 = jnp.maximum(h1, 0.0)                                          # ReLU
        ff = jnp.dot(h1.astype(jnp.bfloat16), w2_ref[l],
                     preferred_element_type=jnp.float32) + b2_ref[l]

        x = _layernorm(x + ff, ln2w_ref[l], ln2b_ref[l])

    # ---- final fc: (rows, D) -> (rows, D_OUT) ----
    # TODO(synk): D_OUT=64 store is not lane-dense (128); left as-is per review (low priority).
    o_ref[...] = jnp.dot(x.astype(jnp.bfloat16), wfc_ref[...],
                         preferred_element_type=jnp.float32) + bfc_ref[...]


def init_params(key):
    ks = jax.random.split(key, 16)
    nrm = lambda k, shape, s=0.05: (s * jax.random.normal(k, shape)).astype(jnp.float32)
    L, D, F = NUM_LAYERS, D_MODEL, FF_DIM
    params = dict(
        wq=nrm(ks[0], (L, D, D)), wk=nrm(ks[1], (L, D, D)), wv=nrm(ks[2], (L, D, D)),
        bq=nrm(ks[3], (L, 1, D), 0.01), bk=nrm(ks[4], (L, 1, D), 0.01), bv=nrm(ks[5], (L, 1, D), 0.01),
        wo=nrm(ks[6], (L, D, D)), bo=nrm(ks[7], (L, 1, D), 0.01),
        ln1w=jnp.ones((L, 1, D), jnp.float32), ln1b=jnp.zeros((L, 1, D), jnp.float32),
        ln2w=jnp.ones((L, 1, D), jnp.float32), ln2b=jnp.zeros((L, 1, D), jnp.float32),
        w1=nrm(ks[8], (L, D, F)), b1=nrm(ks[9], (L, 1, F), 0.01),
        w2=nrm(ks[10], (L, F, D)), b2=nrm(ks[11], (L, 1, D), 0.01),
        wfc=nrm(ks[12], (D, D_OUT)), bfc=nrm(ks[13], (1, D_OUT), 0.01),
    )
    return params


def _is_megacore():
    """True on chips with 2 TensorCores per device (v4 / v5p / v7x)."""
    try:
        kind = jax.devices()[0].device_kind.lower()
    except Exception:
        return False
    return ("v4" in kind) or ("v5p" in kind) or ("7" in kind)


def _choose_block(batch, seq):
    """Batch elements folded per grid step.

    Target ~512 fused rows per step (amortizes the ~0.35us per-step overhead and the
    w1/w2 RHS pushes), capped at 1024 rows so the (rows, 2048) FFN intermediates stay
    well under v7x's 64 MiB/TC VMEM.  On single-TC chips (v5e/v6e) grid=1 is allowed;
    on megacore chips keep an even >=2-step grid so the "parallel" axis shards across
    both TensorCores.
    """
    row_cap = max(1, 1024 // seq)
    row_tgt = max(1, 512 // seq)
    b = min(batch, row_tgt, row_cap)
    while b > 1 and batch % b != 0:         # largest divisor of batch <= target
        b -= 1
    if _is_megacore() and batch // b < 2 and b > 1 and b % 2 == 0:
        b //= 2                             # even >=2-step grid for the 2nd TensorCore
    # (8,128) layout rule: row block must be a multiple of 8 unless it is the full slab
    if (b * seq) % 8 != 0 and b != batch:
        b = batch
    return max(b, 1)


@jax.jit
def transformer_sr_forward(x, params):
    # x: (B, C, H, W) float32 (NCHW, matching PyTorch)
    B, C, H, W = x.shape
    p = PATCH
    nH, nW = H // p, W // p
    S = nH * nW
    assert p * p * C == D_MODEL, "patch_size^2 * channels must equal d_model"

    # --- patchify (glue, plain JAX): x.unfold(2,p,p).unfold(3,p,p) ... -> (B*S, D) row slab ---
    t = x.reshape(B, C, nH, p, nW, p)
    t = jnp.transpose(t, (0, 1, 2, 4, 3, 5))          # (B, C, nH, nW, p, p)
    t = t.reshape(B, C, S, p * p)                     # (B, C, S, p*p)
    t = jnp.transpose(t, (0, 2, 3, 1))                # (B, S, p*p, C)
    tokens = t.reshape(B * S, D_MODEL).astype(jnp.float32)

    # --- parameter prep: fused QKV packing + bf16 weights (once, at the boundary) ---
    bf16 = jnp.bfloat16
    # Columns: [Q | K | V]; within each, heads are contiguous HD-wide chunks — consistent
    # with the head slicing in the kernel and with wo's row layout (concat(heads) @ W_o).
    wqkv = jnp.concatenate([params["wq"], params["wk"], params["wv"]], axis=-1)   # (L, D, 3D)
    bqkv = jnp.concatenate([params["bq"], params["bk"], params["bv"]], axis=-1)   # (L, 1, 3D)

    param_list = [
        wqkv.astype(bf16), bqkv,
        params["wo"].astype(bf16), params["bo"],
        params["ln1w"], params["ln1b"], params["ln2w"], params["ln2b"],
        params["w1"].astype(bf16), params["b1"],
        params["w2"].astype(bf16), params["b2"],
        params["wfc"].astype(bf16), params["bfc"],
    ]

    b_blk = _choose_block(B, S)
    rows_blk = b_blk * S
    grid = (B // b_blk,)

    # whole weight arrays resident in VMEM (no per-step double buffering)
    weight_specs = [pl.BlockSpec(memory_space=pltpu.MemorySpace.VMEM) for _ in param_list]
    in_specs = [pl.BlockSpec((rows_blk, D_MODEL), lambda i: (i, 0))] + weight_specs

    kernel = functools.partial(transformer_sr_kernel, seq_len=S)

    out = pl.pallas_call(
        kernel,
        out_shape=jax.ShapeDtypeStruct((B * S, D_OUT), jnp.float32),
        grid_spec=pltpu.PrefetchScalarGridSpec(
            num_scalar_prefetch=0,
            grid=grid,
            in_specs=in_specs,
            out_specs=pl.BlockSpec((rows_blk, D_OUT), lambda i: (i, 0)),
        ),
        compiler_params=pltpu.CompilerParams(
            dimension_semantics=("parallel",),
            # ~1.2 MiB weights + <=14 MiB FFN intermediates at the 1024-row cap:
            # 32 MiB is safe on v5e/v6e (128 MiB physical) and v7x (64 MiB/TC).
            vmem_limit_bytes=32 * 1024 * 1024,
        ),
    )(tokens, *param_list)

    # --- unpatchify (glue, plain JAX) ---
    o = out.reshape(B, nH, nW, p, p, C)
    o = jnp.transpose(o, (0, 5, 1, 3, 2, 4))          # (B, C, nH, p, nW, p)
    o = o.reshape(B, C, H, W)
    return o


if __name__ == "__main__":
    key = jax.random.PRNGKey(0)
    k_x, k_p = jax.random.split(key)
    B, C, H, W = 2, INPUT_DIM, 16, 16
    x = jax.random.normal(k_x, (B, C, H, W), dtype=jnp.float32)
    params = init_params(k_p)

    y = transformer_sr_forward(x, params)
    jax.block_until_ready(y)
    assert y.shape == (B, C, H, W), y.shape
    print("KERNEL_OK")
</pallas_src>

<mosaic_0001>
module attributes {stable_mosaic.version = 11 : i64} {
  func.func @transformer_sr_kernel(%arg0: i32, %arg1: memref<32x64xf32, #tpu.memory_space<vmem>>, %arg2: memref<2x64x192xbf16, #tpu.memory_space<vmem>>, %arg3: memref<2x1x192xf32, #tpu.memory_space<vmem>>, %arg4: memref<2x64x64xbf16, #tpu.memory_space<vmem>>, %arg5: memref<2x1x64xf32, #tpu.memory_space<vmem>>, %arg6: memref<2x1x64xf32, #tpu.memory_space<vmem>>, %arg7: memref<2x1x64xf32, #tpu.memory_space<vmem>>, %arg8: memref<2x1x64xf32, #tpu.memory_space<vmem>>, %arg9: memref<2x1x64xf32, #tpu.memory_space<vmem>>, %arg10: memref<2x64x2048xbf16, #tpu.memory_space<vmem>>, %arg11: memref<2x1x2048xf32, #tpu.memory_space<vmem>>, %arg12: memref<2x2048x64xbf16, #tpu.memory_space<vmem>>, %arg13: memref<2x1x64xf32, #tpu.memory_space<vmem>>, %arg14: memref<64x64xbf16, #tpu.memory_space<vmem>>, %arg15: memref<1x64xf32, #tpu.memory_space<vmem>>, %arg16: memref<32x64xf32, #tpu.memory_space<vmem>>) attributes {dimension_semantics = [#tpu.dimension_semantics<parallel>], iteration_bounds = array<i64: 1>, scalar_prefetch = 0 : i64, scratch_operands = 0 : i64, tpu.core_type = #tpu.core_type<tc>, window_params = [{transform_indices = @transform_0, window_bounds = array<i64: 32, 64>}, {pipeline_mode = #tpu.pipeline_mode<synchronous>, transform_indices = @transform_1, window_bounds = array<i64: 2, 64, 192>}, {pipeline_mode = #tpu.pipeline_mode<synchronous>, transform_indices = @transform_2, window_bounds = array<i64: 2, 1, 192>}, {pipeline_mode = #tpu.pipeline_mode<synchronous>, transform_indices = @transform_3, window_bounds = array<i64: 2, 64, 64>}, {pipeline_mode = #tpu.pipeline_mode<synchronous>, transform_indices = @transform_4, window_bounds = array<i64: 2, 1, 64>}, {pipeline_mode = #tpu.pipeline_mode<synchronous>, transform_indices = @transform_5, window_bounds = array<i64: 2, 1, 64>}, {pipeline_mode = #tpu.pipeline_mode<synchronous>, transform_indices = @transform_6, window_bounds = array<i64: 2, 1, 64>}, {pipeline_mode = #tpu.pipeline_mode<synchronous>, transform_indices = @transform_7, window_bounds = array<i64: 2, 1, 64>}, {pipeline_mode = #tpu.pipeline_mode<synchronous>, transform_indices = @transform_8, window_bounds = array<i64: 2, 1, 64>}, {pipeline_mode = #tpu.pipeline_mode<synchronous>, transform_indices = @transform_9, window_bounds = array<i64: 2, 64, 2048>}, {pipeline_mode = #tpu.pipeline_mode<synchronous>, transform_indices = @transform_10, window_bounds = array<i64: 2, 1, 2048>}, {pipeline_mode = #tpu.pipeline_mode<synchronous>, transform_indices = @transform_11, window_bounds = array<i64: 2, 2048, 64>}, {pipeline_mode = #tpu.pipeline_mode<synchronous>, transform_indices = @transform_12, window_bounds = array<i64: 2, 1, 64>}, {pipeline_mode = #tpu.pipeline_mode<synchronous>, transform_indices = @transform_13, window_bounds = array<i64: 64, 64>}, {pipeline_mode = #tpu.pipeline_mode<synchronous>, transform_indices = @transform_14, window_bounds = array<i64: 1, 64>}, {transform_indices = @transform_15, window_bounds = array<i64: 32, 64>}]} {
    %c0 = arith.constant 0 : index
    %c0_0 = arith.constant 0 : index
    %0 = vector.load %arg1[%c0, %c0_0] : memref<32x64xf32, #tpu.memory_space<vmem>>, vector<32x64xf32>
    %1 = arith.truncf %0 : vector<32x64xf32> to vector<32x64xbf16>
    %c0_1 = arith.constant 0 : index
    %c0_2 = arith.constant 0 : index
    %c0_3 = arith.constant 0 : index
    %2 = vector.load %arg2[%c0_1, %c0_2, %c0_3] : memref<2x64x192xbf16, #tpu.memory_space<vmem>>, vector<1x64x192xbf16>
    %3 = vector.shape_cast %2 : vector<1x64x192xbf16> to vector<64x192xbf16>
    %cst = arith.constant dense<0.000000e+00> : vector<32x192xf32>
    %4 = tpu.matmul %1, %3, %cst {dimension_numbers = #tpu.dot_dimension_numbers<[1], [0], [0], [1], [0, 0, 1, 1], [], []>} : vector<32x64xbf16>, vector<64x192xbf16>, vector<32x192xf32> -> vector<32x192xf32>
    %c0_4 = arith.constant 0 : index
    %c0_5 = arith.constant 0 : index
    %c0_6 = arith.constant 0 : index
    %5 = vector.load %arg3[%c0_4, %c0_5, %c0_6] : memref<2x1x192xf32, #tpu.memory_space<vmem>>, vector<1x1x192xf32>
    %6 = vector.shape_cast %5 : vector<1x1x192xf32> to vector<1x192xf32>
    %7 = vector.broadcast %6 : vector<1x192xf32> to vector<32x192xf32>
    %8 = arith.addf %4, %7 : vector<32x192xf32>
    %9 = vector.extract_strided_slice %8 {offsets = [0, 0], sizes = [32, 32], strides = [1, 1]} : vector<32x192xf32> to vector<32x32xf32>
    %cst_7 = arith.constant 0.176776692 : f32
    %10 = vector.broadcast %cst_7 : f32 to vector<32x32xf32>
    %11 = arith.mulf %9, %10 : vector<32x32xf32>
    %12 = vector.extract_strided_slice %8 {offsets = [0, 64], sizes = [32, 32], strides = [1, 1]} : vector<32x192xf32> to vector<32x32xf32>
    %13 = vector.extract_strided_slice %8 {offsets = [0, 128], sizes = [32, 32], strides = [1, 1]} : vector<32x192xf32> to vector<32x32xf32>
    %14 = vector.shape_cast %11 : vector<32x32xf32> to vector<2x16x32xf32>
    %15 = arith.truncf %14 : vector<2x16x32xf32> to vector<2x16x32xbf16>
    %16 = vector.shape_cast %12 : vector<32x32xf32> to vector<2x16x32xf32>
    %17 = arith.truncf %16 : vector<2x16x32xf32> to vector<2x16x32xbf16>
    %18 = vector.shape_cast %13 : vector<32x32xf32> to vector<2x16x32xf32>
    %19 = arith.truncf %18 : vector<2x16x32xf32> to vector<2x16x32xbf16>
    "tpu.trace_start"() <{level = 10 : i32, message = "bqd,bkd->bqk"}> : () -> ()
    %cst_8 = arith.constant dense<0.000000e+00> : vector<2x16x16xf32>
    %20 = tpu.matmul %15, %17, %cst_8 {dimension_numbers = #tpu.dot_dimension_numbers<[2], [2], [1], [1], [0, 0, 0, 1, 1, 1], [0], [0]>} : vector<2x16x32xbf16>, vector<2x16x32xbf16>, vector<2x16x16xf32> -> vector<2x16x16xf32>
    "tpu.trace_stop"() : () -> ()
    %cst_9 = arith.constant dense<0xFF800000> : vector<2x16xf32>
    %21 = vector.multi_reduction <maximumf>, %20, %cst_9 [2] : vector<2x16x16xf32> to vector<2x16xf32>
    %22 = vector.shape_cast %21 : vector<2x16xf32> to vector<2x16x1xf32>
    %23 = vector.broadcast %22 : vector<2x16x1xf32> to vector<2x16x16xf32>
    %24 = arith.subf %20, %23 : vector<2x16x16xf32>
    %25 = math.exp %24 : vector<2x16x16xf32>
    %cst_10 = arith.constant dense<0.000000e+00> : vector<2x16xf32>
    %26 = vector.multi_reduction <add>, %25, %cst_10 [2] : vector<2x16x16xf32> to vector<2x16xf32>
    %27 = vector.shape_cast %26 : vector<2x16xf32> to vector<2x16x1xf32>
    %28 = tpu.reciprocal %27 {approx = true} : vector<2x16x1xf32> -> vector<2x16x1xf32>
    %29 = vector.broadcast %28 : vector<2x16x1xf32> to vector<2x16x16xf32>
    %30 = arith.mulf %25, %29 : vector<2x16x16xf32>
    %31 = arith.truncf %30 : vector<2x16x16xf32> to vector<2x16x16xbf16>
    "tpu.trace_start"() <{level = 10 : i32, message = "bqk,bkd->bqd"}> : () -> ()
    %cst_11 = arith.constant dense<0.000000e+00> : vector<2x16x32xf32>
    %32 = tpu.matmul %31, %19, %cst_11 {dimension_numbers = #tpu.dot_dimension_numbers<[2], [1], [1], [2], [0, 0, 0, 1, 1, 2], [0], [0]>} : vector<2x16x16xbf16>, vector<2x16x32xbf16>, vector<2x16x32xf32> -> vector<2x16x32xf32>
    "tpu.trace_stop"() : () -> ()
    %33 = vector.shape_cast %32 : vector<2x16x32xf32> to vector<32x32xf32>
    %34 = vector.extract_strided_slice %8 {offsets = [0, 32], sizes = [32, 32], strides = [1, 1]} : vector<32x192xf32> to vector<32x32xf32>
    %cst_12 = arith.constant 0.176776692 : f32
    %35 = vector.broadcast %cst_12 : f32 to vector<32x32xf32>
    %36 = arith.mulf %34, %35 : vector<32x32xf32>
    %37 = vector.extract_strided_slice %8 {offsets = [0, 96], sizes = [32, 32], strides = [1, 1]} : vector<32x192xf32> to vector<32x32xf32>
    %38 = vector.extract_strided_slice %8 {offsets = [0, 160], sizes = [32, 32], strides = [1, 1]} : vector<32x192xf32> to vector<32x32xf32>
    %39 = vector.shape_cast %36 : vector<32x32xf32> to vector<2x16x32xf32>
    %40 = arith.truncf %39 : vector<2x16x32xf32> to vector<2x16x32xbf16>
    %41 = vector.shape_cast %37 : vector<32x32xf32> to vector<2x16x32xf32>
    %42 = arith.truncf %41 : vector<2x16x32xf32> to vector<2x16x32xbf16>
    %43 = vector.shape_cast %38 : vector<32x32xf32> to vector<2x16x32xf32>
    %44 = arith.truncf %43 : vector<2x16x32xf32> to vector<2x16x32xbf16>
    "tpu.trace_start"() <{level = 10 : i32, message = "bqd,bkd->bqk"}> : () -> ()
    %cst_13 = arith.constant dense<0.000000e+00> : vector<2x16x16xf32>
    %45 = tpu.matmul %40, %42, %cst_13 {dimension_numbers = #tpu.dot_dimension_numbers<[2], [2], [1], [1], [0, 0, 0, 1, 1, 1], [0], [0]>} : vector<2x16x32xbf16>, vector<2x16x32xbf16>, vector<2x16x16xf32> -> vector<2x16x16xf32>
    "tpu.trace_stop"() : () -> ()
    %cst_14 = arith.constant dense<0xFF800000> : vector<2x16xf32>
    %46 = vector.multi_reduction <maximumf>, %45, %cst_14 [2] : vector<2x16x16xf32> to vector<2x16xf32>
    %47 = vector.shape_cast %46 : vector<2x16xf32> to vector<2x16x1xf32>
    %48 = vector.broadcast %47 : vector<2x16x1xf32> to vector<2x16x16xf32>
    %49 = arith.subf %45, %48 : vector<2x16x16xf32>
    %50 = math.exp %49 : vector<2x16x16xf32>
    %cst_15 = arith.constant dense<0.000000e+00> : vector<2x16xf32>
    %51 = vector.multi_reduction <add>, %50, %cst_15 [2] : vector<2x16x16xf32> to vector<2x16xf32>
    %52 = vector.shape_cast %51 : vector<2x16xf32> to vector<2x16x1xf32>
    %53 = tpu.reciprocal %52 {approx = true} : vector<2x16x1xf32> -> vector<2x16x1xf32>
    %54 = vector.broadcast %53 : vector<2x16x1xf32> to vector<2x16x16xf32>
    %55 = arith.mulf %50, %54 : vector<2x16x16xf32>
    %56 = arith.truncf %55 : vector<2x16x16xf32> to vector<2x16x16xbf16>
    "tpu.trace_start"() <{level = 10 : i32, message = "bqk,bkd->bqd"}> : () -> ()
    %cst_16 = arith.constant dense<0.000000e+00> : vector<2x16x32xf32>
    %57 = tpu.matmul %56, %44, %cst_16 {dimension_numbers = #tpu.dot_dimension_numbers<[2], [1], [1], [2], [0, 0, 0, 1, 1, 2], [0], [0]>} : vector<2x16x16xbf16>, vector<2x16x32xbf16>, vector<2x16x32xf32> -> vector<2x16x32xf32>
    "tpu.trace_stop"() : () -> ()
    %58 = vector.shape_cast %57 : vector<2x16x32xf32> to vector<32x32xf32>
    %59 = tpu.concatenate %33, %58 in 1 : vector<32x32xf32>, vector<32x32xf32> -> vector<32x64xf32>
    %60 = arith.truncf %59 : vector<32x64xf32> to vector<32x64xbf16>
    %c0_17 = arith.constant 0 : index
    %c0_18 = arith.constant 0 : index
    %c0_19 = arith.constant 0 : index
    %61 = vector.load %arg4[%c0_17, %c0_18, %c0_19] : memref<2x64x64xbf16, #tpu.memory_space<vmem>>, vector<1x64x64xbf16>
    %62 = vector.shape_cast %61 : vector<1x64x64xbf16> to vector<64x64xbf16>
    %cst_20 = arith.constant dense<0.000000e+00> : vector<32x64xf32>
    %63 = tpu.matmul %60, %62, %cst_20 {dimension_numbers = #tpu.dot_dimension_numbers<[1], [0], [0], [1], [0, 0, 1, 1], [], []>} : vector<32x64xbf16>, vector<64x64xbf16>, vector<32x64xf32> -> vector<32x64xf32>
    %c0_21 = arith.constant 0 : index
    %c0_22 = arith.constant 0 : index
    %c0_23 = arith.constant 0 : index
    %64 = vector.load %arg5[%c0_21, %c0_22, %c0_23] : memref<2x1x64xf32, #tpu.memory_space<vmem>>, vector<1x1x64xf32>
    %65 = vector.shape_cast %64 : vector<1x1x64xf32> to vector<1x64xf32>
    %66 = vector.broadcast %65 : vector<1x64xf32> to vector<32x64xf32>
    %67 = arith.addf %63, %66 : vector<32x64xf32>
    %68 = arith.addf %0, %67 : vector<32x64xf32>
    %c0_24 = arith.constant 0 : index
    %c0_25 = arith.constant 0 : index
    %c0_26 = arith.constant 0 : index
    %69 = vector.load %arg6[%c0_24, %c0_25, %c0_26] : memref<2x1x64xf32, #tpu.memory_space<vmem>>, vector<1x1x64xf32>
    %70 = vector.shape_cast %69 : vector<1x1x64xf32> to vector<1x64xf32>
    %c0_27 = arith.constant 0 : index
    %c0_28 = arith.constant 0 : index
    %c0_29 = arith.constant 0 : index
    %71 = vector.load %arg7[%c0_27, %c0_28, %c0_29] : memref<2x1x64xf32, #tpu.memory_space<vmem>>, vector<1x1x64xf32>
    %72 = vector.shape_cast %71 : vector<1x1x64xf32> to vector<1x64xf32>
    %cst_30 = arith.constant dense<0.000000e+00> : vector<32xf32>
    %73 = vector.multi_reduction <add>, %68, %cst_30 [1] : vector<32x64xf32> to vector<32xf32>
    %74 = vector.shape_cast %73 : vector<32xf32> to vector<32x1xf32>
    %cst_31 = arith.constant 6.400000e+01 : f32
    %75 = vector.broadcast %cst_31 : f32 to vector<32x1xf32>
    %76 = arith.divf %74, %75 : vector<32x1xf32>
    %77 = vector.broadcast %76 : vector<32x1xf32> to vector<32x64xf32>
    %78 = arith.subf %68, %77 : vector<32x64xf32>
    %79 = arith.mulf %78, %78 : vector<32x64xf32>
    %cst_32 = arith.constant dense<0.000000e+00> : vector<32xf32>
    %80 = vector.multi_reduction <add>, %79, %cst_32 [1] : vector<32x64xf32> to vector<32xf32>
    %81 = vector.shape_cast %80 : vector<32xf32> to vector<32x1xf32>
    %cst_33 = arith.constant 6.400000e+01 : f32
    %82 = vector.broadcast %cst_33 : f32 to vector<32x1xf32>
    %83 = arith.divf %81, %82 : vector<32x1xf32>
    %84 = vector.broadcast %76 : vector<32x1xf32> to vector<32x64xf32>
    %85 = arith.subf %68, %84 : vector<32x64xf32>
    %cst_34 = arith.constant 9.99999974E-6 : f32
    %86 = vector.broadcast %cst_34 : f32 to vector<32x1xf32>
    %87 = arith.addf %83, %86 : vector<32x1xf32>
    %88 = math.rsqrt %87 : vector<32x1xf32>
    %89 = vector.broadcast %88 : vector<32x1xf32> to vector<32x64xf32>
    %90 = arith.mulf %85, %89 : vector<32x64xf32>
    %91 = vector.broadcast %70 : vector<1x64xf32> to vector<32x64xf32>
    %92 = arith.mulf %90, %91 : vector<32x64xf32>
    %93 = vector.broadcast %72 : vector<1x64xf32> to vector<32x64xf32>
    %94 = arith.addf %92, %93 : vector<32x64xf32>
    %95 = arith.truncf %94 : vector<32x64xf32> to vector<32x64xbf16>
    %c0_35 = arith.constant 0 : index
    %c0_36 = arith.constant 0 : index
    %c0_37 = arith.constant 0 : index
    %96 = vector.load %arg10[%c0_35, %c0_36, %c0_37] : memref<2x64x2048xbf16, #tpu.memory_space<vmem>>, vector<1x64x2048xbf16>
    %97 = vector.shape_cast %96 : vector<1x64x2048xbf16> to vector<64x2048xbf16>
    %cst_38 = arith.constant dense<0.000000e+00> : vector<32x2048xf32>
    %98 = tpu.matmul %95, %97, %cst_38 {dimension_numbers = #tpu.dot_dimension_numbers<[1], [0], [0], [1], [0, 0, 1, 1], [], []>} : vector<32x64xbf16>, vector<64x2048xbf16>, vector<32x2048xf32> -> vector<32x2048xf32>
    %c0_39 = arith.constant 0 : index
    %c0_40 = arith.constant 0 : index
    %c0_41 = arith.constant 0 : index
    %99 = vector.load %arg11[%c0_39, %c0_40, %c0_41] : memref<2x1x2048xf32, #tpu.memory_space<vmem>>, vector<1x1x2048xf32>
    %100 = vector.shape_cast %99 : vector<1x1x2048xf32> to vector<1x2048xf32>
    %101 = vector.broadcast %100 : vector<1x2048xf32> to vector<32x2048xf32>
    %102 = arith.addf %98, %101 : vector<32x2048xf32>
    %cst_42 = arith.constant 0.000000e+00 : f32
    %103 = vector.broadcast %cst_42 : f32 to vector<32x2048xf32>
    %104 = arith.maximumf %102, %103 : vector<32x2048xf32>
    %105 = arith.truncf %104 : vector<32x2048xf32> to vector<32x2048xbf16>
    %c0_43 = arith.constant 0 : index
    %c0_44 = arith.constant 0 : index
    %c0_45 = arith.constant 0 : index
    %106 = vector.load %arg12[%c0_43, %c0_44, %c0_45] : memref<2x2048x64xbf16, #tpu.memory_space<vmem>>, vector<1x2048x64xbf16>
    %107 = vector.shape_cast %106 : vector<1x2048x64xbf16> to vector<2048x64xbf16>
    %cst_46 = arith.constant dense<0.000000e+00> : vector<32x64xf32>
    %108 = tpu.matmul %105, %107, %cst_46 {dimension_numbers = #tpu.dot_dimension_numbers<[1], [0], [0], [1], [0, 0, 1, 1], [], []>} : vector<32x2048xbf16>, vector<2048x64xbf16>, vector<32x64xf32> -> vector<32x64xf32>
    %c0_47 = arith.constant 0 : index
    %c0_48 = arith.constant 0 : index
    %c0_49 = arith.constant 0 : index
    %109 = vector.load %arg13[%c0_47, %c0_48, %c0_49] : memref<2x1x64xf32, #tpu.memory_space<vmem>>, vector<1x1x64xf32>
    %110 = vector.shape_cast %109 : vector<1x1x64xf32> to vector<1x64xf32>
    %111 = vector.broadcast %110 : vector<1x64xf32> to vector<32x64xf32>
    %112 = arith.addf %108, %111 : vector<32x64xf32>
    %113 = arith.addf %94, %112 : vector<32x64xf32>
    %c0_50 = arith.constant 0 : index
    %c0_51 = arith.constant 0 : index
    %c0_52 = arith.constant 0 : index
    %114 = vector.load %arg8[%c0_50, %c0_51, %c0_52] : memref<2x1x64xf32, #tpu.memory_space<vmem>>, vector<1x1x64xf32>
    %115 = vector.shape_cast %114 : vector<1x1x64xf32> to vector<1x64xf32>
    %c0_53 = arith.constant 0 : index
    %c0_54 = arith.constant 0 : index
    %c0_55 = arith.constant 0 : index
    %116 = vector.load %arg9[%c0_53, %c0_54, %c0_55] : memref<2x1x64xf32, #tpu.memory_space<vmem>>, vector<1x1x64xf32>
    %117 = vector.shape_cast %116 : vector<1x1x64xf32> to vector<1x64xf32>
    %cst_56 = arith.constant dense<0.000000e+00> : vector<32xf32>
    %118 = vector.multi_reduction <add>, %113, %cst_56 [1] : vector<32x64xf32> to vector<32xf32>
    %119 = vector.shape_cast %118 : vector<32xf32> to vector<32x1xf32>
    %cst_57 = arith.constant 6.400000e+01 : f32
    %120 = vector.broadcast %cst_57 : f32 to vector<32x1xf32>
    %121 = arith.divf %119, %120 : vector<32x1xf32>
    %122 = vector.broadcast %121 : vector<32x1xf32> to vector<32x64xf32>
    %123 = arith.subf %113, %122 : vector<32x64xf32>
    %124 = arith.mulf %123, %123 : vector<32x64xf32>
    %cst_58 = arith.constant dense<0.000000e+00> : vector<32xf32>
    %125 = vector.multi_reduction <add>, %124, %cst_58 [1] : vector<32x64xf32> to vector<32xf32>
    %126 = vector.shape_cast %125 : vector<32xf32> to vector<32x1xf32>
    %cst_59 = arith.constant 6.400000e+01 : f32
    %127 = vector.broadcast %cst_59 : f32 to vector<32x1xf32>
    %128 = arith.divf %126, %127 : vector<32x1xf32>
    %129 = vector.broadcast %121 : vector<32x1xf32> to vector<32x64xf32>
    %130 = arith.subf %113, %129 : vector<32x64xf32>
    %cst_60 = arith.constant 9.99999974E-6 : f32
    %131 = vector.broadcast %cst_60 : f32 to vector<32x1xf32>
    %132 = arith.addf %128, %131 : vector<32x1xf32>
    %133 = math.rsqrt %132 : vector<32x1xf32>
    %134 = vector.broadcast %133 : vector<32x1xf32> to vector<32x64xf32>
    %135 = arith.mulf %130, %134 : vector<32x64xf32>
    %136 = vector.broadcast %115 : vector<1x64xf32> to vector<32x64xf32>
    %137 = arith.mulf %135, %136 : vector<32x64xf32>
    %138 = vector.broadcast %117 : vector<1x64xf32> to vector<32x64xf32>
    %139 = arith.addf %137, %138 : vector<32x64xf32>
    %140 = arith.truncf %139 : vector<32x64xf32> to vector<32x64xbf16>
    %c1 = arith.constant 1 : index
    %c0_61 = arith.constant 0 : index
    %c0_62 = arith.constant 0 : index
    %141 = vector.load %arg2[%c1, %c0_61, %c0_62] : memref<2x64x192xbf16, #tpu.memory_space<vmem>>, vector<1x64x192xbf16>
    %142 = vector.shape_cast %141 : vector<1x64x192xbf16> to vector<64x192xbf16>
    %cst_63 = arith.constant dense<0.000000e+00> : vector<32x192xf32>
    %143 = tpu.matmul %140, %142, %cst_63 {dimension_numbers = #tpu.dot_dimension_numbers<[1], [0], [0], [1], [0, 0, 1, 1], [], []>} : vector<32x64xbf16>, vector<64x192xbf16>, vector<32x192xf32> -> vector<32x192xf32>
    %c1_64 = arith.constant 1 : index
    %c0_65 = arith.constant 0 : index
    %c0_66 = arith.constant 0 : index
    %144 = vector.load %arg3[%c1_64, %c0_65, %c0_66] : memref<2x1x192xf32, #tpu.memory_space<vmem>>, vector<1x1x192xf32>
    %145 = vector.shape_cast %144 : vector<1x1x192xf32> to vector<1x192xf32>
    %146 = vector.broadcast %145 : vector<1x192xf32> to vector<32x192xf32>
    %147 = arith.addf %143, %146 : vector<32x192xf32>
    %148 = vector.extract_strided_slice %147 {offsets = [0, 0], sizes = [32, 32], strides = [1, 1]} : vector<32x192xf32> to vector<32x32xf32>
    %cst_67 = arith.constant 0.176776692 : f32
    %149 = vector.broadcast %cst_67 : f32 to vector<32x32xf32>
    %150 = arith.mulf %148, %149 : vector<32x32xf32>
    %151 = vector.extract_strided_slice %147 {offsets = [0, 64], sizes = [32, 32], strides = [1, 1]} : vector<32x192xf32> to vector<32x32xf32>
    %152 = vector.extract_strided_slice %147 {offsets = [0, 128], sizes = [32, 32], strides = [1, 1]} : vector<32x192xf32> to vector<32x32xf32>
    %153 = vector.shape_cast %150 : vector<32x32xf32> to vector<2x16x32xf32>
    %154 = arith.truncf %153 : vector<2x16x32xf32> to vector<2x16x32xbf16>
    %155 = vector.shape_cast %151 : vector<32x32xf32> to vector<2x16x32xf32>
    %156 = arith.truncf %155 : vector<2x16x32xf32> to vector<2x16x32xbf16>
    %157 = vector.shape_cast %152 : vector<32x32xf32> to vector<2x16x32xf32>
    %158 = arith.truncf %157 : vector<2x16x32xf32> to vector<2x16x32xbf16>
    "tpu.trace_start"() <{level = 10 : i32, message = "bqd,bkd->bqk"}> : () -> ()
    %cst_68 = arith.constant dense<0.000000e+00> : vector<2x16x16xf32>
    %159 = tpu.matmul %154, %156, %cst_68 {dimension_numbers = #tpu.dot_dimension_numbers<[2], [2], [1], [1], [0, 0, 0, 1, 1, 1], [0], [0]>} : vector<2x16x32xbf16>, vector<2x16x32xbf16>, vector<2x16x16xf32> -> vector<2x16x16xf32>
    "tpu.trace_stop"() : () -> ()
    %cst_69 = arith.constant dense<0xFF800000> : vector<2x16xf32>
    %160 = vector.multi_reduction <maximumf>, %159, %cst_69 [2] : vector<2x16x16xf32> to vector<2x16xf32>
    %161 = vector.shape_cast %160 : vector<2x16xf32> to vector<2x16x1xf32>
    %162 = vector.broadcast %161 : vector<2x16x1xf32> to vector<2x16x16xf32>
    %163 = arith.subf %159, %162 : vector<2x16x16xf32>
    %164 = math.exp %163 : vector<2x16x16xf32>
    %cst_70 = arith.constant dense<0.000000e+00> : vector<2x16xf32>
    %165 = vector.multi_reduction <add>, %164, %cst_70 [2] : vector<2x16x16xf32> to vector<2x16xf32>
    %166 = vector.shape_cast %165 : vector<2x16xf32> to vector<2x16x1xf32>
    %167 = tpu.reciprocal %166 {approx = true} : vector<2x16x1xf32> -> vector<2x16x1xf32>
    %168 = vector.broadcast %167 : vector<2x16x1xf32> to vector<2x16x16xf32>
    %169 = arith.mulf %164, %168 : vector<2x16x16xf32>
    %170 = arith.truncf %169 : vector<2x16x16xf32> to vector<2x16x16xbf16>
    "tpu.trace_start"() <{level = 10 : i32, message = "bqk,bkd->bqd"}> : () -> ()
    %cst_71 = arith.constant dense<0.000000e+00> : vector<2x16x32xf32>
    %171 = tpu.matmul %170, %158, %cst_71 {dimension_numbers = #tpu.dot_dimension_numbers<[2], [1], [1], [2], [0, 0, 0, 1, 1, 2], [0], [0]>} : vector<2x16x16xbf16>, vector<2x16x32xbf16>, vector<2x16x32xf32> -> vector<2x16x32xf32>
    "tpu.trace_stop"() : () -> ()
    %172 = vector.shape_cast %171 : vector<2x16x32xf32> to vector<32x32xf32>
    %173 = vector.extract_strided_slice %147 {offsets = [0, 32], sizes = [32, 32], strides = [1, 1]} : vector<32x192xf32> to vector<32x32xf32>
    %cst_72 = arith.constant 0.176776692 : f32
    %174 = vector.broadcast %cst_72 : f32 to vector<32x32xf32>
    %175 = arith.mulf %173, %174 : vector<32x32xf32>
    %176 = vector.extract_strided_slice %147 {offsets = [0, 96], sizes = [32, 32], strides = [1, 1]} : vector<32x192xf32> to vector<32x32xf32>
    %177 = vector.extract_strided_slice %147 {offsets = [0, 160], sizes = [32, 32], strides = [1, 1]} : vector<32x192xf32> to vector<32x32xf32>
    %178 = vector.shape_cast %175 : vector<32x32xf32> to vector<2x16x32xf32>
    %179 = arith.truncf %178 : vector<2x16x32xf32> to vector<2x16x32xbf16>
    %180 = vector.shape_cast %176 : vector<32x32xf32> to vector<2x16x32xf32>
    %181 = arith.truncf %180 : vector<2x16x32xf32> to vector<2x16x32xbf16>
    %182 = vector.shape_cast %177 : vector<32x32xf32> to vector<2x16x32xf32>
    %183 = arith.truncf %182 : vector<2x16x32xf32> to vector<2x16x32xbf16>
    "tpu.trace_start"() <{level = 10 : i32, message = "bqd,bkd->bqk"}> : () -> ()
    %cst_73 = arith.constant dense<0.000000e+00> : vector<2x16x16xf32>
    %184 = tpu.matmul %179, %181, %cst_73 {dimension_numbers = #tpu.dot_dimension_numbers<[2], [2], [1], [1], [0, 0, 0, 1, 1, 1], [0], [0]>} : vector<2x16x32xbf16>, vector<2x16x32xbf16>, vector<2x16x16xf32> -> vector<2x16x16xf32>
    "tpu.trace_stop"() : () -> ()
    %cst_74 = arith.constant dense<0xFF800000> : vector<2x16xf32>
    %185 = vector.multi_reduction <maximumf>, %184, %cst_74 [2] : vector<2x16x16xf32> to vector<2x16xf32>
    %186 = vector.shape_cast %185 : vector<2x16xf32> to vector<2x16x1xf32>
    %187 = vector.broadcast %186 : vector<2x16x1xf32> to vector<2x16x16xf32>
    %188 = arith.subf %184, %187 : vector<2x16x16xf32>
    %189 = math.exp %188 : vector<2x16x16xf32>
    %cst_75 = arith.constant dense<0.000000e+00> : vector<2x16xf32>
    %190 = vector.multi_reduction <add>, %189, %cst_75 [2] : vector<2x16x16xf32> to vector<2x16xf32>
    %191 = vector.shape_cast %190 : vector<2x16xf32> to vector<2x16x1xf32>
    %192 = tpu.reciprocal %191 {approx = true} : vector<2x16x1xf32> -> vector<2x16x1xf32>
    %193 = vector.broadcast %192 : vector<2x16x1xf32> to vector<2x16x16xf32>
    %194 = arith.mulf %189, %193 : vector<2x16x16xf32>
    %195 = arith.truncf %194 : vector<2x16x16xf32> to vector<2x16x16xbf16>
    "tpu.trace_start"() <{level = 10 : i32, message = "bqk,bkd->bqd"}> : () -> ()
    %cst_76 = arith.constant dense<0.000000e+00> : vector<2x16x32xf32>
    %196 = tpu.matmul %195, %183, %cst_76 {dimension_numbers = #tpu.dot_dimension_numbers<[2], [1], [1], [2], [0, 0, 0, 1, 1, 2], [0], [0]>} : vector<2x16x16xbf16>, vector<2x16x32xbf16>, vector<2x16x32xf32> -> vector<2x16x32xf32>
    "tpu.trace_stop"() : () -> ()
    %197 = vector.shape_cast %196 : vector<2x16x32xf32> to vector<32x32xf32>
    %198 = tpu.concatenate %172, %197 in 1 : vector<32x32xf32>, vector<32x32xf32> -> vector<32x64xf32>
    %199 = arith.truncf %198 : vector<32x64xf32> to vector<32x64xbf16>
    %c1_77 = arith.constant 1 : index
    %c0_78 = arith.constant 0 : index
    %c0_79 = arith.constant 0 : index
    %200 = vector.load %arg4[%c1_77, %c0_78, %c0_79] : memref<2x64x64xbf16, #tpu.memory_space<vmem>>, vector<1x64x64xbf16>
    %201 = vector.shape_cast %200 : vector<1x64x64xbf16> to vector<64x64xbf16>
    %cst_80 = arith.constant dense<0.000000e+00> : vector<32x64xf32>
    %202 = tpu.matmul %199, %201, %cst_80 {dimension_numbers = #tpu.dot_dimension_numbers<[1], [0], [0], [1], [0, 0, 1, 1], [], []>} : vector<32x64xbf16>, vector<64x64xbf16>, vector<32x64xf32> -> vector<32x64xf32>
    %c1_81 = arith.constant 1 : index
    %c0_82 = arith.constant 0 : index
    %c0_83 = arith.constant 0 : index
    %203 = vector.load %arg5[%c1_81, %c0_82, %c0_83] : memref<2x1x64xf32, #tpu.memory_space<vmem>>, vector<1x1x64xf32>
    %204 = vector.shape_cast %203 : vector<1x1x64xf32> to vector<1x64xf32>
    %205 = vector.broadcast %204 : vector<1x64xf32> to vector<32x64xf32>
    %206 = arith.addf %202, %205 : vector<32x64xf32>
    %207 = arith.addf %139, %206 : vector<32x64xf32>
    %c1_84 = arith.constant 1 : index
    %c0_85 = arith.constant 0 : index
    %c0_86 = arith.constant 0 : index
    %208 = vector.load %arg6[%c1_84, %c0_85, %c0_86] : memref<2x1x64xf32, #tpu.memory_space<vmem>>, vector<1x1x64xf32>
    %209 = vector.shape_cast %208 : vector<1x1x64xf32> to vector<1x64xf32>
    %c1_87 = arith.constant 1 : index
    %c0_88 = arith.constant 0 : index
    %c0_89 = arith.constant 0 : index
    %210 = vector.load %arg7[%c1_87, %c0_88, %c0_89] : memref<2x1x64xf32, #tpu.memory_space<vmem>>, vector<1x1x64xf32>
    %211 = vector.shape_cast %210 : vector<1x1x64xf32> to vector<1x64xf32>
    %cst_90 = arith.constant dense<0.000000e+00> : vector<32xf32>
    %212 = vector.multi_reduction <add>, %207, %cst_90 [1] : vector<32x64xf32> to vector<32xf32>
    %213 = vector.shape_cast %212 : vector<32xf32> to vector<32x1xf32>
    %cst_91 = arith.constant 6.400000e+01 : f32
    %214 = vector.broadcast %cst_91 : f32 to vector<32x1xf32>
    %215 = arith.divf %213, %214 : vector<32x1xf32>
    %216 = vector.broadcast %215 : vector<32x1xf32> to vector<32x64xf32>
    %217 = arith.subf %207, %216 : vector<32x64xf32>
    %218 = arith.mulf %217, %217 : vector<32x64xf32>
    %cst_92 = arith.constant dense<0.000000e+00> : vector<32xf32>
    %219 = vector.multi_reduction <add>, %218, %cst_92 [1] : vector<32x64xf32> to vector<32xf32>
    %220 = vector.shape_cast %219 : vector<32xf32> to vector<32x1xf32>
    %cst_93 = arith.constant 6.400000e+01 : f32
    %221 = vector.broadcast %cst_93 : f32 to vector<32x1xf32>
    %222 = arith.divf %220, %221 : vector<32x1xf32>
    %223 = vector.broadcast %215 : vector<32x1xf32> to vector<32x64xf32>
    %224 = arith.subf %207, %223 : vector<32x64xf32>
    %cst_94 = arith.constant 9.99999974E-6 : f32
    %225 = vector.broadcast %cst_94 : f32 to vector<32x1xf32>
    %226 = arith.addf %222, %225 : vector<32x1xf32>
    %227 = math.rsqrt %226 : vector<32x1xf32>
    %228 = vector.broadcast %227 : vector<32x1xf32> to vector<32x64xf32>
    %229 = arith.mulf %224, %228 : vector<32x64xf32>
    %230 = vector.broadcast %209 : vector<1x64xf32> to vector<32x64xf32>
    %231 = arith.mulf %229, %230 : vector<32x64xf32>
    %232 = vector.broadcast %211 : vector<1x64xf32> to vector<32x64xf32>
    %233 = arith.addf %231, %232 : vector<32x64xf32>
    %234 = arith.truncf %233 : vector<32x64xf32> to vector<32x64xbf16>
    %c1_95 = arith.constant 1 : index
    %c0_96 = arith.constant 0 : index
    %c0_97 = arith.constant 0 : index
    %235 = vector.load %arg10[%c1_95, %c0_96, %c0_97] : memref<2x64x2048xbf16, #tpu.memory_space<vmem>>, vector<1x64x2048xbf16>
    %236 = vector.shape_cast %235 : vector<1x64x2048xbf16> to vector<64x2048xbf16>
    %cst_98 = arith.constant dense<0.000000e+00> : vector<32x2048xf32>
    %237 = tpu.matmul %234, %236, %cst_98 {dimension_numbers = #tpu.dot_dimension_numbers<[1], [0], [0], [1], [0, 0, 1, 1], [], []>} : vector<32x64xbf16>, vector<64x2048xbf16>, vector<32x2048xf32> -> vector<32x2048xf32>
    %c1_99 = arith.constant 1 : index
    %c0_100 = arith.constant 0 : index
    %c0_101 = arith.constant 0 : index
    %238 = vector.load %arg11[%c1_99, %c0_100, %c0_101] : memref<2x1x2048xf32, #tpu.memory_space<vmem>>, vector<1x1x2048xf32>
    %239 = vector.shape_cast %238 : vector<1x1x2048xf32> to vector<1x2048xf32>
    %240 = vector.broadcast %239 : vector<1x2048xf32> to vector<32x2048xf32>
    %241 = arith.addf %237, %240 : vector<32x2048xf32>
    %cst_102 = arith.constant 0.000000e+00 : f32
    %242 = vector.broadcast %cst_102 : f32 to vector<32x2048xf32>
    %243 = arith.maximumf %241, %242 : vector<32x2048xf32>
    %244 = arith.truncf %243 : vector<32x2048xf32> to vector<32x2048xbf16>
    %c1_103 = arith.constant 1 : index
    %c0_104 = arith.constant 0 : index
    %c0_105 = arith.constant 0 : index
    %245 = vector.load %arg12[%c1_103, %c0_104, %c0_105] : memref<2x2048x64xbf16, #tpu.memory_space<vmem>>, vector<1x2048x64xbf16>
    %246 = vector.shape_cast %245 : vector<1x2048x64xbf16> to vector<2048x64xbf16>
    %cst_106 = arith.constant dense<0.000000e+00> : vector<32x64xf32>
    %247 = tpu.matmul %244, %246, %cst_106 {dimension_numbers = #tpu.dot_dimension_numbers<[1], [0], [0], [1], [0, 0, 1, 1], [], []>} : vector<32x2048xbf16>, vector<2048x64xbf16>, vector<32x64xf32> -> vector<32x64xf32>
    %c1_107 = arith.constant 1 : index
    %c0_108 = arith.constant 0 : index
    %c0_109 = arith.constant 0 : index
    %248 = vector.load %arg13[%c1_107, %c0_108, %c0_109] : memref<2x1x64xf32, #tpu.memory_space<vmem>>, vector<1x1x64xf32>
    %249 = vector.shape_cast %248 : vector<1x1x64xf32> to vector<1x64xf32>
    %250 = vector.broadcast %249 : vector<1x64xf32> to vector<32x64xf32>
    %251 = arith.addf %247, %250 : vector<32x64xf32>
    %252 = arith.addf %233, %251 : vector<32x64xf32>
    %c1_110 = arith.constant 1 : index
    %c0_111 = arith.constant 0 : index
    %c0_112 = arith.constant 0 : index
    %253 = vector.load %arg8[%c1_110, %c0_111, %c0_112] : memref<2x1x64xf32, #tpu.memory_space<vmem>>, vector<1x1x64xf32>
    %254 = vector.shape_cast %253 : vector<1x1x64xf32> to vector<1x64xf32>
    %c1_113 = arith.constant 1 : index
    %c0_114 = arith.constant 0 : index
    %c0_115 = arith.constant 0 : index
    %255 = vector.load %arg9[%c1_113, %c0_114, %c0_115] : memref<2x1x64xf32, #tpu.memory_space<vmem>>, vector<1x1x64xf32>
    %256 = vector.shape_cast %255 : vector<1x1x64xf32> to vector<1x64xf32>
    %cst_116 = arith.constant dense<0.000000e+00> : vector<32xf32>
    %257 = vector.multi_reduction <add>, %252, %cst_116 [1] : vector<32x64xf32> to vector<32xf32>
    %258 = vector.shape_cast %257 : vector<32xf32> to vector<32x1xf32>
    %cst_117 = arith.constant 6.400000e+01 : f32
    %259 = vector.broadcast %cst_117 : f32 to vector<32x1xf32>
    %260 = arith.divf %258, %259 : vector<32x1xf32>
    %261 = vector.broadcast %260 : vector<32x1xf32> to vector<32x64xf32>
    %262 = arith.subf %252, %261 : vector<32x64xf32>
    %263 = arith.mulf %262, %262 : vector<32x64xf32>
    %cst_118 = arith.constant dense<0.000000e+00> : vector<32xf32>
    %264 = vector.multi_reduction <add>, %263, %cst_118 [1] : vector<32x64xf32> to vector<32xf32>
    %265 = vector.shape_cast %264 : vector<32xf32> to vector<32x1xf32>
    %cst_119 = arith.constant 6.400000e+01 : f32
    %266 = vector.broadcast %cst_119 : f32 to vector<32x1xf32>
    %267 = arith.divf %265, %266 : vector<32x1xf32>
    %268 = vector.broadcast %260 : vector<32x1xf32> to vector<32x64xf32>
    %269 = arith.subf %252, %268 : vector<32x64xf32>
    %cst_120 = arith.constant 9.99999974E-6 : f32
    %270 = vector.broadcast %cst_120 : f32 to vector<32x1xf32>
    %271 = arith.addf %267, %270 : vector<32x1xf32>
    %272 = math.rsqrt %271 : vector<32x1xf32>
    %273 = vector.broadcast %272 : vector<32x1xf32> to vector<32x64xf32>
    %274 = arith.mulf %269, %273 : vector<32x64xf32>
    %275 = vector.broadcast %254 : vector<1x64xf32> to vector<32x64xf32>
    %276 = arith.mulf %274, %275 : vector<32x64xf32>
    %277 = vector.broadcast %256 : vector<1x64xf32> to vector<32x64xf32>
    %278 = arith.addf %276, %277 : vector<32x64xf32>
    %279 = arith.truncf %278 : vector<32x64xf32> to vector<32x64xbf16>
    %c0_121 = arith.constant 0 : index
    %c0_122 = arith.constant 0 : index
    %280 = vector.load %arg14[%c0_121, %c0_122] : memref<64x64xbf16, #tpu.memory_space<vmem>>, vector<64x64xbf16>
    %cst_123 = arith.constant dense<0.000000e+00> : vector<32x64xf32>
    %281 = tpu.matmul %279, %280, %cst_123 {dimension_numbers = #tpu.dot_dimension_numbers<[1], [0], [0], [1], [0, 0, 1, 1], [], []>} : vector<32x64xbf16>, vector<64x64xbf16>, vector<32x64xf32> -> vector<32x64xf32>
    %c0_124 = arith.constant 0 : index
    %c0_125 = arith.constant 0 : index
    %282 = vector.load %arg15[%c0_124, %c0_125] : memref<1x64xf32, #tpu.memory_space<vmem>>, vector<1x64xf32>
    %283 = vector.broadcast %282 : vector<1x64xf32> to vector<32x64xf32>
    %284 = arith.addf %281, %283 : vector<32x64xf32>
    %c0_126 = arith.constant 0 : index
    %c0_127 = arith.constant 0 : index
    %285 = vector.load %arg16[%c0_126, %c0_127] : memref<32x64xf32, #tpu.memory_space<vmem>>, vector<32x64xf32>
    tpu.vector_store %arg16[%c0_126, %c0_127], %284 {strides = array<i32>} : memref<32x64xf32, #tpu.memory_space<vmem>>, vector<32x64xf32>,
    return
  }
  func.func @transform_0(%arg0: i32) -> (i32, i32) {
    %c0_i32 = arith.constant 0 : i32
    %c0_i32_0 = arith.constant 0 : i32
    return %arg0, %c0_i32 : i32, i32
  }
  func.func @transform_1(%arg0: i32) -> (i32, i32, i32) {
    %c0_i32 = arith.constant 0 : i32
    %c0_i32_0 = arith.constant 0 : i32
    %c0_i32_1 = arith.constant 0 : i32
    %c0_i32_2 = arith.constant 0 : i32
    return %c0_i32, %c0_i32_0, %c0_i32_1 : i32, i32, i32
  }
  func.func @transform_2(%arg0: i32) -> (i32, i32, i32) {
    %c0_i32 = arith.constant 0 : i32
    %c0_i32_0 = arith.constant 0 : i32
    %c0_i32_1 = arith.constant 0 : i32
    %c0_i32_2 = arith.constant 0 : i32
    return %c0_i32, %c0_i32_0, %c0_i32_1 : i32, i32, i32
  }
  func.func @transform_3(%arg0: i32) -> (i32, i32, i32) {
    %c0_i32 = arith.constant 0 : i32
    %c0_i32_0 = arith.constant 0 : i32
    %c0_i32_1 = arith.constant 0 : i32
    %c0_i32_2 = arith.constant 0 : i32
    return %c0_i32, %c0_i32_0, %c0_i32_1 : i32, i32, i32
  }
  func.func @transform_4(%arg0: i32) -> (i32, i32, i32) {
    %c0_i32 = arith.constant 0 : i32
    %c0_i32_0 = arith.constant 0 : i32
    %c0_i32_1 = arith.constant 0 : i32
    %c0_i32_2 = arith.constant 0 : i32
    return %c0_i32, %c0_i32_0, %c0_i32_1 : i32, i32, i32
  }
  func.func @transform_5(%arg0: i32) -> (i32, i32, i32) {
    %c0_i32 = arith.constant 0 : i32
    %c0_i32_0 = arith.constant 0 : i32
    %c0_i32_1 = arith.constant 0 : i32
    %c0_i32_2 = arith.constant 0 : i32
    return %c0_i32, %c0_i32_0, %c0_i32_1 : i32, i32, i32
  }
  func.func @transform_6(%arg0: i32) -> (i32, i32, i32) {
    %c0_i32 = arith.constant 0 : i32
    %c0_i32_0 = arith.constant 0 : i32
    %c0_i32_1 = arith.constant 0 : i32
    %c0_i32_2 = arith.constant 0 : i32
    return %c0_i32, %c0_i32_0, %c0_i32_1 : i32, i32, i32
  }
  func.func @transform_7(%arg0: i32) -> (i32, i32, i32) {
    %c0_i32 = arith.constant 0 : i32
    %c0_i32_0 = arith.constant 0 : i32
    %c0_i32_1 = arith.constant 0 : i32
    %c0_i32_2 = arith.constant 0 : i32
    return %c0_i32, %c0_i32_0, %c0_i32_1 : i32, i32, i32
  }
  func.func @transform_8(%arg0: i32) -> (i32, i32, i32) {
    %c0_i32 = arith.constant 0 : i32
    %c0_i32_0 = arith.constant 0 : i32
    %c0_i32_1 = arith.constant 0 : i32
    %c0_i32_2 = arith.constant 0 : i32
    return %c0_i32, %c0_i32_0, %c0_i32_1 : i32, i32, i32
  }
  func.func @transform_9(%arg0: i32) -> (i32, i32, i32) {
    %c0_i32 = arith.constant 0 : i32
    %c0_i32_0 = arith.constant 0 : i32
    %c0_i32_1 = arith.constant 0 : i32
    %c0_i32_2 = arith.constant 0 : i32
    return %c0_i32, %c0_i32_0, %c0_i32_1 : i32, i32, i32
  }
  func.func @transform_10(%arg0: i32) -> (i32, i32, i32) {
    %c0_i32 = arith.constant 0 : i32
    %c0_i32_0 = arith.constant 0 : i32
    %c0_i32_1 = arith.constant 0 : i32
    %c0_i32_2 = arith.constant 0 : i32
    return %c0_i32, %c0_i32_0, %c0_i32_1 : i32, i32, i32
  }
  func.func @transform_11(%arg0: i32) -> (i32, i32, i32) {
    %c0_i32 = arith.constant 0 : i32
    %c0_i32_0 = arith.constant 0 : i32
    %c0_i32_1 = arith.constant 0 : i32
    %c0_i32_2 = arith.constant 0 : i32
    return %c0_i32, %c0_i32_0, %c0_i32_1 : i32, i32, i32
  }
  func.func @transform_12(%arg0: i32) -> (i32, i32, i32) {
    %c0_i32 = arith.constant 0 : i32
    %c0_i32_0 = arith.constant 0 : i32
    %c0_i32_1 = arith.constant 0 : i32
    %c0_i32_2 = arith.constant 0 : i32
    return %c0_i32, %c0_i32_0, %c0_i32_1 : i32, i32, i32
  }
  func.func @transform_13(%arg0: i32) -> (i32, i32) {
    %c0_i32 = arith.constant 0 : i32
    %c0_i32_0 = arith.constant 0 : i32
    %c0_i32_1 = arith.constant 0 : i32
    return %c0_i32, %c0_i32_0 : i32, i32
  }
  func.func @transform_14(%arg0: i32) -> (i32, i32) {
    %c0_i32 = arith.constant 0 : i32
    %c0_i32_0 = arith.constant 0 : i32
    %c0_i32_1 = arith.constant 0 : i32
    return %c0_i32, %c0_i32_0 : i32, i32
  }
  func.func @transform_15(%arg0: i32) -> (i32, i32) {
    %c0_i32 = arith.constant 0 : i32
    %c0_i32_0 = arith.constant 0 : i32
    return %arg0, %c0_i32 : i32, i32
  }
}

</mosaic_0001>

<bundles_post_ra>
// kernel: transformer_sr_forward.1
= control target key start
LH: loop header
LB: loop body
LE: loop exit
PB: predicated region body
PF: predicated region fallthrough
CT: control target
= control target key end

     0   :  { %vm111_vm0 = vcmask 523264   ;;  %vm184_vm1 = vcmask 261120   ;;  %vm237_vm2 = vcmask 130048   ;;  %s8561_s30 = smov 32   ;;  %s8562_s16 = smov 96   ;;  %s11179_s1 = inlined_call_operand.vmem [shape: bf16[2,64,192], index: 1, kind: input, shape index: {}]   ;;  %s11180_s0 = inlined_call_operand.vmem [shape: f32[32,64], index: 0, kind: input, shape index: {}]   ;;  %s11181_s2 = inlined_call_operand.vmem [shape: f32[2,1,192], index: 2, kind: input, shape index: {}]   ;;  %s11182_s4 = inlined_call_operand.vmem [shape: f32[2,1,64], index: 4, kind: input, shape index: {}]   ;;  %s11183_s3 = inlined_call_operand.vmem [shape: bf16[2,64,64], index: 3, kind: input, shape index: {}]   ;;  %s11184_s5 = inlined_call_operand.vmem [shape: f32[2,1,64], index: 5, kind: input, shape index: {}]   ;;  %s11185_s6 = inlined_call_operand.vmem [shape: f32[2,1,64], index: 6, kind: input, shape index: {}]   ;;  %s11186_s9 = inlined_call_operand.vmem [shape: bf16[2,64,2048], index: 9, kind: input, shape index: {}]   ;;  %s11187_s11 = inlined_call_operand.vmem [shape: bf16[2,2048,64], index: 11, kind: input, shape index: {}]   ;;  %s11188_s10 = inlined_call_operand.vmem [shape: f32[2,1,2048], index: 10, kind: input, shape index: {}]   ;;  %s11189_s12 = inlined_call_operand.vmem [shape: f32[2,1,64], index: 12, kind: input, shape index: {}]   ;;  %s11190_s7 = inlined_call_operand.vmem [shape: f32[2,1,64], index: 7, kind: input, shape index: {}]   ;;  %s11191_s8 = inlined_call_operand.vmem [shape: f32[2,1,64], index: 8, kind: input, shape index: {}]   ;;  %s11192_s14 = inlined_call_operand.vmem [shape: f32[1,64], index: 14, kind: input, shape index: {}]   ;;  %s11193_s13 = inlined_call_operand.vmem [shape: bf16[64,64], index: 13, kind: input, shape index: {}]   ;;  %s11194_s15 = inlined_call_operand.vmem [shape: f32[32,64], index: 15, kind: output, shape index: {}]  }
   0x1   :  { %v5952_v0 = vld [vmem:[%s11179_s1 + $0x30] sm:$0xf]  ;;  %v8020_v1 = vld [vmem:[%s11179_s1 + $0x34] sm:$0xf0]  ;;  %v5944_v2 = vld [vmem:[%s11179_s1 + $0x20] sm:$0xf] }
   0x2   :  { %v5953_v3 = vor.u32 %v8020_v1, %v5952_v0  ;;  %v8018_v4 = vld [vmem:[%s11179_s1 + $0x24] sm:$0xf0]  ;;  %v5936_v6 = vld [vmem:[%s11179_s1 + $0x10] sm:$0xf]  ;;  %v8016_v7 = vld [vmem:[%s11179_s1 + $0x14] sm:$0xf0] }
   0x3   :  { %v5945_v5 = vor.u32 %v8018_v4, %v5944_v2  ;;  %v5937_v8 = vor.u32 %v8016_v7, %v5936_v6  ;;  %v5928_v9 = vld [vmem:[%s11179_s1] sm:$0xf]  ;;  %v8014_v10 = vld [vmem:[%s11179_s1 + $0x4] sm:$0xf0]  ;;  %v8687_v15 = vld [vmem:[%s11180_s0 + $0x10] sm:$0xff] }
   0x4   :  { %122 = vmatpush.bf16.msra.mxu0 %v5953_v3  ;;  %v5929_v11 = vor.u32 %v8014_v10, %v5928_v9  ;;  %v8671_v12 = vld [vmem:[%s11180_s0] sm:$0xff]  ;;  %v8676_v13 = vld [vmem:[%s11180_s0 + $0x8] sm:$0xff]  ;;  %v8692_v16 = vld [vmem:[%s11180_s0 + $0x18] sm:$0xff]  ;;  %s8560_s0 = smov 64  }
   0x5   :  { %v8680_v14 = vpack.c.bf16 %v8676_v13, %v8671_v12  ;;  %v8696_v17 = vpack.c.bf16 %v8692_v16, %v8687_v15  ;;  %v8703_v18 = vld [vmem:[%s11181_s2] sm:$0x3]  ;;  %v8019_v52 = vld [vmem:[%s11179_s1 + $0x34] sm:$0xf]  ;;  %v5954_v53 = vld [vmem:[%s11179_s1 + $0x38] sm:$0xf0] }
   0x6   :  { %v67_v19 = vperm.slane %v8703_v18, 0  ;;  %v8017_v54 = vld [vmem:[%s11179_s1 + $0x24] sm:$0xf]  ;;  %v5957_v55 = vor.u32 %v8019_v52, %v5954_v53  ;;  %v5946_v56 = vld [vmem:[%s11179_s1 + $0x28] sm:$0xf0] }
   0x7   :  { %v5949_v57 = vor.u32 %v8017_v54, %v5946_v56  ;;  %v8015_v62 = vld [vmem:[%s11179_s1 + $0x14] sm:$0xf]  ;;  %v5938_v63 = vld [vmem:[%s11179_s1 + $0x18] sm:$0xf0]  ;;  %v8013_v1 = vld [vmem:[%s11179_s1 + $0x4] sm:$0xf] }
   0x8   :  { %123 = vmatpush.bf16.msra.mxu0 %v5945_v5  ;;  %141 = vmatpush.bf16.msra.mxu1 %v5957_v55  ;;  %v5941_v0 = vor.u32 %v8015_v62, %v5938_v63  ;;  %v5930_v2 = vld [vmem:[%s11179_s1 + $0x8] sm:$0xf0] }
   0x9   :  { %v5933_v3 = vor.u32 %v8013_v1, %v5930_v2 }
   0xc   :  { %124 = vmatpush.bf16.msra.mxu0 %v5937_v8  ;;  %142 = vmatpush.bf16.msra.mxu1 %v5949_v57 }
  0x10   :  { %125 = vmatpush.bf16.msra.mxu0 %v5929_v11  ;;  %143 = vmatpush.bf16.msra.mxu1 %v5941_v0 }
  0x13   :  { %5958 = vmatmul.msk.bf16.vlgmr.msra.gmra.mxu0 %vm111_vm0, %v8680_v14 }
  0x14   :  { %144 = vmatpush.bf16.msra.mxu1 %v5933_v3 }
  0x17   :  { %5960 = vmatmul.msk.bf16.vlgmr.msra.gmra.mxu1 %vm111_vm0, %v8680_v14  ;;  %v68_v14 = vperm.slane %v8703_v18, 1 }
  0x23   :  { %5959 = vmatmul.msk.bf16.gmra.mxu0 %vm111_vm0, %v8696_v17 }
  0x27   :  { %5961 = vmatmul.msk.bf16.gmra.mxu1 %vm111_vm0, %v8696_v17 }
  0x90   :  { %v127_v20 = vpop.f32.mrf.mxu0 }
  0x91   :  { %v128_v21 = vadd.f32 %v127_v20, %v67_v19 }
  0x93   :  { %v156_v22 = vmul.f32 0.17677669, %v128_v21  ;;  %v164_v24 = vpack.c.bf16 %v128_v21, %v128_v21 }
  0x94   :  { %v146_v17 = vpop.f32.mrf.mxu1 }
  0x95   :  { %v160_v26 = vpack.c.bf16 %v156_v22, %v156_v22  ;;  %v179_v29 = vunpack.c.l.b16 %v164_v24 }
  0x97   :  { %v174_v32 = vunpack.c.l.b16 %v160_v26 }
  0x98   :  { %v129_v23 = vpop.f32.mrf.mxu0 }
  0x99   :  { %v130_v25 = vadd.f32 %v129_v23, %v67_v19 }
  0x9b   :  { %v157_v27 = vmul.f32 0.17677669, %v130_v25  ;;  %v165_v28 = vpack.c.bf16 %v130_v25, %v130_v25 }
  0x9c   :  { %v148_v21 = vpop.f32.mrf.mxu1 }
  0x9d   :  { %v161_v30 = vpack.c.bf16 %v157_v27, %v157_v27  ;;  %v180_v31 = vunpack.c.l.b16 %v165_v28  ;;  %v149_v22 = vadd.f32 %v148_v21, %v68_v14 }
  0x9f   :  { %v175_v33 = vunpack.c.l.b16 %v161_v30  ;;  %v181_v34 = vpack.c.b16 %v180_v31, %v179_v29  ;;  %v169_v24 = vpack.c.bf16 %v149_v22, %v149_v22 }
  0xa0   :  { %v132_v35 = vpop.f32.mrf.mxu0 }
  0xa1   :  { %182 = vrot.lane.b32.xlu0 %v181_v34, %s8560_s0  ;;  %v8707_v36 = vpack.c.b16 %v175_v33, %v174_v32  ;;  %v133_v37 = vadd.f32 %v132_v35, %v67_v19  ;;  %v294_v25 = vunpack.c.l.b16 %v169_v24 }
  0xa3   :  { %v158_v38 = vmul.f32 0.17677669, %v133_v37  ;;  %v166_v40 = vpack.c.bf16 %v133_v37, %v133_v37 }
  0xa5   :  { %v162_v42 = vpack.c.bf16 %v158_v38, %v158_v38  ;;  %v212_v45 = vunpack.c.l.b16 %v166_v40 }
  0xa7   :  { %v207_v48 = vunpack.c.l.b16 %v162_v42 }
  0xa8   :  { %v134_v39 = vpop.f32.mrf.mxu0 }
  0xa9   :  { %v135_v41 = vadd.f32 %v134_v39, %v67_v19  ;;  %v147_v19 = vadd.f32 %v146_v17, %v68_v14 }
  0xab   :  { %v159_v43 = vmul.f32 0.17677669, %v135_v41  ;;  %v167_v44 = vpack.c.bf16 %v135_v41, %v135_v41  ;;  %v168_v20 = vpack.c.bf16 %v147_v19, %v147_v19 }
  0xad   :  { %v163_v46 = vpack.c.bf16 %v159_v43, %v159_v43  ;;  %v213_v47 = vunpack.c.l.b16 %v167_v44  ;;  %v293_v23 = vunpack.c.l.b16 %v168_v20 }
  0xaf   :  { %v208_v49 = vunpack.c.l.b16 %v163_v46  ;;  %v8709_v50 = vpack.c.b16 %v213_v47, %v212_v45  ;;  %v8755_v26 = vpack.c.b16 %v294_v25, %v293_v23 }
  0xb1   :  { %215 = vrot.lane.b32.xlu0 %v8709_v50, %s8560_s0  ;;  %v8713_v51 = vpack.c.b16 %v208_v49, %v207_v48  ;;  %v151_v49 = vpop.f32.mrf.mxu1 }
  0xb2   :  { %v152_v52 = vadd.f32 %v151_v49, %v68_v14 }
  0xb4   :  { %v170_v53 = vpack.c.bf16 %v152_v52, %v152_v52 }
  0xb6   :  { %v321_v56 = vunpack.c.l.b16 %v170_v53 }
  0xb9   :  { %v153_v54 = vpop.f32.mrf.mxu1 }
  0xba   :  { %v154_v55 = vadd.f32 %v153_v54, %v68_v14 }
  0xbc   :  { %v171_v57 = vpack.c.bf16 %v154_v55, %v154_v55 }
 0x113   :  { %v183_v58 = vpop.permute.xlu0 %182 }
 0x114   :  { %v189_v59 = vsel %vm184_vm1, %v183_v58, 0  ;;  %v322_v58 = vunpack.c.l.b16 %v171_v57 }
 0x115   :  { %198 = vmatpush.bf16.xpose.msra.mxu2 %v189_v59 }
 0x116   :  { %v8769_v59 = vpack.c.b16 %v322_v58, %v321_v56 }
 0x11c   :  { %5962 = vmatmul.msk.bf16.vlgmr.msra.gmra.mxu2 %vm184_vm1, %v8707_v36 }
 0x11d   :  { %307 = vmatpush.bf16.msrb.mxu2 %v8755_v26 }
 0x123   :  { %v216_v60 = vpop.permute.xlu0 %215 }
 0x124   :  { %v221_v61 = vsel %vm184_vm1, %v216_v60, 0 }
 0x125   :  { %230 = vmatpush.bf16.xpose.msra.mxu3 %v221_v61 }
 0x12c   :  { %5963 = vmatmul.msk.bf16.vlgmr.msra.gmra.mxu3 %vm184_vm1, %v8713_v51 }
 0x12d   :  { %335 = vmatpush.bf16.msrb.mxu3 %v8769_v59 }
 0x19f   :  { %v200_v4 = vpop.f32.mrf.mxu2 }
 0x1a0   :  { %v238_v5 = vsel %vm237_vm2, %v200_v4, -inf }
 0x1a1   :  { %239 = vmax.xlane.f32.xlu1 %v238_v5 }
 0x1a7   :  { %v202_v6 = vpop.f32.mrf.mxu2 }
 0x1a8   :  { %v241_v7 = vsel %vm237_vm2, %v202_v6, -inf }
 0x1a9   :  { %242 = vmax.xlane.f32.xlu1 %v241_v7 }
 0x1af   :  { %v232_v8 = vpop.f32.mrf.mxu3 }
 0x1b0   :  { %v244_v9 = vsel %vm237_vm2, %v232_v8, -inf }
 0x1b1   :  { %245 = vmax.xlane.f32.xlu2 %v244_v9 }
 0x1b7   :  { %v234_v10 = vpop.f32.mrf.mxu3 }
 0x1b8   :  { %v247_v11 = vsel %vm237_vm2, %v234_v10, -inf }
 0x1b9   :  { %248 = vmax.xlane.f32.xlu2 %v247_v11 }
 0x1d1   :  { %344 = vrot.lane.b32.xlu2 %v181_v34, %s8561_s30 }
 0x214   :  { %v240_v27 = vpop.xlane.xlu1 %239 }
 0x215   :  { %v250_v28 = vsub.f32 %v200_v4, %v240_v27 }
 0x217   :  { %v254_v29 = vmul.f32 1.442695, %v250_v28 }
 0x219   :  { %8462 = vpow2.f32 %v254_v29 }
 0x21c   :  { %v243_v30 = vpop.xlane.xlu1 %242 }
 0x21d   :  { %v251_v31 = vsub.f32 %v202_v6, %v243_v30 }
 0x21f   :  { %v8463_v32 = vpop.eup %8462  ;;  %v256_v18 = vmul.f32 1.442695, %v251_v31 }
 0x220   :  { %v262_v33 = vsel %vm237_vm2, %v8463_v32, 0.0 }
 0x221   :  { %8464 = vpow2.f32 %v256_v18  ;;  %263 = vadd.xlane.f32.xlu0 %v262_v33 }
 0x224   :  { %v246_v34 = vpop.xlane.xlu2 %245 }
 0x225   :  { %v252_v35 = vsub.f32 %v232_v8, %v246_v34 }
 0x227   :  { %v8465_v37 = vpop.eup %8464  ;;  %v258_v38 = vmul.f32 1.442695, %v252_v35 }
 0x228   :  { %v265_v39 = vsel %vm237_vm2, %v8465_v37, 0.0 }
 0x229   :  { %8466 = vpow2.f32 %v258_v38  ;;  %266 = vadd.xlane.f32.xlu1 %v265_v39 }
 0x22c   :  { %v249_v40 = vpop.xlane.xlu2 %248 }
 0x22d   :  { %v253_v41 = vsub.f32 %v234_v10, %v249_v40 }
 0x22f   :  { %v8467_v42 = vpop.eup %8466  ;;  %v260_v43 = vmul.f32 1.442695, %v253_v41 }
 0x230   :  { %v268_v44 = vsel %vm237_vm2, %v8467_v42, 0.0 }
 0x231   :  { %8468 = vpow2.f32 %v260_v43  ;;  %269 = vadd.xlane.f32.xlu2 %v268_v44 }
 0x234   :  { %v345_v45 = vpop.permute.xlu2 %344 }
 0x235   :  { %v350_v46 = vsel %vm184_vm1, %v345_v45, 0 }
 0x236   :  { %359 = vmatpush.bf16.xpose.msra.mxu2 %v350_v46 }
 0x237   :  { %v8469_v47 = vpop.eup %8468 }
 0x238   :  { %v271_v48 = vsel %vm237_vm2, %v8469_v47, 0.0 }
 0x239   :  { %272 = vadd.xlane.f32.xlu1 %v271_v48 }
 0x249   :  { %368 = vrot.lane.b32.xlu2 %v8709_v50, %s8561_s30 }
 0x251   :  { %366 = vrot.lane.b32.xlu2 %v8713_v51, %s8562_s16 }
 0x252   :  { %342 = vrot.lane.b32.xlu1 %v8707_v36, %s8562_s16 }
 0x294   :  { %v264_v50 = vpop.xlane.xlu0 %263 }
 0x295   :  { %8470 = vrcp.f32 %v264_v50 }
 0x29b   :  { %v8471_v61 = vpop.eup %8470 }
 0x29c   :  { %v267_v60 = vpop.xlane.xlu1 %266  ;;  %v278_v51 = vmul.f32 %v8471_v61, %v8463_v32 }
 0x29d   :  { %8472 = vrcp.f32 %v267_v60 }
 0x29e   :  { %v282_v36 = vpack.c.bf16 %v278_v51, %v278_v51 }
 0x2a0   :  { %v288_v2 = vunpack.c.l.b16 %v282_v36 }
 0x2a3   :  { %v8473_v62 = vpop.eup %8472 }
 0x2a4   :  { %v279_v63 = vmul.f32 %v8473_v62, %v8465_v37  ;;  %v270_v0 = vpop.xlane.xlu2 %269 }
 0x2a5   :  { %8474 = vrcp.f32 %v270_v0 }
 0x2a6   :  { %v283_v1 = vpack.c.bf16 %v279_v63, %v279_v63 }
 0x2a8   :  { %v289_v3 = vunpack.c.l.b16 %v283_v1 }
 0x2aa   :  { %v290_v4 = vpack.c.b16 %v289_v3, %v288_v2 }
 0x2ab   :  { %v8475_v7 = vpop.eup %8474 }
 0x2ac   :  { %v369_v5 = vpop.permute.xlu2 %368  ;;  %5964 = vmatmul.msk.bf16.vlgmr.msrb.gmra.mxu2 %vm237_vm2, %v290_v4  ;;  %v273_v6 = vpop.xlane.xlu1 %272  ;;  %v280_v9 = vmul.f32 %v8475_v7, %v8467_v42 }
 0x2ad   :  { %v374_v8 = vsel %vm184_vm1, %v369_v5, 0  ;;  %8476 = vrcp.f32 %v273_v6 }
 0x2ae   :  { %383 = vmatpush.bf16.xpose.msra.mxu3 %v374_v8  ;;  %v284_v11 = vpack.c.bf16 %v280_v9, %v280_v9 }
 0x2b0   :  { %v316_v19 = vunpack.c.l.b16 %v284_v11 }
 0x2b3   :  { %v8477_v10 = vpop.eup %8476 }
 0x2b4   :  { %v281_v14 = vmul.f32 %v8477_v10, %v8469_v47  ;;  %v367_v23 = vpop.permute.xlu2 %366 }
 0x2b6   :  { %v285_v17 = vpack.c.bf16 %v281_v14, %v281_v14 }
 0x2b8   :  { %v317_v20 = vunpack.c.l.b16 %v285_v17 }
 0x2ba   :  { %v318_v21 = vpack.c.b16 %v317_v20, %v316_v19 }
 0x2bc   :  { %5965 = vmatmul.msk.bf16.vlgmr.msrb.gmra.mxu3 %vm237_vm2, %v318_v21 }
 0x2c4   :  { %v343_v22 = vpop.permute.xlu1 %342 }
 0x2c5   :  { %5966 = vmatmul.msk.bf16.vlgmr.msra.gmra.mxu2 %vm184_vm1, %v343_v22 }
 0x2cc   :  { %5967 = vmatmul.msk.bf16.vlgmr.msra.gmra.mxu3 %vm184_vm1, %v367_v23 }
 0x32f   :  { %v8777_v24 = vpop.f32.mrf.mxu2 }
 0x337   :  { %v8781_v27 = vpop.f32.mrf.mxu2 }
 0x33f   :  { %v8779_v25 = vpop.f32.mrf.mxu3 }
 0x347   :  { %v8783_v28 = vpop.f32.mrf.mxu3 }
 0x348   :  { %v361_v29 = vpop.f32.mrf.mxu2 }
 0x349   :  { %v390_v30 = vsel %vm237_vm2, %v361_v29, -inf }
 0x34a   :  { %391 = vmax.xlane.f32.xlu1 %v390_v30 }
 0x34f   :  { %v385_v31 = vpop.f32.mrf.mxu3 }
 0x350   :  { %v363_v32 = vpop.f32.mrf.mxu2  ;;  %v396_v18 = vsel %vm237_vm2, %v385_v31, -inf }
 0x351   :  { %397 = vmax.xlane.f32.xlu2 %v396_v18  ;;  %v393_v33 = vsel %vm237_vm2, %v363_v32, -inf  ;;  %v8022_v18 = vld [vmem:[%s11183_s3 + $0x8] sm:$0xff] }
 0x352   :  { %394 = vmax.xlane.f32.xlu0 %v393_v33  ;;  %v8021_v33 = vld [vmem:[%s11183_s3] sm:$0xff] }
 0x357   :  { %v387_v34 = vpop.f32.mrf.mxu3 }
 0x358   :  { %v399_v35 = vsel %vm237_vm2, %v387_v34, -inf }
 0x35a   :  { %400 = vmax.xlane.f32.xlu0 %v399_v35 }
 0x3bd   :  { %v392_v37 = vpop.xlane.xlu1 %391 }
 0x3be   :  { %v402_v38 = vsub.f32 %v361_v29, %v392_v37 }
 0x3c0   :  { %v406_v39 = vmul.f32 1.442695, %v402_v38 }
 0x3c2   :  { %8478 = vpow2.f32 %v406_v39 }
 0x3c4   :  { %v398_v40 = vpop.xlane.xlu2 %397 }
 0x3c5   :  { %v404_v41 = vsub.f32 %v385_v31, %v398_v40  ;;  %v395_v42 = vpop.xlane.xlu0 %394  ;;  %v8024_v31 = vld [vmem:[%s11183_s3 + $0x18] sm:$0xff] }
 0x3c6   :  { %v403_v43 = vsub.f32 %v363_v32, %v395_v42  ;;  %v8023_v32 = vld [vmem:[%s11183_s3 + $0x10] sm:$0xff] }
 0x3c7   :  { %v410_v44 = vmul.f32 1.442695, %v404_v41 }
 0x3c8   :  { %v8479_v45 = vpop.eup %8478  ;;  %v408_v46 = vmul.f32 1.442695, %v403_v43 }
 0x3c9   :  { %8480 = vpow2.f32 %v410_v44  ;;  %v414_v47 = vsel %vm237_vm2, %v8479_v45, 0.0 }
 0x3ca   :  { %8482 = vpow2.f32 %v408_v46  ;;  %415 = vadd.xlane.f32.xlu0 %v414_v47 }
 0x3cd   :  { %v401_v48 = vpop.xlane.xlu0 %400 }
 0x3ce   :  { %v405_v49 = vsub.f32 %v387_v34, %v401_v48 }
 0x3cf   :  { %v8481_v52 = vpop.eup %8480 }
 0x3d0   :  { %v8483_v53 = vpop.eup %8482  ;;  %v412_v54 = vmul.f32 1.442695, %v405_v49  ;;  %v420_v55 = vsel %vm237_vm2, %v8481_v52, 0.0 }
 0x3d1   :  { %421 = vadd.xlane.f32.xlu1 %v420_v55  ;;  %v417_v56 = vsel %vm237_vm2, %v8483_v53, 0.0 }
 0x3d2   :  { %8484 = vpow2.f32 %v412_v54  ;;  %418 = vadd.xlane.f32.xlu0 %v417_v56 }
 0x3d8   :  { %v8485_v57 = vpop.eup %8484 }
 0x3d9   :  { %v423_v58 = vsel %vm237_vm2, %v8485_v57, 0.0 }
 0x3da   :  { %424 = vadd.xlane.f32.xlu2 %v423_v58 }
 0x3e6   :  { %443 = vrot.lane.b32.xlu0 %v8755_v26, %s8562_s16 }
 0x3ea   :  { %468 = vrot.lane.b32.xlu1 %v8769_v59, %s8562_s16 }
 0x43d   :  { %v416_v50 = vpop.xlane.xlu0 %415 }
 0x444   :  { %v422_v61 = vpop.xlane.xlu1 %421 }
 0x445   :  { %v419_v60 = vpop.xlane.xlu0 %418 }
 0x446   :  { %8486 = vrcp.f32 %v419_v60 }
 0x447   :  { %8488 = vrcp.f32 %v416_v50 }
 0x448   :  { %8490 = vrcp.f32 %v422_v61  ;;  %v8563_v61 = vmov 64.0  }
 0x44c   :  { %v8487_v51 = vpop.eup %8486 }
 0x44d   :  { %v8489_v62 = vpop.eup %8488  ;;  %v425_v36 = vpop.xlane.xlu2 %424  ;;  %v431_v63 = vmul.f32 %v8487_v51, %v8483_v53 }
 0x44e   :  { %8492 = vrcp.f32 %v425_v36  ;;  %v430_v0 = vmul.f32 %v8489_v62, %v8479_v45  ;;  %v8491_v1 = vpop.eup %8490 }
 0x44f   :  { %v435_v2 = vpack.c.bf16 %v431_v63, %v431_v63  ;;  %v432_v26 = vmul.f32 %v8491_v1, %v8481_v52  ;;  %8494 = vrcp.f32 %v8563_v61 }
 0x450   :  { %v434_v4 = vpack.c.bf16 %v430_v0, %v430_v0 }
 0x451   :  { %v441_v6 = vunpack.c.l.b16 %v435_v2  ;;  %v436_v8 = vpack.c.bf16 %v432_v26, %v432_v26 }
 0x452   :  { %v440_v7 = vunpack.c.l.b16 %v434_v4 }
 0x453   :  { %v465_v14 = vunpack.c.l.b16 %v436_v8 }
 0x454   :  { %v8493_v3 = vpop.eup %8492  ;;  %v442_v10 = vpack.c.b16 %v441_v6, %v440_v7 }
 0x455   :  { %v433_v5 = vmul.f32 %v8493_v3, %v8485_v57 }
 0x457   :  { %v437_v59 = vpack.c.bf16 %v433_v5, %v433_v5 }
 0x458   :  { %v444_v9 = vpop.permute.xlu0 %443 }
 0x459   :  { %456 = vmatpush.bf16.msrb.mxu2 %v444_v9  ;;  %v466_v11 = vunpack.c.l.b16 %v437_v59 }
 0x45b   :  { %v467_v19 = vpack.c.b16 %v466_v11, %v465_v14 }
 0x45c   :  { %v469_v17 = vpop.permute.xlu1 %468  ;;  %5968 = vmatmul.msk.bf16.vlgmr.msrb.gmra.mxu2 %vm237_vm2, %v442_v10 }
 0x45d   :  { %481 = vmatpush.bf16.msrb.mxu3 %v469_v17  ;;  %556 = vmatpush.bf16.msra.mxu2 %v8024_v31  ;;  %v6184_v31 = vld [vmem:[%s11186_s9 + $0x1c0] sm:$0xf0] }
 0x460   :  { %5969 = vmatmul.msk.bf16.vlgmr.msrb.gmra.mxu3 %vm237_vm2, %v467_v19 }
 0x461   :  { %557 = vmatpush.bf16.msra.mxu2 %v8023_v32  ;;  %v6190_v32 = vld [vmem:[%s11186_s9 + $0x188] sm:$0xf] }
 0x465   :  { %558 = vmatpush.bf16.msra.mxu2 %v8022_v18  ;;  %v8082_v18 = vld [vmem:[%s11186_s9 + $0x1c4] sm:$0xf0] }
 0x469   :  { %559 = vmatpush.bf16.msra.mxu2 %v8021_v33 }
 0x4df   :  { %v458_v20 = vpop.f32.mrf.mxu2 }
 0x4e3   :  { %v483_v21 = vpop.f32.mrf.mxu3 }
 0x4e7   :  { %v460_v22 = vpop.f32.mrf.mxu2 }
 0x4e8   :  { %v8429_v23 = vpack.i.bf16 %v460_v22, %v458_v20  ;;  %v6182_v22 = vld [vmem:[%s11186_s9 + $0x180] sm:$0xf] }
 0x4ea   :  { %8430 = vrot.lane.b32.xlu0 %v8429_v23, %s8561_s30  ;;  %v8081_v23 = vld [vmem:[%s11186_s9 + $0x1bc] sm:$0xf0] }
 0x4eb   :  { %v485_v29 = vpop.f32.mrf.mxu3 }
 0x4ec   :  { %v8434_v30 = vpack.i.bf16 %v485_v29, %v483_v21  ;;  %v8073_v29 = vld [vmem:[%s11186_s9 + $0x184] sm:$0xf] }
 0x4ed   :  { %v6187_v33 = vor.u32 %v8073_v29, %v6184_v31 }
 0x4ee   :  { %8435 = vrot.lane.b32.xlu2 %v8434_v30, %s8561_s30  ;;  %v6183_v30 = vor.u32 %v8081_v23, %v6182_v22 }
 0x4ef   :  { %1137 = vmatpush.bf16.msrb.mxu0 %v6187_v33  ;;  %v6198_v33 = vld [vmem:[%s11186_s9 + $0x190] sm:$0xf] }
 0x4f0   :  { %1118 = vmatpush.bf16.msra.mxu3 %v6183_v30 }
 0x548   :  { %v8436_v41 = vpop.permute.xlu2 %8435 }
 0x549   :  { %v8438_v42 = vunpack.i.h.bf16 %v8436_v41  ;;  %v8437_v43 = vunpack.i.l.bf16 %v8436_v41  ;;  %v8057_v41 = vld [vmem:[%s11186_s9 + $0x104] sm:$0xf] }
 0x54b   :  { %v506_v44 = vsel %vm184_vm1, %v8779_v25, %v8437_v43  ;;  %v507_v45 = vsel %vm184_vm1, %v8783_v28, %v8438_v42  ;;  %v6120_v43 = vld [vmem:[%s11186_s9 + $0x140] sm:$0xf0] }
 0x54c   :  { %v509_v46 = vpack.c.bf16 %v507_v45, %v506_v44  ;;  %v6126_v44 = vld [vmem:[%s11186_s9 + $0x108] sm:$0xf] }
 0x54d   :  { %v8066_v45 = vld [vmem:[%s11186_s9 + $0x144] sm:$0xf0] }
 0x55c   :  { %v8431_v34 = vpop.permute.xlu0 %8430 }
 0x55d   :  { %v8433_v35 = vunpack.i.h.bf16 %v8431_v34  ;;  %v8432_v37 = vunpack.i.l.bf16 %v8431_v34  ;;  %v6191_v34 = vor.u32 %v8082_v18, %v6190_v32 }
 0x55f   :  { %v505_v38 = vsel %vm184_vm1, %v8781_v27, %v8433_v35  ;;  %v504_v39 = vsel %vm184_vm1, %v8777_v24, %v8432_v37  ;;  %v8449_v27 = vld [vmem:[%s11182_s4] ss:$0 sm:$0xff]  ;;  %v8074_v35 = vld [vmem:[%s11186_s9 + $0x18c] sm:$0xf]  ;;  %1156 = vmatpush.bf16.msrb.mxu1 %v6191_v34  ;;  %v8083_v34 = vld [vmem:[%s11186_s9 + $0x1cc] sm:$0xf0] }
 0x560   :  { %v508_v40 = vpack.c.bf16 %v505_v38, %v504_v39  ;;  %v6192_v37 = vld [vmem:[%s11186_s9 + $0x1c8] sm:$0xf0]  ;;  %v6118_v39 = vld [vmem:[%s11186_s9 + $0x100] sm:$0xf] }
 0x561   :  { %v6195_v38 = vor.u32 %v8074_v35, %v6192_v37  ;;  %v6199_v37 = vor.u32 %v8083_v34, %v6198_v33  ;;  %v8036_v34 = vld [vmem:[%s11186_s9 + $0x54] sm:$0xf0] }
 0x562   :  { %5986 = vmatmul.msk.bf16.vlgmr.msra.gmra.mxu2 %vm111_vm0, %v508_v40  ;;  %v8065_v40 = vld [vmem:[%s11186_s9 + $0x13c] sm:$0xf0] }
 0x563   :  { %1175 = vmatpush.bf16.msrb.mxu2 %v6195_v38  ;;  %v6119_v42 = vor.u32 %v8065_v40, %v6118_v39  ;;  %v8075_v38 = vld [vmem:[%s11186_s9 + $0x194] sm:$0xf]  ;;  %v6206_v40 = vld [vmem:[%s11186_s9 + $0x198] sm:$0xf] }
 0x564   :  { %v6200_v39 = vld [vmem:[%s11186_s9 + $0x1d0] sm:$0xf0] }
 0x565   :  { %1119 = vmatpush.bf16.msra.mxu3 %v6119_v42  ;;  %v8084_v42 = vld [vmem:[%s11186_s9 + $0x1d4] sm:$0xf0] }
 0x572   :  { %5987 = vmatmul.msk.bf16.gmra.mxu2 %vm111_vm0, %v509_v46  ;;  %v6123_v46 = vor.u32 %v8057_v41, %v6120_v43  ;;  %v6203_v41 = vor.u32 %v8075_v38, %v6200_v39  ;;  %v8076_v43 = vld [vmem:[%s11186_s9 + $0x19c] sm:$0xf] }
 0x573   :  { %v8028_v38 = vld [vmem:[%s11186_s9 + $0x1c] sm:$0xf] }
 0x574   :  { %1138 = vmatpush.bf16.msrb.mxu0 %v6123_v46  ;;  %v6016_v39 = vld [vmem:[%s11186_s9 + $0x58] sm:$0xf0] }
 0x5e5   :  { %v561_v24 = vpop.f32.mrf.mxu2 }
 0x5e6   :  { %v562_v47 = vadd.f32 %v8449_v27, %v561_v24  ;;  %v8058_v24 = vld [vmem:[%s11186_s9 + $0x10c] sm:$0xf] }
 0x5e8   :  { %v571_v48 = vadd.f32 %v562_v47, %v8671_v12  ;;  %v6128_v47 = vld [vmem:[%s11186_s9 + $0x148] sm:$0xf0] }
 0x5ea   :  { %v577_v49 = vsel %vm111_vm0, %v571_v48, 0.0 }
 0x5eb   :  { %578 = vadd.xlane.f32.xlu0 %v577_v49  ;;  %v6054_v49 = vld [vmem:[%s11186_s9 + $0x80] sm:$0xf] }
 0x5ed   :  { %v563_v52 = vpop.f32.mrf.mxu2 }
 0x5ee   :  { %v564_v53 = vadd.f32 %v8449_v27, %v563_v52  ;;  %v8049_v52 = vld [vmem:[%s11186_s9 + $0xbc] sm:$0xf0] }
 0x5f0   :  { %v572_v25 = vadd.f32 %v564_v53, %v8676_v13  ;;  %v8495_v13 = vpop.eup %8494  ;;  %v8041_v53 = vld [vmem:[%s11186_s9 + $0x84] sm:$0xf] }
 0x5f1   :  { %v590_v51 = vmul.f32 64.0, %v8495_v13  ;;  %vm594_vm3 = vweird.f32 %v8495_v13 }
 0x5f2   :  { %v580_v28 = vsel %vm111_vm0, %v572_v25, 0.0 }
 0x5f3   :  { %581 = vadd.xlane.f32.xlu1 %v580_v28  ;;  %v591_v62 = vsub.f32 1.0, %v590_v51  ;;  %v6056_v28 = vld [vmem:[%s11186_s9 + $0xc0] sm:$0xf0]  ;;  %v8033_v51 = vld [vmem:[%s11186_s9 + $0x3c] sm:$0xf0] }
 0x5f5   :  { %v566_v54 = vpop.f32.mrf.mxu2  ;;  %v592_v36 = vmul.f32 %v8495_v13, %v591_v62  ;;  %v8025_v62 = vld [vmem:[%s11186_s9 + $0x4] sm:$0xf] }
 0x5f6   :  { %v567_v55 = vadd.f32 %v8449_v27, %v566_v54  ;;  %v6062_v54 = vld [vmem:[%s11186_s9 + $0x88] sm:$0xf] }
 0x5f7   :  { %v593_v63 = vadd.f32 %v8495_v13, %v592_v36 }
 0x5f8   :  { %v573_v56 = vadd.f32 %v567_v55, %v8687_v15  ;;  %v8050_v55 = vld [vmem:[%s11186_s9 + $0xc4] sm:$0xf0] }
 0x5f9   :  { %v8834_v0 = vsel %vm594_vm3, %v8495_v13, %v593_v63  ;;  %v5990_v13 = vld [vmem:[%s11186_s9] sm:$0xf]  ;;  %v5992_v63 = vld [vmem:[%s11186_s9 + $0x40] sm:$0xf0] }
 0x5fa   :  { %v583_v57 = vsel %vm111_vm0, %v573_v56, 0.0  ;;  %v5991_v36 = vor.u32 %v8033_v51, %v5990_v13  ;;  %v6144_v51 = vld [vmem:[%s11186_s9 + $0x158] sm:$0xf0] }
 0x5fb   :  { %584 = vadd.xlane.f32.xlu2 %v583_v57  ;;  %v6063_v57 = vor.u32 %v8050_v55, %v6062_v54  ;;  %v6136_v54 = vld [vmem:[%s11186_s9 + $0x150] sm:$0xf0]  ;;  %v6142_v55 = vld [vmem:[%s11186_s9 + $0x118] sm:$0xf] }
 0x5fd   :  { %v568_v58 = vpop.f32.mrf.mxu2 }
 0x5fe   :  { %v569_v50 = vadd.f32 %v8449_v27, %v568_v58  ;;  %v6127_v27 = vor.u32 %v8066_v45, %v6126_v44  ;;  %v8042_v58 = vld [vmem:[%s11186_s9 + $0x8c] sm:$0xf]  ;;  %v6208_v44 = vld [vmem:[%s11186_s9 + $0x1d8] sm:$0xf0] }
 0x600   :  { %v574_v12 = vadd.f32 %v569_v50, %v8692_v16  ;;  %1157 = vmatpush.bf16.msrb.mxu1 %v6127_v27  ;;  %v6064_v50 = vld [vmem:[%s11186_s9 + $0xc8] sm:$0xf0] }
 0x602   :  { %v586_v60 = vsel %vm111_vm0, %v574_v12, 0.0 }
 0x603   :  { %587 = vadd.xlane.f32.xlu0 %v586_v60  ;;  %v6067_v60 = vor.u32 %v8042_v58, %v6064_v50  ;;  %v8068_v58 = vld [vmem:[%s11186_s9 + $0x154] sm:$0xf0]  ;;  %v8060_v50 = vld [vmem:[%s11186_s9 + $0x11c] sm:$0xf] }
 0x604   :  { %1158 = vmatpush.bf16.msrb.mxu1 %v6063_v57  ;;  %v6143_v13 = vor.u32 %v8068_v58, %v6142_v55 }
 0x65e   :  { %v579_v15 = vpop.xlane.xlu0 %578 }
 0x65f   :  { %v596_v1 = vmul.f32 %v8834_v0, %v579_v15  ;;  %v5998_v15 = vld [vmem:[%s11186_s9 + $0x8] sm:$0xf] }
 0x661   :  { %v8837_v2 = vsub.f32 %v571_v48, %v596_v1  ;;  %v6131_v48 = vor.u32 %v8058_v24, %v6128_v47  ;;  %v8034_v1 = vld [vmem:[%s11186_s9 + $0x44] sm:$0xf0]  ;;  %v6207_v24 = vor.u32 %v8084_v42, %v6206_v40  ;;  %v6211_v47 = vor.u32 %v8076_v43, %v6208_v44 }
 0x662   :  { %v6019_v42 = vor.u32 %v8028_v38, %v6016_v39  ;;  %v6024_v38 = vld [vmem:[%s11186_s9 + $0x60] sm:$0xf0]  ;;  %v6030_v39 = vld [vmem:[%s11186_s9 + $0x28] sm:$0xf] }
 0x663   :  { %v604_v16 = vmul.f32 %v8837_v2, %v8837_v2  ;;  %1176 = vmatpush.bf16.msrb.mxu2 %v6131_v48  ;;  %v6134_v48 = vld [vmem:[%s11186_s9 + $0x110] sm:$0xf] }
 0x665   :  { %v608_v3 = vsel %vm111_vm0, %v604_v16, 0.0 }
 0x666   :  { %v582_v4 = vpop.xlane.xlu1 %581  ;;  %609 = vadd.xlane.f32.xlu0 %v608_v3  ;;  %v5995_v3 = vor.u32 %v8025_v62, %v5992_v63  ;;  %v6070_v62 = vld [vmem:[%s11186_s9 + $0x90] sm:$0xf] }
 0x667   :  { %v597_v26 = vmul.f32 %v8834_v0, %v582_v4  ;;  %1177 = vmatpush.bf16.msrb.mxu2 %v6067_v60  ;;  %v5999_v4 = vor.u32 %v8034_v1, %v5998_v15  ;;  %v8051_v15 = vld [vmem:[%s11186_s9 + $0xcc] sm:$0xf0]  ;;  %v8043_v1 = vld [vmem:[%s11186_s9 + $0x94] sm:$0xf] }
 0x669   :  { %v8843_v5 = vsub.f32 %v572_v25, %v597_v26  ;;  %v6055_v25 = vor.u32 %v8049_v52, %v6054_v49  ;;  %v8026_v26 = vld [vmem:[%s11186_s9 + $0xc] sm:$0xf]  ;;  %1159 = vmatpush.bf16.msrb.mxu1 %v5999_v4  ;;  %v8067_v49 = vld [vmem:[%s11186_s9 + $0x14c] sm:$0xf0]  ;;  %v9009_v52 = vld [vmem:[%s11184_s5] ss:$0 sm:$0xff] }
 0x66a   :  { %v6152_v4 = vld [vmem:[%s11186_s9 + $0x160] sm:$0xf0] }
 0x66b   :  { %v605_v6 = vmul.f32 %v8843_v5, %v8843_v5  ;;  %1120 = vmatpush.bf16.msra.mxu3 %v6055_v25  ;;  %v6135_v25 = vor.u32 %v8067_v49, %v6134_v48 }
 0x66d   :  { %v611_v59 = vsel %vm111_vm0, %v605_v6, 0.0  ;;  %v6000_v6 = vld [vmem:[%s11186_s9 + $0x48] sm:$0xf0]  ;;  %1232 = vmatpush.bf16.msra.mxu1 %v6207_v24 }
 0x66e   :  { %v585_v7 = vpop.xlane.xlu2 %584  ;;  %612 = vadd.xlane.f32.xlu1 %v611_v59  ;;  %v6003_v59 = vor.u32 %v8026_v26, %v6000_v6  ;;  %v6071_v26 = vor.u32 %v8051_v15, %v6070_v62  ;;  %v8078_v62 = vld [vmem:[%s11186_s9 + $0x1ac] sm:$0xf]  ;;  %v6150_v15 = vld [vmem:[%s11186_s9 + $0x120] sm:$0xf] }
 0x66f   :  { %v598_v8 = vmul.f32 %v8834_v0, %v585_v7  ;;  %1121 = vmatpush.bf16.msra.mxu3 %v5991_v36 }
 0x670   :  { %1178 = vmatpush.bf16.msrb.mxu2 %v6003_v59  ;;  %v6078_v59 = vld [vmem:[%s11186_s9 + $0x98] sm:$0xf] }
 0x671   :  { %v8849_v9 = vsub.f32 %v573_v56, %v598_v8  ;;  %v6059_v56 = vor.u32 %v8041_v53, %v6056_v28  ;;  %v8059_v28 = vld [vmem:[%s11186_s9 + $0x114] sm:$0xf]  ;;  %1233 = vmatpush.bf16.msra.mxu1 %v6143_v13 }
 0x672   :  { %v6139_v57 = vor.u32 %v8059_v28, %v6136_v54 }
 0x673   :  { %v606_v10 = vmul.f32 %v8849_v9, %v8849_v9  ;;  %1139 = vmatpush.bf16.msrb.mxu0 %v6059_v56  ;;  %1194 = vmatpush.bf16.msrb.mxu3 %v6199_v37 }
 0x674   :  { %1251 = vmatpush.bf16.msra.mxu2 %v6211_v47 }
 0x675   :  { %v614_v11 = vsel %vm111_vm0, %v606_v10, 0.0 }
 0x676   :  { %615 = vadd.xlane.f32.xlu0 %v614_v11  ;;  %v588_v14 = vpop.xlane.xlu0 %587 }
 0x677   :  { %v599_v17 = vmul.f32 %v8834_v0, %v588_v14  ;;  %1140 = vmatpush.bf16.msrb.mxu0 %v5995_v3  ;;  %1195 = vmatpush.bf16.msrb.mxu3 %v6135_v25  ;;  %v9055_v3 = vld [vmem:[%s11185_s6] ss:$0 sm:$0xff] }
 0x679   :  { %v8855_v19 = vsub.f32 %v574_v12, %v599_v17 }
 0x67b   :  { %v607_v20 = vmul.f32 %v8855_v19, %v8855_v19  ;;  %1213 = vmatpush.bf16.msra.mxu0 %v6203_v41  ;;  %1196 = vmatpush.bf16.msrb.mxu3 %v6071_v26  ;;  %v6158_v26 = vld [vmem:[%s11186_s9 + $0x128] sm:$0xf] }
 0x67d   :  { %v617_v21 = vsel %vm111_vm0, %v607_v20, 0.0 }
 0x67e   :  { %618 = vadd.xlane.f32.xlu2 %v617_v21 }
 0x67f   :  { %1214 = vmatpush.bf16.msra.mxu0 %v6139_v57 }
 0x6d9   :  { %v610_v12 = vpop.xlane.xlu0 %609 }
 0x6da   :  { %v620_v61 = vmul.f32 %v610_v12, %v8834_v0 }
 0x6dc   :  { %v624_v16 = vadd.f32 1e-05, %v620_v61 }
 0x6de   :  { %8496 = vrsqrt.f32 %v624_v16  ;;  %vm634_vm5 = vweird.f32 %v624_v16 }
 0x6e1   :  { %v613_v7 = vpop.xlane.xlu1 %612 }
 0x6e2   :  { %v621_v8 = vmul.f32 %v613_v7, %v8834_v0  ;;  %v8052_v7 = vld [vmem:[%s11186_s9 + $0xd4] sm:$0xf0] }
 0x6e4   :  { %v8497_v10 = vpop.eup %8496  ;;  %v8958_v11 = vadd.f32 1e-05, %v621_v8 }
 0x6e5   :  { %v629_v14 = vmul.f32 %v8497_v10, %v624_v16  ;;  %vm635_vm4 = vweird.f32 %v8497_v10  ;;  %v6072_v16 = vld [vmem:[%s11186_s9 + $0xd0] sm:$0xf0] }
 0x6e6   :  { %8498 = vrsqrt.f32 %v8958_v11  ;;  %vm8968_vm6 = vmor %vm634_vm5, %vm635_vm4  ;;  %vm644_vm8 = vweird.f32 %v8958_v11  ;;  %v6075_v6 = vor.u32 %v8043_v1, %v6072_v16  ;;  %v8069_v1 = vld [vmem:[%s11186_s9 + $0x15c] sm:$0xf0]  ;;  %v8061_v16 = vld [vmem:[%s11186_s9 + $0x124] sm:$0xf] }
 0x6e7   :  { %v630_v17 = vmul.f32 %v8497_v10, %v629_v14  ;;  %v8044_v14 = vld [vmem:[%s11186_s9 + $0x9c] sm:$0xf] }
 0x6e8   :  { %1215 = vmatpush.bf16.msra.mxu0 %v6075_v6  ;;  %v8070_v6 = vld [vmem:[%s11186_s9 + $0x164] sm:$0xf0] }
 0x6e9   :  { %v631_v20 = vmul.f32 0.5, %v630_v17  ;;  %v616_v21 = vpop.xlane.xlu0 %615  ;;  %v6080_v17 = vld [vmem:[%s11186_s9 + $0xd8] sm:$0xf0] }
 0x6ea   :  { %v622_v22 = vmul.f32 %v616_v21, %v8834_v0 }
 0x6eb   :  { %v632_v23 = vsub.f32 1.5, %v631_v20  ;;  %v6006_v20 = vld [vmem:[%s11186_s9 + $0x10] sm:$0xf] }
 0x6ec   :  { %v8962_v29 = vpop.eup %8498  ;;  %v8964_v30 = vadd.f32 1e-05, %v622_v22 }
 0x6ed   :  { %v633_v31 = vmul.f32 %v8497_v10, %v632_v23  ;;  %v639_v32 = vmul.f32 %v8962_v29, %v8958_v11  ;;  %vm645_vm7 = vweird.f32 %v8962_v29  ;;  %v6079_v11 = vor.u32 %v8052_v7, %v6078_v59 }
 0x6ee   :  { %8500 = vrsqrt.f32 %v8964_v30  ;;  %vm9059_vm9 = vmor %vm644_vm8, %vm645_vm7  ;;  %v6083_v23 = vor.u32 %v8044_v14, %v6080_v17  ;;  %vm654_vm11 = vweird.f32 %v8964_v30  ;;  %v6155_v59 = vor.u32 %v8061_v16, %v6152_v4  ;;  %v8053_v17 = vld [vmem:[%s11186_s9 + $0xdc] sm:$0xf0]  ;;  %v6102_v16 = vld [vmem:[%s11186_s9 + $0xb0] sm:$0xf] }
 0x6ef   :  { %v640_v35 = vmul.f32 %v8962_v29, %v639_v32  ;;  %v637_v45 = vsel %vm8968_vm6, %v8497_v10, %v633_v31  ;;  %v8027_v31 = vld [vmem:[%s11186_s9 + $0x14] sm:$0xf]  ;;  %1234 = vmatpush.bf16.msra.mxu1 %v6079_v11  ;;  %v6159_v7 = vor.u32 %v8070_v6, %v6158_v26  ;;  %v6086_v11 = vld [vmem:[%s11186_s9 + $0xa0] sm:$0xf]  ;;  %v8055_v4 = vld [vmem:[%s11186_s9 + $0xec] sm:$0xf0] }
 0x6f0   :  { %v668_v60 = vmul.f32 %v637_v45, %v8837_v2  ;;  %v6147_v2 = vor.u32 %v8060_v50, %v6144_v51  ;;  %v6008_v32 = vld [vmem:[%s11186_s9 + $0x50] sm:$0xf0]  ;;  %v8086_v51 = vld [vmem:[%s11186_s9 + $0x1e4] sm:$0xf0] }
 0x6f1   :  { %v641_v46 = vmul.f32 0.5, %v640_v35  ;;  %v619_v27 = vpop.xlane.xlu2 %618  ;;  %v6011_v37 = vor.u32 %v8027_v31, %v6008_v32  ;;  %v8046_v31 = vld [vmem:[%s11186_s9 + $0xac] sm:$0xf]  ;;  %v8047_v26 = vld [vmem:[%s11186_s9 + $0xb4] sm:$0xf] }
 0x6f2   :  { %v623_v53 = vmul.f32 %v619_v27, %v8834_v0  ;;  %1252 = vmatpush.bf16.msra.mxu2 %v6147_v2  ;;  %v675_v21 = vmul.f32 %v9009_v52, %v668_v60  ;;  %v6104_v6 = vld [vmem:[%s11186_s9 + $0xf0] sm:$0xf0] }
 0x6f3   :  { %v642_v56 = vsub.f32 1.5, %v641_v46  ;;  %1216 = vmatpush.bf16.msra.mxu0 %v6011_v37  ;;  %v8029_v37 = vld [vmem:[%s11186_s9 + $0x24] sm:$0xf] }
 0x6f4   :  { %v9028_v12 = vpop.eup %8500  ;;  %v9031_v61 = vadd.f32 1e-05, %v623_v53  ;;  %v9108_v44 = vadd.f32 %v9055_v3, %v675_v21  ;;  %v8085_v53 = vld [vmem:[%s11186_s9 + $0x1dc] sm:$0xf0]  ;;  %v6088_v21 = vld [vmem:[%s11186_s9 + $0xe0] sm:$0xf0] }
 0x6f5   :  { %v643_v36 = vmul.f32 %v8962_v29, %v642_v56  ;;  %v649_v63 = vmul.f32 %v9028_v12, %v8964_v30  ;;  %vm655_vm10 = vweird.f32 %v9028_v12  ;;  %v6214_v30 = vld [vmem:[%s11186_s9 + $0x1a0] sm:$0xf] }
 0x6f6   :  { %8502 = vrsqrt.f32 %v9031_v61  ;;  %1253 = vmatpush.bf16.msra.mxu2 %v6083_v23  ;;  %vm656_vm12 = vmor %vm654_vm11, %vm655_vm10  ;;  %v6215_v25 = vor.u32 %v8085_v53, %v6214_v30  ;;  %vm664_vm14 = vweird.f32 %v9031_v61  ;;  %v6094_v23 = vld [vmem:[%s11186_s9 + $0xa8] sm:$0xf]  ;;  %v8079_v53 = vld [vmem:[%s11186_s9 + $0x1b4] sm:$0xf] }
 0x6f7   :  { %v647_v8 = vsel %vm9059_vm9, %v8962_v29, %v643_v36  ;;  %v650_v10 = vmul.f32 %v9028_v12, %v649_v63  ;;  %v8035_v29 = vld [vmem:[%s11186_s9 + $0x4c] sm:$0xf0]  ;;  %v6224_v36 = vld [vmem:[%s11186_s9 + $0x1e8] sm:$0xf0] }
 0x6f8   :  { %v669_v22 = vmul.f32 %v647_v8, %v8843_v5  ;;  %v6007_v33 = vor.u32 %v8035_v29, %v6006_v20  ;;  %v6014_v5 = vld [vmem:[%s11186_s9 + $0x18] sm:$0xf]  ;;  %v6227_v2 = vor.u32 %v8078_v62, %v6224_v36  ;;  %v8062_v8 = vld [vmem:[%s11186_s9 + $0x12c] sm:$0xf]  ;;  %v8045_v20 = vld [vmem:[%s11186_s9 + $0xa4] sm:$0xf] }
 0x6f9   :  { %v651_v18 = vmul.f32 0.5, %v650_v10  ;;  %v6015_v41 = vor.u32 %v8036_v34, %v6014_v5  ;;  %v6160_v10 = vld [vmem:[%s11186_s9 + $0x168] sm:$0xf0]  ;;  %v8054_v29 = vld [vmem:[%s11186_s9 + $0xe4] sm:$0xf0]  ;;  %v6091_v32 = vor.u32 %v8045_v20, %v6088_v21 }
 0x6fa   :  { %v676_v35 = vmul.f32 %v9009_v52, %v669_v22  ;;  %1197 = vmatpush.bf16.msrb.mxu3 %v6007_v33  ;;  %1254 = vmatpush.bf16.msra.mxu2 %v6019_v42  ;;  %v6163_v14 = vor.u32 %v8062_v8, %v6160_v10  ;;  %v6087_v22 = vor.u32 %v8053_v17, %v6086_v11  ;;  %v6022_v33 = vld [vmem:[%s11186_s9 + $0x20] sm:$0xf]  ;;  %v8030_v42 = vld [vmem:[%s11186_s9 + $0x2c] sm:$0xf]  ;;  %v6174_v62 = vld [vmem:[%s11186_s9 + $0x138] sm:$0xf] }
 0x6fb   :  { %v652_v40 = vsub.f32 1.5, %v651_v18  ;;  %1235 = vmatpush.bf16.msra.mxu1 %v6015_v41  ;;  %v6096_v18 = vld [vmem:[%s11186_s9 + $0xe8] sm:$0xf0]  ;;  %v8037_v5 = vld [vmem:[%s11186_s9 + $0x5c] sm:$0xf0]  ;;  %v6095_v34 = vor.u32 %v8054_v29, %v6094_v23  ;;  %v6107_v11 = vor.u32 %v8047_v26, %v6104_v6  ;;  %v8128_v26 = vld [vmem:[%s11187_s11 + $0x138] sm:$0xff] }
 0x6fc   :  { %v8503_v43 = vpop.eup %8502  ;;  %v9111_v45 = vadd.f32 %v9055_v3, %v676_v35  ;;  %v6099_v35 = vor.u32 %v8046_v31, %v6096_v18  ;;  %v8038_v41 = vld [vmem:[%s11186_s9 + $0x64] sm:$0xf0]  ;;  %v8072_v36 = vld [vmem:[%s11186_s9 + $0x174] sm:$0xf0]  ;;  %v8048_v10 = vld [vmem:[%s11186_s9 + $0xbc] sm:$0xf] }
 0x6fd   :  { %v653_v46 = vmul.f32 %v9028_v12, %v652_v40  ;;  %v659_v27 = vmul.f32 %v8503_v43, %v9031_v61  ;;  %vm665_vm13 = vweird.f32 %v8503_v43  ;;  %v8077_v61 = vld [vmem:[%s11186_s9 + $0x1a4] sm:$0xf]  ;;  %v6023_v40 = vor.u32 %v8037_v5, %v6022_v33  ;;  %v8056_v8 = vld [vmem:[%s11186_s9 + $0xf4] sm:$0xf0]  ;;  %v6038_v17 = vld [vmem:[%s11186_s9 + $0x30] sm:$0xf] }
 0x6fe   :  { %v9118_v24 = vpack.c.bf16 %v9111_v45, %v9108_v44  ;;  %vm666_vm15 = vmor %vm664_vm14, %vm665_vm13  ;;  %v8039_v20 = vld [vmem:[%s11186_s9 + $0x6c] sm:$0xf0]  ;;  %v8031_v23 = vld [vmem:[%s11186_s9 + $0x34] sm:$0xf] }
 0x6ff   :  { %v660_v47 = vmul.f32 %v8503_v43, %v659_v27  ;;  %v657_v48 = vsel %vm656_vm12, %v9028_v12, %v653_v46  ;;  %v6027_v46 = vor.u32 %v8029_v37, %v6024_v38  ;;  %v6031_v27 = vor.u32 %v8038_v41, %v6030_v39  ;;  %v6040_v29 = vld [vmem:[%s11186_s9 + $0x70] sm:$0xf0]  ;;  %v6046_v31 = vld [vmem:[%s11186_s9 + $0x38] sm:$0xf]  ;;  %v8032_v33 = vld [vmem:[%s11186_s9 + $0x3c] sm:$0xf] }
 0x700   :  { %6244 = vmatmul.msk.bf16.vlgmr.msra.gmra.mxu3 %vm111_vm0, %v9118_v24  ;;  %6246 = vmatmul.msk.bf16.vlgmr.msrb.gmra.mxu0 %vm111_vm0, %v9118_v24  ;;  %v670_v54 = vmul.f32 %v657_v48, %v8849_v9  ;;  %v6230_v48 = vld [vmem:[%s11186_s9 + $0x1b0] sm:$0xf]  ;;  %v8040_v18 = vld [vmem:[%s11186_s9 + $0x74] sm:$0xf0]  ;;  %v6048_v5 = vld [vmem:[%s11186_s9 + $0x78] sm:$0xf0] }
 0x701   :  { %v661_v49 = vmul.f32 0.5, %v660_v47  ;;  %6248 = vmatmul.msk.bf16.vlgmr.msrb.gmra.mxu1 %vm111_vm0, %v9118_v24  ;;  %6250 = vmatmul.msk.bf16.vlgmr.msrb.gmra.mxu2 %vm111_vm0, %v9118_v24  ;;  %v6051_v37 = vor.u32 %v8032_v33, %v6048_v5  ;;  %v8104_v38 = vld [vmem:[%s11187_s11 + $0x78] sm:$0xff]  ;;  %v8111_v41 = vld [vmem:[%s11187_s11 + $0xb0] sm:$0xff] }
 0x702   :  { %1270 = vmatpush.bf16.msra.mxu3 %v6215_v25  ;;  %v677_v57 = vmul.f32 %v9009_v52, %v670_v54  ;;  %1327 = vmatpush.bf16.msrb.mxu2 %v6227_v2  ;;  %v6232_v25 = vld [vmem:[%s11186_s9 + $0x1f0] sm:$0xf0]  ;;  %v6175_v2 = vor.u32 %v8072_v36, %v6174_v62  ;;  %v8112_v39 = vld [vmem:[%s11187_s11 + $0xb8] sm:$0xff]  ;;  %v8105_v62 = vld [vmem:[%s11187_s11 + $0x80] sm:$0xff] }
 0x703   :  { %v662_v28 = vsub.f32 1.5, %v661_v49  ;;  %v8087_v49 = vld [vmem:[%s11186_s9 + $0x1ec] sm:$0xf0]  ;;  %v6235_v54 = vor.u32 %v8079_v53, %v6232_v25  ;;  %v8094_v53 = vld [vmem:[%s11187_s11 + $0x28] sm:$0xff]  ;;  %v8152_v6 = vld [vmem:[%s11187_s11 + $0x1f8] sm:$0xff] }
 0x704   :  { %v9142_v12 = vadd.f32 %v9055_v3, %v677_v57  ;;  %v6231_v30 = vor.u32 %v8087_v49, %v6230_v48  ;;  %v6240_v57 = vld [vmem:[%s11186_s9 + $0x1f8] sm:$0xf0]  ;;  %v8119_v48 = vld [vmem:[%s11187_s11 + $0xf0] sm:$0xff]  ;;  %v8101_v49 = vld [vmem:[%s11187_s11 + $0x60] sm:$0xff] }
 0x705   :  { %v663_v55 = vmul.f32 %v8503_v43, %v662_v28  ;;  %v6238_v28 = vld [vmem:[%s11186_s9 + $0x1b8] sm:$0xf]  ;;  %v8118_v25 = vld [vmem:[%s11187_s11 + $0xe8] sm:$0xff]  ;;  %v8131_v33 = vld [vmem:[%s11187_s11 + $0x150] sm:$0xff] }
 0x706   :  { %1328 = vmatpush.bf16.msrb.mxu2 %v6163_v14  ;;  %v6112_v14 = vld [vmem:[%s11186_s9 + $0xf8] sm:$0xf0]  ;;  %v8090_v36 = vld [vmem:[%s11187_s11 + $0x8] sm:$0xff]  ;;  %v8139_v5 = vld [vmem:[%s11187_s11 + $0x190] sm:$0xff] }
 0x707   :  { %v667_v56 = vsel %vm666_vm15, %v8503_v43, %v663_v55  ;;  %v6032_v43 = vld [vmem:[%s11186_s9 + $0x68] sm:$0xf0]  ;;  %v8088_v55 = vld [vmem:[%s11186_s9 + $0x1f4] sm:$0xf0] }
 0x708   :  { %v671_v58 = vmul.f32 %v667_v56, %v8855_v19  ;;  %v6216_v19 = vld [vmem:[%s11186_s9 + $0x1e0] sm:$0xf0]  ;;  %v6035_v47 = vor.u32 %v8030_v42, %v6032_v43  ;;  %v8080_v56 = vld [vmem:[%s11186_s9 + $0x1bc] sm:$0xf] }
 0x709   :  { %v6219_v13 = vor.u32 %v8077_v61, %v6216_v19  ;;  %v6166_v61 = vld [vmem:[%s11186_s9 + $0x130] sm:$0xf]  ;;  %v8096_v42 = vld [vmem:[%s11187_s11 + $0x38] sm:$0xff] }
 0x70a   :  { %v678_v50 = vmul.f32 %v9009_v52, %v671_v58  ;;  %v6222_v52 = vld [vmem:[%s11186_s9 + $0x1a8] sm:$0xf]  ;;  %1329 = vmatpush.bf16.msrb.mxu2 %v6099_v35  ;;  %v6239_v58 = vor.u32 %v8088_v55, %v6238_v28  ;;  %v8071_v19 = vld [vmem:[%s11186_s9 + $0x16c] sm:$0xf0]  ;;  %v6047_v35 = vor.u32 %v8040_v18, %v6046_v31  ;;  %v8120_v43 = vld [vmem:[%s11187_s11 + $0xf8] sm:$0xff] }
 0x70b   :  { %v6223_v63 = vor.u32 %v8086_v51, %v6222_v52  ;;  %1289 = vmatpush.bf16.msrb.mxu0 %v6219_v13  ;;  %v8063_v52 = vld [vmem:[%s11186_s9 + $0x134] sm:$0xf]  ;;  %v6167_v13 = vor.u32 %v8071_v19, %v6166_v61  ;;  %v8100_v28 = vld [vmem:[%s11187_s11 + $0x58] sm:$0xff]  ;;  %v8093_v55 = vld [vmem:[%s11187_s11 + $0x20] sm:$0xff] }
 0x70c   :  { %v9145_v60 = vadd.f32 %v9055_v3, %v678_v50  ;;  %v6151_v3 = vor.u32 %v8069_v1, %v6150_v15  ;;  %v6243_v50 = vor.u32 %v8080_v56, %v6240_v57  ;;  %v6168_v51 = vld [vmem:[%s11186_s9 + $0x170] sm:$0xf0]  ;;  %v8064_v15 = vld [vmem:[%s11186_s9 + $0x13c] sm:$0xf]  ;;  %v8117_v56 = vld [vmem:[%s11187_s11 + $0xe0] sm:$0xff] }
 0x70d   :  { %1308 = vmatpush.bf16.msrb.mxu1 %v6223_v63  ;;  %v6171_v63 = vor.u32 %v8063_v52, %v6168_v51  ;;  %v6176_v1 = vld [vmem:[%s11186_s9 + $0x178] sm:$0xf0]  ;;  %v8099_v57 = vld [vmem:[%s11187_s11 + $0x50] sm:$0xff]  ;;  %v8098_v19 = vld [vmem:[%s11187_s11 + $0x48] sm:$0xff] }
 0x70e   :  { %v9149_v9 = vpack.c.bf16 %v9145_v60, %v9142_v12  ;;  %1271 = vmatpush.bf16.msra.mxu3 %v6151_v3  ;;  %1330 = vmatpush.bf16.msrb.mxu2 %v6035_v47  ;;  %v6179_v3 = vor.u32 %v8064_v15, %v6176_v1  ;;  %v8095_v47 = vld [vmem:[%s11187_s11 + $0x30] sm:$0xff]  ;;  %v8116_v61 = vld [vmem:[%s11187_s11 + $0xd8] sm:$0xff]  ;;  %v8097_v51 = vld [vmem:[%s11187_s11 + $0x40] sm:$0xff] }
 0x70f   :  { %1290 = vmatpush.bf16.msrb.mxu0 %v6155_v59  ;;  %v6103_v59 = vor.u32 %v8055_v4, %v6102_v16  ;;  %v8091_v52 = vld [vmem:[%s11187_s11 + $0x10] sm:$0xff]  ;;  %v8144_v15 = vld [vmem:[%s11187_s11 + $0x1b8] sm:$0xff]  ;;  %v8089_v1 = vld [vmem:[%s11187_s11] sm:$0xff] }
 0x710   :  { %6245 = vmatmul.msk.bf16.gmra.mxu3 %vm111_vm0, %v9149_v9  ;;  %6247 = vmatmul.msk.bf16.gmra.mxu0 %vm111_vm0, %v9149_v9  ;;  %v8113_v16 = vld [vmem:[%s11187_s11 + $0xc0] sm:$0xff]  ;;  %v8143_v4 = vld [vmem:[%s11187_s11 + $0x1b0] sm:$0xff] }
 0x711   :  { %6249 = vmatmul.msk.bf16.gmra.mxu1 %vm111_vm0, %v9149_v9  ;;  %6251 = vmatmul.msk.bf16.gmra.mxu2 %vm111_vm0, %v9149_v9  ;;  %v8125_v31 = vld [vmem:[%s11187_s11 + $0x120] sm:$0xff] }
 0x712   :  { %1309 = vmatpush.bf16.msrb.mxu1 %v6159_v7  ;;  %1272 = vmatpush.bf16.msra.mxu3 %v6087_v22  ;;  %v6110_v7 = vld [vmem:[%s11186_s9 + $0xb8] sm:$0xf]  ;;  %v6115_v22 = vor.u32 %v8048_v10, %v6112_v14  ;;  %v8133_v10 = vld [vmem:[%s11187_s11 + $0x160] sm:$0xff]  ;;  %v8126_v14 = vld [vmem:[%s11187_s11 + $0x128] sm:$0xff] }
 0x713   :  { %1291 = vmatpush.bf16.msrb.mxu0 %v6091_v32  ;;  %v6111_v21 = vor.u32 %v8056_v8, %v6110_v7  ;;  %v6039_v32 = vor.u32 %v8039_v20, %v6038_v17  ;;  %v8127_v7 = vld [vmem:[%s11187_s11 + $0x130] sm:$0xff]  ;;  %v8150_v17 = vld [vmem:[%s11187_s11 + $0x1e8] sm:$0xff]  ;;  %v8132_v20 = vld [vmem:[%s11187_s11 + $0x158] sm:$0xff] }
 0x714   :  { %v8151_v8 = vld [vmem:[%s11187_s11 + $0x1f0] sm:$0xff] }
 0x716   :  { %1310 = vmatpush.bf16.msrb.mxu1 %v6095_v34  ;;  %1273 = vmatpush.bf16.msra.mxu3 %v6023_v40  ;;  %v6043_v34 = vor.u32 %v8031_v23, %v6040_v29  ;;  %v8103_v40 = vld [vmem:[%s11187_s11 + $0x70] sm:$0xff] }
 0x717   :  { %1292 = vmatpush.bf16.msrb.mxu0 %v6027_v46  ;;  %v8102_v46 = vld [vmem:[%s11187_s11 + $0x68] sm:$0xff] }
 0x71a   :  { %1311 = vmatpush.bf16.msrb.mxu1 %v6031_v27  ;;  %v8110_v27 = vld [vmem:[%s11187_s11 + $0xa8] sm:$0xff] }
 0x720   :  { %6252 = vmatmul.msk.bf16.vlgmr.msrb.gmra.mxu3 %vm111_vm0, %v9118_v24  ;;  %6254 = vmatmul.msk.bf16.vlgmr.msra.gmra.mxu0 %vm111_vm0, %v9118_v24 }
 0x721   :  { %6256 = vmatmul.msk.bf16.vlgmr.msra.gmra.mxu1 %vm111_vm0, %v9118_v24  ;;  %6258 = vmatmul.msk.bf16.vlgmr.msra.gmra.mxu2 %vm111_vm0, %v9118_v24 }
 0x722   :  { %1346 = vmatpush.bf16.msrb.mxu3 %v6231_v30  ;;  %1365 = vmatpush.bf16.msra.mxu0 %v6235_v54  ;;  %v8109_v30 = vld [vmem:[%s11187_s11 + $0xa0] sm:$0xff]  ;;  %v8108_v54 = vld [vmem:[%s11187_s11 + $0x98] sm:$0xff] }
 0x723   :  { %1384 = vmatpush.bf16.msra.mxu1 %v6239_v58  ;;  %1403 = vmatpush.bf16.msra.mxu2 %v6243_v50  ;;  %v8107_v58 = vld [vmem:[%s11187_s11 + $0x90] sm:$0xff]  ;;  %v8092_v50 = vld [vmem:[%s11187_s11 + $0x18] sm:$0xff] }
 0x726   :  { %1347 = vmatpush.bf16.msrb.mxu3 %v6167_v13  ;;  %1366 = vmatpush.bf16.msra.mxu0 %v6171_v63  ;;  %v8115_v13 = vld [vmem:[%s11187_s11 + $0xd0] sm:$0xff]  ;;  %v8114_v63 = vld [vmem:[%s11187_s11 + $0xc8] sm:$0xff] }
 0x727   :  { %1385 = vmatpush.bf16.msra.mxu1 %v6175_v2  ;;  %1404 = vmatpush.bf16.msra.mxu2 %v6179_v3  ;;  %v8136_v2 = vld [vmem:[%s11187_s11 + $0x178] sm:$0xff]  ;;  %v8135_v3 = vld [vmem:[%s11187_s11 + $0x170] sm:$0xff] }
 0x72a   :  { %1348 = vmatpush.bf16.msrb.mxu3 %v6103_v59  ;;  %1367 = vmatpush.bf16.msra.mxu0 %v6107_v11  ;;  %v8134_v59 = vld [vmem:[%s11187_s11 + $0x168] sm:$0xff]  ;;  %v8141_v11 = vld [vmem:[%s11187_s11 + $0x1a0] sm:$0xff] }
 0x72b   :  { %1386 = vmatpush.bf16.msra.mxu1 %v6111_v21  ;;  %1405 = vmatpush.bf16.msra.mxu2 %v6115_v22  ;;  %v8140_v21 = vld [vmem:[%s11187_s11 + $0x198] sm:$0xff]  ;;  %v9540_v22 = vld [vmem:[%s11188_s10] sm:$0xff] }
 0x72c   :  { %v9549_v18 = vperm.slane %v9540_v22, 1 }
 0x72e   :  { %1349 = vmatpush.bf16.msrb.mxu3 %v6039_v32  ;;  %1368 = vmatpush.bf16.msra.mxu0 %v6043_v34  ;;  %v8149_v32 = vld [vmem:[%s11187_s11 + $0x1e0] sm:$0xff]  ;;  %v9558_v34 = vperm.slane %v9540_v22, 2 }
 0x72f   :  { %1387 = vmatpush.bf16.msra.mxu1 %v6047_v35  ;;  %1406 = vmatpush.bf16.msra.mxu2 %v6051_v37  ;;  %v8124_v35 = vld [vmem:[%s11187_s11 + $0x118] sm:$0xff] }
 0x730   :  { %6253 = vmatmul.msk.bf16.gmra.mxu3 %vm111_vm0, %v9149_v9  ;;  %6255 = vmatmul.msk.bf16.gmra.mxu0 %vm111_vm0, %v9149_v9  ;;  %v8148_v37 = vld [vmem:[%s11187_s11 + $0x1d8] sm:$0xff] }
 0x731   :  { %6257 = vmatmul.msk.bf16.gmra.mxu1 %vm111_vm0, %v9149_v9  ;;  %6259 = vmatmul.msk.bf16.gmra.mxu2 %vm111_vm0, %v9149_v9 }
 0x740   :  { %6260 = vmatmul.msk.bf16.vlgmr.msra.gmra.mxu3 %vm111_vm0, %v9118_v24  ;;  %6262 = vmatmul.msk.bf16.vlgmr.msrb.gmra.mxu0 %vm111_vm0, %v9118_v24 }
 0x741   :  { %6264 = vmatmul.msk.bf16.vlgmr.msrb.gmra.mxu1 %vm111_vm0, %v9118_v24  ;;  %6266 = vmatmul.msk.bf16.vlgmr.msrb.gmra.mxu2 %vm111_vm0, %v9118_v24 }
 0x742   :  { %2561 = vmatpush.bf16.msrb.mxu0 %v8104_v38  ;;  %2580 = vmatpush.bf16.msrb.mxu1 %v8112_v39 }
 0x743   :  { %2542 = vmatpush.bf16.msra.mxu3 %v8096_v42  ;;  %2599 = vmatpush.bf16.msrb.mxu2 %v8120_v43  ;;  %v8138_v42 = vld [vmem:[%s11187_s11 + $0x188] sm:$0xff] }
 0x746   :  { %2562 = vmatpush.bf16.msrb.mxu0 %v8103_v40  ;;  %2581 = vmatpush.bf16.msrb.mxu1 %v8111_v41  ;;  %v8130_v41 = vld [vmem:[%s11187_s11 + $0x148] sm:$0xff] }
 0x747   :  { %2543 = vmatpush.bf16.msra.mxu3 %v8095_v47  ;;  %2600 = vmatpush.bf16.msrb.mxu2 %v8119_v48 }
 0x74a   :  { %2563 = vmatpush.bf16.msrb.mxu0 %v8102_v46  ;;  %2582 = vmatpush.bf16.msrb.mxu1 %v8110_v27  ;;  %v9575_v27 = vperm.slane %v9540_v22, 0 }
 0x74b   :  { %2544 = vmatpush.bf16.msra.mxu3 %v8094_v53  ;;  %2601 = vmatpush.bf16.msrb.mxu2 %v8118_v25  ;;  %v9585_v53 = vperm.slane %v9540_v22, 3 }
 0x74e   :  { %2564 = vmatpush.bf16.msrb.mxu0 %v8101_v49  ;;  %2583 = vmatpush.bf16.msrb.mxu1 %v8109_v30  ;;  %v8123_v49 = vld [vmem:[%s11187_s11 + $0x110] sm:$0xff] }
 0x74f   :  { %2545 = vmatpush.bf16.msra.mxu3 %v8093_v55  ;;  %2602 = vmatpush.bf16.msrb.mxu2 %v8117_v56  ;;  %v8147_v30 = vld [vmem:[%s11187_s11 + $0x1d0] sm:$0xff]  ;;  %v8129_v55 = vld [vmem:[%s11187_s11 + $0x140] sm:$0xff] }
 0x750   :  { %6261 = vmatmul.msk.bf16.gmra.mxu3 %vm111_vm0, %v9149_v9  ;;  %6263 = vmatmul.msk.bf16.gmra.mxu0 %vm111_vm0, %v9149_v9  ;;  %v8137_v56 = vld [vmem:[%s11187_s11 + $0x180] sm:$0xff] }
 0x751   :  { %6265 = vmatmul.msk.bf16.gmra.mxu1 %vm111_vm0, %v9149_v9  ;;  %6267 = vmatmul.msk.bf16.gmra.mxu2 %vm111_vm0, %v9149_v9 }
 0x752   :  { %2565 = vmatpush.bf16.msrb.mxu0 %v8100_v28  ;;  %2584 = vmatpush.bf16.msrb.mxu1 %v8108_v54 }
 0x753   :  { %2546 = vmatpush.bf16.msra.mxu3 %v8092_v50  ;;  %2603 = vmatpush.bf16.msrb.mxu2 %v8116_v61 }
 0x756   :  { %2566 = vmatpush.bf16.msrb.mxu0 %v8099_v57  ;;  %2585 = vmatpush.bf16.msrb.mxu1 %v8107_v58 }
 0x757   :  { %2547 = vmatpush.bf16.msra.mxu3 %v8091_v52  ;;  %2604 = vmatpush.bf16.msrb.mxu2 %v8115_v13 }
 0x75a   :  { %2567 = vmatpush.bf16.msrb.mxu0 %v8098_v19  ;;  %v8122_v19 = vld [vmem:[%s11187_s11 + $0x108] sm:$0xff] }
 0x75b   :  { %2548 = vmatpush.bf16.msra.mxu3 %v8090_v36  ;;  %2605 = vmatpush.bf16.msrb.mxu2 %v8114_v63  ;;  %v8168_v63 = vld [vmem:[%s11187_s11 + $0x278] sm:$0xff] }
 0x75e   :  { %2568 = vmatpush.bf16.msrb.mxu0 %v8097_v51 }
 0x75f   :  { %2549 = vmatpush.bf16.msra.mxu3 %v8089_v1  ;;  %2606 = vmatpush.bf16.msrb.mxu2 %v8113_v16 }
 0x760   :  { %6268 = vmatmul.msk.bf16.vlgmr.msrb.gmra.mxu3 %vm111_vm0, %v9118_v24  ;;  %6270 = vmatmul.msk.bf16.vlgmr.msra.gmra.mxu0 %vm111_vm0, %v9118_v24 }
 0x761   :  { %6272 = vmatmul.msk.bf16.vlgmr.msra.gmra.mxu1 %vm111_vm0, %v9118_v24  ;;  %6274 = vmatmul.msk.bf16.vlgmr.msra.gmra.mxu2 %vm111_vm0, %v9118_v24  ;;  %v8106_v24 = vld [vmem:[%s11187_s11 + $0x88] sm:$0xff] }
 0x762   :  { %2586 = vmatpush.bf16.msrb.mxu1 %v8106_v24  ;;  %2637 = vmatpush.bf16.msra.mxu0 %v8136_v2  ;;  %v8146_v24 = vld [vmem:[%s11187_s11 + $0x1c8] sm:$0xff]  ;;  %v8176_v2 = vld [vmem:[%s11187_s11 + $0x2b8] sm:$0xff] }
 0x763   :  { %2618 = vmatpush.bf16.msrb.mxu3 %v8128_v26  ;;  %2675 = vmatpush.bf16.msra.mxu2 %v8152_v6  ;;  %v8121_v26 = vld [vmem:[%s11187_s11 + $0x100] sm:$0xff] }
 0x764   :  { %v8145_v6 = vld [vmem:[%s11187_s11 + $0x1c0] sm:$0xff] }
 0x766   :  { %2587 = vmatpush.bf16.msrb.mxu1 %v8105_v62  ;;  %2638 = vmatpush.bf16.msra.mxu0 %v8135_v3 }
 0x767   :  { %2619 = vmatpush.bf16.msrb.mxu3 %v8127_v7  ;;  %2676 = vmatpush.bf16.msra.mxu2 %v8151_v8  ;;  %v8167_v8 = vld [vmem:[%s11187_s11 + $0x270] sm:$0xff] }
 0x76a   :  { %2656 = vmatpush.bf16.msra.mxu1 %v8144_v15  ;;  %2639 = vmatpush.bf16.msra.mxu0 %v8134_v59 }
 0x76b   :  { %2620 = vmatpush.bf16.msrb.mxu3 %v8126_v14  ;;  %2677 = vmatpush.bf16.msra.mxu2 %v8150_v17  ;;  %v8160_v14 = vld [vmem:[%s11187_s11 + $0x238] sm:$0xff] }
 0x76c   :  { %v8184_v17 = vld [vmem:[%s11187_s11 + $0x2f8] sm:$0xff] }
 0x76e   :  { %2657 = vmatpush.bf16.msra.mxu1 %v8143_v4  ;;  %2640 = vmatpush.bf16.msra.mxu0 %v8133_v10  ;;  %v8175_v10 = vld [vmem:[%s11187_s11 + $0x2b0] sm:$0xff] }
 0x76f   :  { %2621 = vmatpush.bf16.msrb.mxu3 %v8125_v31  ;;  %2678 = vmatpush.bf16.msra.mxu2 %v8149_v32  ;;  %v8174_v31 = vld [vmem:[%s11187_s11 + $0x2a8] sm:$0xff] }
 0x770   :  { %6269 = vmatmul.msk.bf16.gmra.mxu3 %vm111_vm0, %v9149_v9  ;;  %6271 = vmatmul.msk.bf16.gmra.mxu0 %vm111_vm0, %v9149_v9 }
 0x771   :  { %6273 = vmatmul.msk.bf16.gmra.mxu1 %vm111_vm0, %v9149_v9  ;;  %6275 = vmatmul.msk.bf16.gmra.mxu2 %vm111_vm0, %v9149_v9  ;;  %v8142_v9 = vld [vmem:[%s11187_s11 + $0x1a8] sm:$0xff] }
 0x772   :  { %2658 = vmatpush.bf16.msra.mxu1 %v8142_v9  ;;  %2641 = vmatpush.bf16.msra.mxu0 %v8132_v20 }
 0x773   :  { %2622 = vmatpush.bf16.msrb.mxu3 %v8124_v35  ;;  %2679 = vmatpush.bf16.msra.mxu2 %v8148_v37  ;;  %v8159_v37 = vld [vmem:[%s11187_s11 + $0x230] sm:$0xff] }
 0x776   :  { %2659 = vmatpush.bf16.msra.mxu1 %v8141_v11  ;;  %2642 = vmatpush.bf16.msra.mxu0 %v8131_v33 }
 0x777   :  { %2623 = vmatpush.bf16.msrb.mxu3 %v8123_v49  ;;  %2680 = vmatpush.bf16.msra.mxu2 %v8147_v30  ;;  %v8182_v49 = vld [vmem:[%s11187_s11 + $0x2e8] sm:$0xff] }
 0x77a   :  { %2660 = vmatpush.bf16.msra.mxu1 %v8140_v21  ;;  %2643 = vmatpush.bf16.msra.mxu0 %v8130_v41 }
 0x77b   :  { %2624 = vmatpush.bf16.msrb.mxu3 %v8122_v19  ;;  %2681 = vmatpush.bf16.msra.mxu2 %v8146_v24 }
 0x77d   :  { %v1142_v23 = vpop.f32.mrf.mxu0 }
 0x77e   :  { %v1161_v29 = vpop.f32.mrf.mxu1  ;;  %2661 = vmatpush.bf16.msra.mxu1 %v8139_v5  ;;  %v1143_v39 = vadd.f32 %v1142_v23, %v9549_v18  ;;  %2644 = vmatpush.bf16.msra.mxu0 %v8129_v55 }
 0x77f   :  { %v1162_v43 = vadd.f32 %v1161_v29, %v9558_v34  ;;  %2625 = vmatpush.bf16.msrb.mxu3 %v8121_v26  ;;  %2682 = vmatpush.bf16.msra.mxu2 %v8145_v6  ;;  %v8166_v29 = vld [vmem:[%s11187_s11 + $0x268] sm:$0xff] }
 0x780   :  { %v1419_v28 = vmax.f32 %v1143_v39, 0.0  ;;  %v8162_v6 = vld [vmem:[%s11187_s11 + $0x248] sm:$0xff] }
 0x781   :  { %v1420_v57 = vmax.f32 %v1162_v43, 0.0 }
 0x782   :  { %2662 = vmatpush.bf16.msra.mxu1 %v8138_v42  ;;  %v8173_v42 = vld [vmem:[%s11187_s11 + $0x2a0] sm:$0xff] }
 0x783   :  { %v1123_v38 = vpop.f32.mrf.mxu3 }
 0x784   :  { %v1180_v40 = vpop.f32.mrf.mxu2  ;;  %v1124_v50 = vadd.f32 %v1123_v38, %v9575_v27  ;;  %v8183_v38 = vld [vmem:[%s11187_s11 + $0x2f0] sm:$0xff] }
 0x785   :  { %v1144_v46 = vpop.f32.mrf.mxu0  ;;  %v1181_v52 = vadd.f32 %v1180_v40, %v9585_v53 }
 0x786   :  { %v1145_v47 = vadd.f32 %v1144_v46, %v9549_v18  ;;  %v1163_v48 = vpop.f32.mrf.mxu1  ;;  %2663 = vmatpush.bf16.msra.mxu1 %v8137_v56  ;;  %v1418_v16 = vmax.f32 %v1124_v50, 0.0  ;;  %v8164_v56 = vld [vmem:[%s11187_s11 + $0x258] sm:$0xff] }
 0x787   :  { %v1164_v25 = vadd.f32 %v1163_v48, %v9558_v34  ;;  %v1421_v59 = vmax.f32 %v1181_v52, 0.0  ;;  %v8181_v52 = vld [vmem:[%s11187_s11 + $0x2e0] sm:$0xff] }
 0x788   :  { %v1435_v54 = vmax.f32 %v1145_v47, 0.0 }
 0x789   :  { %v1436_v58 = vmax.f32 %v1164_v25, 0.0 }
 0x78a   :  { %v1483_v61 = vpack.c.bf16 %v1435_v54, %v1419_v28 }
 0x78b   :  { %v1484_v13 = vpack.c.bf16 %v1436_v58, %v1420_v57  ;;  %v1125_v51 = vpop.f32.mrf.mxu3  ;;  %v8172_v57 = vld [vmem:[%s11187_s11 + $0x298] sm:$0xff] }
 0x78c   :  { %v1126_v62 = vadd.f32 %v1125_v51, %v9575_v27  ;;  %v1182_v36 = vpop.f32.mrf.mxu2  ;;  %2569 = vmatmul.bf16.vlgmr.msrb.gmra.mxu0 %v1483_v61 }
 0x78d   :  { %v1183_v15 = vadd.f32 %v1182_v36, %v9585_v53  ;;  %2588 = vmatmul.bf16.vlgmr.msrb.gmra.mxu1 %v1484_v13  ;;  %v1147_v1 = vpop.f32.mrf.mxu0  ;;  %2713 = vmatpush.bf16.msrb.mxu0 %v8168_v63  ;;  %v8163_v36 = vld [vmem:[%s11187_s11 + $0x250] sm:$0xff] }
 0x78e   :  { %v1434_v3 = vmax.f32 %v1126_v62, 0.0  ;;  %v1166_v4 = vpop.f32.mrf.mxu1  ;;  %2732 = vmatpush.bf16.msrb.mxu1 %v8176_v2  ;;  %v1148_v21 = vadd.f32 %v1147_v1, %v9549_v18  ;;  %v8171_v63 = vld [vmem:[%s11187_s11 + $0x290] sm:$0xff]  ;;  %v9682_v2 = vperm.slane %v9540_v22, 6  ;;  %v8156_v1 = vld [vmem:[%s11187_s11 + $0x218] sm:$0xff] }
 0x78f   :  { %v1437_v9 = vmax.f32 %v1183_v15, 0.0  ;;  %v1167_v32 = vadd.f32 %v1166_v4, %v9558_v34 }
 0x790   :  { %v1482_v7 = vpack.c.bf16 %v1434_v3, %v1418_v16  ;;  %v1451_v40 = vmax.f32 %v1148_v21, 0.0  ;;  %v8180_v16 = vld [vmem:[%s11187_s11 + $0x2d8] sm:$0xff] }
 0x791   :  { %v1485_v11 = vpack.c.bf16 %v1437_v9, %v1421_v59  ;;  %2714 = vmatpush.bf16.msrb.mxu0 %v8167_v8  ;;  %v1452_v43 = vmax.f32 %v1167_v32, 0.0  ;;  %v8170_v59 = vld [vmem:[%s11187_s11 + $0x288] sm:$0xff]  ;;  %v9699_v8 = vperm.slane %v9540_v22, 4  ;;  %v8169_v32 = vld [vmem:[%s11187_s11 + $0x280] sm:$0xff] }
 0x792   :  { %2550 = vmatmul.bf16.vlgmr.msra.gmra.mxu3 %v1482_v7  ;;  %2733 = vmatpush.bf16.msrb.mxu1 %v8175_v10 }
 0x793   :  { %2607 = vmatmul.bf16.vlgmr.msrb.gmra.mxu2 %v1485_v11  ;;  %v1128_v20 = vpop.f32.mrf.mxu3  ;;  %2694 = vmatpush.bf16.msra.mxu3 %v8160_v14  ;;  %v8155_v14 = vld [vmem:[%s11187_s11 + $0x210] sm:$0xff] }
 0x794   :  { %v1185_v23 = vpop.f32.mrf.mxu2  ;;  %2751 = vmatpush.bf16.msrb.mxu2 %v8184_v17  ;;  %v1129_v47 = vadd.f32 %v1128_v20, %v9575_v27  ;;  %v8179_v17 = vld [vmem:[%s11187_s11 + $0x2d0] sm:$0xff]  ;;  %v9709_v20 = vperm.slane %v9540_v22, 7 }
 0x795   :  { %v1149_v33 = vpop.f32.mrf.mxu0  ;;  %2715 = vmatpush.bf16.msrb.mxu0 %v8166_v29  ;;  %v1186_v30 = vadd.f32 %v1185_v23, %v9585_v53 }
 0x796   :  { %v1150_v5 = vadd.f32 %v1149_v33, %v9549_v18  ;;  %v1168_v35 = vpop.f32.mrf.mxu1  ;;  %2734 = vmatpush.bf16.msrb.mxu1 %v8174_v31  ;;  %v8165_v18 = vld [vmem:[%s11187_s11 + $0x260] sm:$0xff]  ;;  %v1450_v61 = vmax.f32 %v1129_v47, 0.0 }
 0x797   :  { %v1169_v39 = vadd.f32 %v1168_v35, %v9558_v34  ;;  %2695 = vmatpush.bf16.msra.mxu3 %v8159_v37  ;;  %v8158_v34 = vld [vmem:[%s11187_s11 + $0x228] sm:$0xff]  ;;  %v1453_v13 = vmax.f32 %v1186_v30, 0.0  ;;  %v8161_v31 = vld [vmem:[%s11187_s11 + $0x240] sm:$0xff] }
 0x798   :  { %v1467_v41 = vmax.f32 %v1150_v5, 0.0  ;;  %2752 = vmatpush.bf16.msrb.mxu2 %v8183_v38  ;;  %v8154_v37 = vld [vmem:[%s11187_s11 + $0x208] sm:$0xff] }
 0x799   :  { %v1468_v46 = vmax.f32 %v1169_v39, 0.0  ;;  %2716 = vmatpush.bf16.msrb.mxu0 %v8165_v18  ;;  %v8178_v38 = vld [vmem:[%s11187_s11 + $0x2c8] sm:$0xff] }
 0x79a   :  { %v1499_v48 = vpack.c.bf16 %v1467_v41, %v1451_v40  ;;  %2735 = vmatpush.bf16.msrb.mxu1 %v8173_v42 }
 0x79b   :  { %v1130_v25 = vpop.f32.mrf.mxu3  ;;  %v1500_v28 = vpack.c.bf16 %v1468_v46, %v1452_v43  ;;  %2696 = vmatpush.bf16.msra.mxu3 %v8158_v34  ;;  %v8200_v43 = vld [vmem:[%s11187_s11 + $0x378] sm:$0xff] }
 0x79c   :  { %v1131_v54 = vadd.f32 %v1130_v25, %v9575_v27  ;;  %v1187_v55 = vpop.f32.mrf.mxu2  ;;  %2574 = vmatmul.bf16.gmra.mxu0 %v1499_v48  ;;  %2753 = vmatpush.bf16.msrb.mxu2 %v8182_v49  ;;  %v8157_v27 = vld [vmem:[%s11187_s11 + $0x220] sm:$0xff]  ;;  %v8208_v46 = vld [vmem:[%s11187_s11 + $0x3b8] sm:$0xff] }
 0x79d   :  { %v1188_v58 = vadd.f32 %v1187_v55, %v9585_v53  ;;  %2593 = vmatmul.bf16.gmra.mxu1 %v1500_v28  ;;  %v1218_v50 = vpop.f32.mrf.mxu0  ;;  %2717 = vmatpush.bf16.msrb.mxu0 %v8164_v56  ;;  %v9673_v53 = vperm.slane %v9540_v22, 5  ;;  %v8153_v25 = vld [vmem:[%s11187_s11 + $0x200] sm:$0xff] }
 0x79e   :  { %v1466_v19 = vmax.f32 %v1131_v54, 0.0  ;;  %v1237_v24 = vpop.f32.mrf.mxu1  ;;  %2736 = vmatpush.bf16.msrb.mxu1 %v8172_v57  ;;  %v8177_v28 = vld [vmem:[%s11187_s11 + $0x2c0] sm:$0xff]  ;;  %v8199_v57 = vld [vmem:[%s11187_s11 + $0x370] sm:$0xff] }
 0x79f   :  { %v1469_v51 = vmax.f32 %v1188_v58, 0.0  ;;  %2697 = vmatpush.bf16.msra.mxu3 %v8157_v27  ;;  %v1219_v4 = vadd.f32 %v1218_v50, %v9673_v53  ;;  %v1238_v9 = vadd.f32 %v1237_v24, %v9682_v2  ;;  %v8207_v58 = vld [vmem:[%s11187_s11 + $0x3b0] sm:$0xff] }
 0x7a0   :  { %v1498_v62 = vpack.c.bf16 %v1466_v19, %v1450_v61  ;;  %2754 = vmatpush.bf16.msrb.mxu2 %v8181_v52  ;;  %v8192_v61 = vld [vmem:[%s11187_s11 + $0x338] sm:$0xff] }
 0x7a1   :  { %v1501_v15 = vpack.c.bf16 %v1469_v51, %v1453_v13  ;;  %2718 = vmatpush.bf16.msrb.mxu0 %v8163_v36  ;;  %v1423_v23 = vmax.f32 %v1219_v4, 0.0  ;;  %v1424_v33 = vmax.f32 %v1238_v9, 0.0  ;;  %v8216_v19 = vld [vmem:[%s11187_s11 + $0x3f8] sm:$0xff]  ;;  %v8198_v13 = vld [vmem:[%s11187_s11 + $0x368] sm:$0xff] }
 0x7a2   :  { %2555 = vmatmul.bf16.gmra.mxu3 %v1498_v62  ;;  %2737 = vmatpush.bf16.msrb.mxu1 %v8171_v63  ;;  %v8206_v51 = vld [vmem:[%s11187_s11 + $0x3a8] sm:$0xff] }
 0x7a3   :  { %2612 = vmatmul.bf16.gmra.mxu2 %v1501_v15  ;;  %v1199_v3 = vpop.f32.mrf.mxu3  ;;  %2698 = vmatpush.bf16.msra.mxu3 %v8156_v1  ;;  %v8191_v1 = vld [vmem:[%s11187_s11 + $0x330] sm:$0xff] }
 0x7a4   :  { %v1256_v26 = vpop.f32.mrf.mxu2  ;;  %2755 = vmatpush.bf16.msrb.mxu2 %v8180_v16  ;;  %v1200_v22 = vadd.f32 %v1199_v3, %v9699_v8  ;;  %v8215_v16 = vld [vmem:[%s11187_s11 + $0x3f0] sm:$0xff] }
 0x7a5   :  { %v1220_v7 = vpop.f32.mrf.mxu0  ;;  %2719 = vmatpush.bf16.msrb.mxu0 %v8162_v6  ;;  %v1257_v39 = vadd.f32 %v1256_v26, %v9709_v20  ;;  %v8205_v6 = vld [vmem:[%s11187_s11 + $0x3a0] sm:$0xff] }
 0x7a6   :  { %v1221_v10 = vadd.f32 %v1220_v7, %v9673_v53  ;;  %v1239_v11 = vpop.f32.mrf.mxu1  ;;  %2738 = vmatpush.bf16.msrb.mxu1 %v8170_v59  ;;  %v1422_v34 = vmax.f32 %v1200_v22, 0.0 }
 0x7a7   :  { %v1240_v21 = vadd.f32 %v1239_v11, %v9682_v2  ;;  %2699 = vmatpush.bf16.msra.mxu3 %v8155_v14  ;;  %v1425_v54 = vmax.f32 %v1257_v39, 0.0  ;;  %v8214_v11 = vld [vmem:[%s11187_s11 + $0x3e8] sm:$0xff] }
 0x7a8   :  { %v1439_v29 = vmax.f32 %v1221_v10, 0.0  ;;  %2756 = vmatpush.bf16.msrb.mxu2 %v8179_v17 }
 0x7a9   :  { %v1440_v5 = vmax.f32 %v1240_v21, 0.0  ;;  %2720 = vmatpush.bf16.msrb.mxu0 %v8161_v31  ;;  %v8196_v31 = vld [vmem:[%s11187_s11 + $0x358] sm:$0xff] }
 0x7aa   :  { %v1487_v35 = vpack.c.bf16 %v1439_v29, %v1423_v23  ;;  %2739 = vmatpush.bf16.msrb.mxu1 %v8169_v32  ;;  %v8204_v32 = vld [vmem:[%s11187_s11 + $0x398] sm:$0xff] }
 0x7ab   :  { %v1488_v40 = vpack.c.bf16 %v1440_v5, %v1424_v33  ;;  %v1201_v41 = vpop.f32.mrf.mxu3  ;;  %2700 = vmatpush.bf16.msra.mxu3 %v8154_v37  ;;  %v9793_v5 = vld [vmem:[%s11188_s10 + $0x8] sm:$0xff] }
 0x7ac   :  { %v1202_v18 = vadd.f32 %v1201_v41, %v9699_v8  ;;  %v1258_v42 = vpop.f32.mrf.mxu2  ;;  %2645 = vmatmul.bf16.vlgmr.msra.gmra.mxu0 %v1487_v35  ;;  %2757 = vmatpush.bf16.msrb.mxu2 %v8178_v38  ;;  %v8189_v38 = vld [vmem:[%s11187_s11 + $0x320] sm:$0xff]  ;;  %v9802_v41 = vperm.slane %v9793_v5, 1 }
 0x7ad   :  { %v1259_v47 = vadd.f32 %v1258_v42, %v9709_v20  ;;  %2664 = vmatmul.bf16.vlgmr.msra.gmra.mxu1 %v1488_v40  ;;  %v1223_v48 = vpop.f32.mrf.mxu0  ;;  %2789 = vmatpush.bf16.msra.mxu0 %v8200_v43  ;;  %v8195_v42 = vld [vmem:[%s11187_s11 + $0x350] sm:$0xff] }
 0x7ae   :  { %v1438_v49 = vmax.f32 %v1202_v18, 0.0  ;;  %v1242_v30 = vpop.f32.mrf.mxu1  ;;  %2808 = vmatpush.bf16.msra.mxu1 %v8208_v46  ;;  %v1224_v27 = vadd.f32 %v1223_v48, %v9673_v53  ;;  %v8203_v43 = vld [vmem:[%s11187_s11 + $0x390] sm:$0xff]  ;;  %v9811_v46 = vperm.slane %v9793_v5, 2  ;;  %v8188_v48 = vld [vmem:[%s11187_s11 + $0x318] sm:$0xff] }
 0x7af   :  { %v1441_v55 = vmax.f32 %v1259_v47, 0.0  ;;  %2701 = vmatpush.bf16.msra.mxu3 %v8153_v25  ;;  %v1243_v62 = vadd.f32 %v1242_v30, %v9682_v2 }
 0x7b0   :  { %v1486_v56 = vpack.c.bf16 %v1438_v49, %v1422_v34  ;;  %2758 = vmatpush.bf16.msrb.mxu2 %v8177_v28  ;;  %v1455_v4 = vmax.f32 %v1224_v27, 0.0  ;;  %v8212_v34 = vld [vmem:[%s11187_s11 + $0x3d8] sm:$0xff]  ;;  %v8194_v28 = vld [vmem:[%s11187_s11 + $0x348] sm:$0xff] }
 0x7b1   :  { %v1489_v50 = vpack.c.bf16 %v1441_v55, %v1425_v54  ;;  %2790 = vmatpush.bf16.msra.mxu0 %v8199_v57  ;;  %v1456_v59 = vmax.f32 %v1243_v62, 0.0  ;;  %v8202_v54 = vld [vmem:[%s11187_s11 + $0x388] sm:$0xff]  ;;  %v9828_v57 = vperm.slane %v9793_v5, 0  ;;  %v8201_v62 = vld [vmem:[%s11187_s11 + $0x380] sm:$0xff] }
 0x7b2   :  { %2626 = vmatmul.bf16.vlgmr.msrb.gmra.mxu3 %v1486_v56  ;;  %2809 = vmatpush.bf16.msra.mxu1 %v8207_v58 }
 0x7b3   :  { %2683 = vmatmul.bf16.vlgmr.msra.gmra.mxu2 %v1489_v50  ;;  %v1204_v24 = vpop.f32.mrf.mxu3  ;;  %2770 = vmatpush.bf16.msrb.mxu3 %v8192_v61  ;;  %v8187_v61 = vld [vmem:[%s11187_s11 + $0x310] sm:$0xff] }
 0x7b4   :  { %v1261_v52 = vpop.f32.mrf.mxu2  ;;  %2827 = vmatpush.bf16.msra.mxu2 %v8216_v19  ;;  %v1205_v7 = vadd.f32 %v1204_v24, %v9699_v8  ;;  %v8211_v19 = vld [vmem:[%s11187_s11 + $0x3d0] sm:$0xff]  ;;  %v767_v24 = vperm.slane %v9793_v5, 3 }
 0x7b5   :  { %v1225_v36 = vpop.f32.mrf.mxu0  ;;  %2791 = vmatpush.bf16.msra.mxu0 %v8198_v13  ;;  %v1262_v14 = vadd.f32 %v1261_v52, %v9709_v20 }
 0x7b6   :  { %v1226_v63 = vadd.f32 %v1225_v36, %v9673_v53  ;;  %v1244_v15 = vpop.f32.mrf.mxu1  ;;  %2810 = vmatpush.bf16.msra.mxu1 %v8206_v51  ;;  %v8197_v53 = vld [vmem:[%s11187_s11 + $0x360] sm:$0xff]  ;;  %v1454_v22 = vmax.f32 %v1205_v7, 0.0 }
 0x7b7   :  { %v1245_v3 = vadd.f32 %v1244_v15, %v9682_v2  ;;  %2771 = vmatpush.bf16.msrb.mxu3 %v8191_v1  ;;  %v8190_v2 = vld [vmem:[%s11187_s11 + $0x328] sm:$0xff]  ;;  %v1457_v39 = vmax.f32 %v1262_v14, 0.0  ;;  %v8193_v51 = vld [vmem:[%s11187_s11 + $0x340] sm:$0xff] }
 0x7b8   :  { %v1471_v26 = vmax.f32 %v1226_v63, 0.0  ;;  %2828 = vmatpush.bf16.msra.mxu2 %v8215_v16  ;;  %v8186_v16 = vld [vmem:[%s11187_s11 + $0x308] sm:$0xff]  ;;  %v8185_v14 = vld [vmem:[%s11187_s11 + $0x300] sm:$0xff] }
 0x7b9   :  { %v1472_v9 = vmax.f32 %v1245_v3, 0.0  ;;  %2792 = vmatpush.bf16.msra.mxu0 %v8197_v53  ;;  %v8210_v3 = vld [vmem:[%s11187_s11 + $0x3c8] sm:$0xff] }
 0x7ba   :  { %v1503_v10 = vpack.c.bf16 %v1471_v26, %v1455_v4  ;;  %2811 = vmatpush.bf16.msra.mxu1 %v8205_v6 }
 0x7bb   :  { %v1206_v17 = vpop.f32.mrf.mxu3  ;;  %v1504_v21 = vpack.c.bf16 %v1472_v9, %v1456_v59  ;;  %2772 = vmatpush.bf16.msrb.mxu3 %v8190_v2 }
 0x7bc   :  { %v1207_v23 = vadd.f32 %v1206_v17, %v9699_v8  ;;  %v1263_v29 = vpop.f32.mrf.mxu2  ;;  %2650 = vmatmul.bf16.gmra.mxu0 %v1503_v10  ;;  %2829 = vmatpush.bf16.msra.mxu2 %v8214_v11  ;;  %v8209_v17 = vld [vmem:[%s11187_s11 + $0x3c0] sm:$0xff] }
 0x7bd   :  { %v1264_v33 = vadd.f32 %v1263_v29, %v9709_v20  ;;  %2669 = vmatmul.bf16.gmra.mxu1 %v1504_v21  ;;  %v1294_v8 = vpop.f32.mrf.mxu0  ;;  %2793 = vmatpush.bf16.msra.mxu0 %v8196_v31  ;;  %v8213_v20 = vld [vmem:[%s11187_s11 + $0x3e0] sm:$0xff] }
 0x7be   :  { %v1470_v35 = vmax.f32 %v1207_v23, 0.0  ;;  %v1313_v37 = vpop.f32.mrf.mxu1  ;;  %2812 = vmatpush.bf16.msra.mxu1 %v8204_v32  ;;  %v1295_v30 = vadd.f32 %v1294_v8, %v9802_v41 }
 0x7bf   :  { %v1473_v40 = vmax.f32 %v1264_v33, 0.0  ;;  %2773 = vmatpush.bf16.msrb.mxu3 %v8189_v38  ;;  %v1314_v55 = vadd.f32 %v1313_v37, %v9811_v46 }
 0x7c0   :  { %v1502_v18 = vpack.c.bf16 %v1470_v35, %v1454_v22  ;;  %2830 = vmatpush.bf16.msra.mxu2 %v8213_v20  ;;  %v1427_v52 = vmax.f32 %v1295_v30, 0.0 }
 0x7c1   :  { %v1505_v47 = vpack.c.bf16 %v1473_v40, %v1457_v39  ;;  %2794 = vmatpush.bf16.msra.mxu0 %v8195_v42  ;;  %v1428_v36 = vmax.f32 %v1314_v55, 0.0 }
 0x7c2   :  { %2631 = vmatmul.bf16.gmra.mxu3 %v1502_v18  ;;  %2813 = vmatpush.bf16.msra.mxu1 %v8203_v43 }
 0x7c3   :  { %2688 = vmatmul.bf16.gmra.mxu2 %v1505_v47  ;;  %v1275_v49 = vpop.f32.mrf.mxu3  ;;  %2774 = vmatpush.bf16.msrb.mxu3 %v8188_v48 }
 0x7c4   :  { %v1332_v25 = vpop.f32.mrf.mxu2  ;;  %2831 = vmatpush.bf16.msra.mxu2 %v8212_v34  ;;  %v1276_v15 = vadd.f32 %v1275_v49, %v9828_v57 }
 0x7c5   :  { %v1296_v56 = vpop.f32.mrf.mxu0  ;;  %2795 = vmatpush.bf16.msra.mxu0 %v8194_v28  ;;  %v1333_v4 = vadd.f32 %v1332_v25, %v767_v24 }
 0x7c6   :  { %v1297_v58 = vadd.f32 %v1296_v56, %v9802_v41  ;;  %v1315_v50 = vpop.f32.mrf.mxu1  ;;  %2814 = vmatpush.bf16.msra.mxu1 %v8202_v54  ;;  %v1426_v10 = vmax.f32 %v1276_v15, 0.0  ;;  %v771_v15 = vperm.slane %v9793_v5, 7 }
 0x7c7   :  { %v1316_v27 = vadd.f32 %v1315_v50, %v9811_v46  ;;  %2775 = vmatpush.bf16.msrb.mxu3 %v8187_v61  ;;  %v1429_v21 = vmax.f32 %v1333_v4, 0.0  ;;  %v769_v50 = vperm.slane %v9793_v5, 5 }
 0x7c8   :  { %v1443_v13 = vmax.f32 %v1297_v58, 0.0  ;;  %2832 = vmatpush.bf16.msra.mxu2 %v8211_v19  ;;  %v770_v19 = vperm.slane %v9793_v5, 6 }
 0x7c9   :  { %v1444_v63 = vmax.f32 %v1316_v27, 0.0  ;;  %2796 = vmatpush.bf16.msra.mxu0 %v8193_v51 }
 0x7ca   :  { %v1491_v1 = vpack.c.bf16 %v1443_v13, %v1427_v52  ;;  %2815 = vmatpush.bf16.msra.mxu1 %v8201_v62  ;;  %v768_v62 = vperm.slane %v9793_v5, 4 }
 0x7cb   :  { %v1492_v26 = vpack.c.bf16 %v1444_v63, %v1428_v36  ;;  %v1277_v53 = vpop.f32.mrf.mxu3  ;;  %2776 = vmatpush.bf16.msrb.mxu3 %v8186_v16 }
 0x7cc   :  { %v1278_v6 = vadd.f32 %v1277_v53, %v9828_v57  ;;  %v1334_v59 = vpop.f32.mrf.mxu2  ;;  %2721 = vmatmul.bf16.vlgmr.msrb.gmra.mxu0 %v1491_v1  ;;  %2833 = vmatpush.bf16.msra.mxu2 %v8210_v3 }
 0x7cd   :  { %v1335_v9 = vadd.f32 %v1334_v59, %v767_v24  ;;  %2740 = vmatmul.bf16.vlgmr.msrb.gmra.mxu1 %v1492_v26  ;;  %v1299_v7 = vpop.f32.mrf.mxu0 }
 0x7ce   :  { %v1442_v2 = vmax.f32 %v1278_v6, 0.0  ;;  %v1318_v11 = vpop.f32.mrf.mxu1  ;;  %v1300_v33 = vadd.f32 %v1299_v7, %v9802_v41 }
 0x7cf   :  { %v1445_v23 = vmax.f32 %v1335_v9, 0.0  ;;  %2777 = vmatpush.bf16.msrb.mxu3 %v8185_v14  ;;  %v1319_v22 = vadd.f32 %v1318_v11, %v9811_v46 }
 0x7d0   :  { %v1490_v29 = vpack.c.bf16 %v1442_v2, %v1426_v10  ;;  %2834 = vmatpush.bf16.msra.mxu2 %v8209_v17  ;;  %v1459_v39 = vmax.f32 %v1300_v33, 0.0 }
 0x7d1   :  { %v1493_v31 = vpack.c.bf16 %v1445_v23, %v1429_v21  ;;  %v1460_v18 = vmax.f32 %v1319_v22, 0.0 }
 0x7d2   :  { %2702 = vmatmul.bf16.vlgmr.msra.gmra.mxu3 %v1490_v29 }
 0x7d3   :  { %2759 = vmatmul.bf16.vlgmr.msrb.gmra.mxu2 %v1493_v31  ;;  %v1280_v32 = vpop.f32.mrf.mxu3 }
 0x7d4   :  { %v1337_v8 = vpop.f32.mrf.mxu2  ;;  %v1281_v43 = vadd.f32 %v1280_v32, %v9828_v57 }
 0x7d5   :  { %v1301_v35 = vpop.f32.mrf.mxu0  ;;  %v1338_v48 = vadd.f32 %v1337_v8, %v767_v24 }
 0x7d6   :  { %v1302_v37 = vadd.f32 %v1301_v35, %v9802_v41  ;;  %v1320_v38 = vpop.f32.mrf.mxu1  ;;  %v1458_v54 = vmax.f32 %v1281_v43, 0.0 }
 0x7d7   :  { %v1321_v20 = vadd.f32 %v1320_v38, %v9811_v46  ;;  %v1461_v56 = vmax.f32 %v1338_v48, 0.0 }
 0x7d8   :  { %v1475_v40 = vmax.f32 %v1302_v37, 0.0 }
 0x7d9   :  { %v1476_v42 = vmax.f32 %v1321_v20, 0.0 }
 0x7da   :  { %v1507_v47 = vpack.c.bf16 %v1475_v40, %v1459_v39 }
 0x7db   :  { %v1282_v34 = vpop.f32.mrf.mxu3  ;;  %v1508_v49 = vpack.c.bf16 %v1476_v42, %v1460_v18 }
 0x7dc   :  { %v1283_v30 = vadd.f32 %v1282_v34, %v9828_v57  ;;  %v1339_v25 = vpop.f32.mrf.mxu2  ;;  %2726 = vmatmul.bf16.gmra.mxu0 %v1507_v47 }
 0x7dd   :  { %v1340_v28 = vadd.f32 %v1339_v25, %v767_v24  ;;  %2745 = vmatmul.bf16.gmra.mxu1 %v1508_v49  ;;  %v1370_v41 = vpop.f32.mrf.mxu0 }
 0x7de   :  { %v1474_v55 = vmax.f32 %v1283_v30, 0.0  ;;  %v1389_v46 = vpop.f32.mrf.mxu1  ;;  %v1371_v57 = vadd.f32 %v1370_v41, %v769_v50 }
 0x7df   :  { %v1477_v58 = vmax.f32 %v1340_v28, 0.0  ;;  %v1390_v51 = vadd.f32 %v1389_v46, %v770_v19 }
 0x7e0   :  { %v1506_v61 = vpack.c.bf16 %v1474_v55, %v1458_v54  ;;  %v1431_v16 = vmax.f32 %v1371_v57, 0.0  ;;  %v8452_v57 = vld [vmem:[%s11189_s12] ss:$0 sm:$0xff] }
 0x7e1   :  { %v1509_v27 = vpack.c.bf16 %v1477_v58, %v1461_v56  ;;  %v1432_v4 = vmax.f32 %v1390_v51, 0.0 }
 0x7e2   :  { %2707 = vmatmul.bf16.gmra.mxu3 %v1506_v61 }
 0x7e3   :  { %2764 = vmatmul.bf16.gmra.mxu2 %v1509_v27  ;;  %v1351_v52 = vpop.f32.mrf.mxu3 }
 0x7e4   :  { %v1408_v13 = vpop.f32.mrf.mxu2  ;;  %v1352_v53 = vadd.f32 %v1351_v52, %v768_v62 }
 0x7e5   :  { %v1372_v24 = vpop.f32.mrf.mxu0  ;;  %v1409_v59 = vadd.f32 %v1408_v13, %v771_v15 }
 0x7e6   :  { %v1373_v36 = vadd.f32 %v1372_v24, %v769_v50  ;;  %v1391_v63 = vpop.f32.mrf.mxu1  ;;  %v1430_v17 = vmax.f32 %v1352_v53, 0.0 }
 0x7e7   :  { %v1392_v1 = vadd.f32 %v1391_v63, %v770_v19  ;;  %v1433_v5 = vmax.f32 %v1409_v59, 0.0 }
 0x7e8   :  { %v1447_v3 = vmax.f32 %v1373_v36, 0.0 }
 0x7e9   :  { %v1448_v26 = vmax.f32 %v1392_v1, 0.0 }
 0x7ea   :  { %v1495_v6 = vpack.c.bf16 %v1447_v3, %v1431_v16 }
 0x7eb   :  { %v1496_v9 = vpack.c.bf16 %v1448_v26, %v1432_v4  ;;  %v1353_v7 = vpop.f32.mrf.mxu3 }
 0x7ec   :  { %v1354_v10 = vadd.f32 %v1353_v7, %v768_v62  ;;  %v1410_v2 = vpop.f32.mrf.mxu2  ;;  %2797 = vmatmul.bf16.vlgmr.msra.gmra.mxu0 %v1495_v6 }
 0x7ed   :  { %v1411_v11 = vadd.f32 %v1410_v2, %v771_v15  ;;  %2816 = vmatmul.bf16.vlgmr.msra.gmra.mxu1 %v1496_v9  ;;  %v1375_v14 = vpop.f32.mrf.mxu0 }
 0x7ee   :  { %v1446_v21 = vmax.f32 %v1354_v10, 0.0  ;;  %v1394_v23 = vpop.f32.mrf.mxu1  ;;  %v1376_v8 = vadd.f32 %v1375_v14, %v769_v50 }
 0x7ef   :  { %v1449_v29 = vmax.f32 %v1411_v11, 0.0  ;;  %v1395_v35 = vadd.f32 %v1394_v23, %v770_v19 }
 0x7f0   :  { %v1494_v31 = vpack.c.bf16 %v1446_v21, %v1430_v17  ;;  %v1463_v40 = vmax.f32 %v1376_v8, 0.0 }
 0x7f1   :  { %v1497_v32 = vpack.c.bf16 %v1449_v29, %v1433_v5  ;;  %v1464_v42 = vmax.f32 %v1395_v35, 0.0 }
 0x7f2   :  { %2778 = vmatmul.bf16.vlgmr.msrb.gmra.mxu3 %v1494_v31 }
 0x7f3   :  { %2835 = vmatmul.bf16.vlgmr.msra.gmra.mxu2 %v1497_v32  ;;  %v1356_v33 = vpop.f32.mrf.mxu3 }
 0x7f4   :  { %v1413_v22 = vpop.f32.mrf.mxu2  ;;  %v1357_v47 = vadd.f32 %v1356_v33, %v768_v62 }
 0x7f5   :  { %v1377_v37 = vpop.f32.mrf.mxu0  ;;  %v1414_v34 = vadd.f32 %v1413_v22, %v771_v15 }
 0x7f6   :  { %v1378_v38 = vadd.f32 %v1377_v37, %v769_v50  ;;  %v1396_v20 = vpop.f32.mrf.mxu1  ;;  %v1462_v54 = vmax.f32 %v1357_v47, 0.0 }
 0x7f7   :  { %v1397_v39 = vadd.f32 %v1396_v20, %v770_v19  ;;  %v1465_v46 = vmax.f32 %v1414_v34, 0.0 }
 0x7f8   :  { %v1479_v18 = vmax.f32 %v1378_v38, 0.0 }
 0x7f9   :  { %v1480_v43 = vmax.f32 %v1397_v39, 0.0 }
 0x7fa   :  { %v1511_v48 = vpack.c.bf16 %v1479_v18, %v1463_v40 }
 0x7fb   :  { %v1358_v49 = vpop.f32.mrf.mxu3  ;;  %v1512_v30 = vpack.c.bf16 %v1480_v43, %v1464_v42 }
 0x7fc   :  { %v1359_v25 = vadd.f32 %v1358_v49, %v768_v62  ;;  %v1415_v28 = vpop.f32.mrf.mxu2  ;;  %2802 = vmatmul.bf16.gmra.mxu0 %v1511_v48 }
 0x7fd   :  { %v1416_v41 = vadd.f32 %v1415_v28, %v771_v15  ;;  %2821 = vmatmul.bf16.gmra.mxu1 %v1512_v30 }
 0x7fe   :  { %v1478_v55 = vmax.f32 %v1359_v25, 0.0 }
 0x7ff   :  { %v1481_v56 = vmax.f32 %v1416_v41, 0.0 }
 0x800   :  { %v1510_v58 = vpack.c.bf16 %v1478_v55, %v1462_v54 }
 0x801   :  { %v1513_v50 = vpack.c.bf16 %v1481_v56, %v1465_v46 }
 0x802   :  { %2783 = vmatmul.bf16.gmra.mxu3 %v1510_v58 }
 0x803   :  { %2840 = vmatmul.bf16.gmra.mxu2 %v1513_v50 }
 0x809   :  { %v2570_v61 = vpop.f32.mrf.mxu0 }
 0x80a   :  { %v2589_v19 = vpop.f32.mrf.mxu1 }
 0x811   :  { %v2572_v27 = vpop.f32.mrf.mxu0 }
 0x812   :  { %v2591_v52 = vpop.f32.mrf.mxu1 }
 0x815   :  { %v2551_v13 = vpop.f32.mrf.mxu3 }
 0x816   :  { %v2552_v51 = vadd.f32 %v8452_v57, %v2551_v13  ;;  %v2608_v24 = vpop.f32.mrf.mxu2 }
 0x818   :  { %v2571_v62 = vadd.f32 %v2570_v61, %v2552_v51 }
 0x819   :  { %v2575_v36 = vpop.f32.mrf.mxu0 }
 0x81a   :  { %v2590_v63 = vadd.f32 %v2589_v19, %v2571_v62  ;;  %v2594_v15 = vpop.f32.mrf.mxu1 }
 0x81c   :  { %v2609_v1 = vadd.f32 %v2608_v24, %v2590_v63 }
 0x81d   :  { %v2553_v16 = vpop.f32.mrf.mxu3 }
 0x81e   :  { %v2610_v3 = vpop.f32.mrf.mxu2  ;;  %v2554_v43 = vadd.f32 %v8452_v57, %v2553_v16 }
 0x820   :  { %v2573_v49 = vadd.f32 %v2572_v27, %v2554_v43 }
 0x821   :  { %v2577_v4 = vpop.f32.mrf.mxu0 }
 0x822   :  { %v2596_v26 = vpop.f32.mrf.mxu1  ;;  %v2592_v25 = vadd.f32 %v2591_v52, %v2573_v49 }
 0x824   :  { %v2611_v56 = vadd.f32 %v2610_v3, %v2592_v25 }
 0x825   :  { %v2556_v53 = vpop.f32.mrf.mxu3 }
 0x826   :  { %v2557_v6 = vadd.f32 %v8452_v57, %v2556_v53  ;;  %v2613_v59 = vpop.f32.mrf.mxu2 }
 0x828   :  { %v2576_v9 = vadd.f32 %v2575_v36, %v2557_v6 }
 0x829   :  { %v2646_v7 = vpop.f32.mrf.mxu0 }
 0x82a   :  { %v2595_v10 = vadd.f32 %v2594_v15, %v2576_v9  ;;  %v2665_v2 = vpop.f32.mrf.mxu1 }
 0x82c   :  { %v2614_v11 = vadd.f32 %v2613_v59, %v2595_v10 }
 0x82d   :  { %v2558_v14 = vpop.f32.mrf.mxu3 }
 0x82e   :  { %v2615_v17 = vpop.f32.mrf.mxu2  ;;  %v2559_v61 = vadd.f32 %v8452_v57, %v2558_v14 }
 0x830   :  { %v2578_v36 = vadd.f32 %v2577_v4, %v2559_v61 }
 0x831   :  { %v2648_v21 = vpop.f32.mrf.mxu0 }
 0x832   :  { %v2667_v23 = vpop.f32.mrf.mxu1  ;;  %v2597_v52 = vadd.f32 %v2596_v26, %v2578_v36 }
 0x834   :  { %v2616_v3 = vadd.f32 %v2615_v17, %v2597_v52 }
 0x835   :  { %v2627_v5 = vpop.f32.mrf.mxu3 }
 0x836   :  { %v2684_v29 = vpop.f32.mrf.mxu2  ;;  %v2628_v30 = vadd.f32 %v2627_v5, %v2609_v1 }
 0x838   :  { %v2647_v54 = vadd.f32 %v2646_v7, %v2628_v30 }
 0x839   :  { %v2651_v31 = vpop.f32.mrf.mxu0 }
 0x83a   :  { %v2670_v32 = vpop.f32.mrf.mxu1  ;;  %v2666_v58 = vadd.f32 %v2665_v2, %v2647_v54 }
 0x83c   :  { %v2685_v13 = vadd.f32 %v2684_v29, %v2666_v58 }
 0x83d   :  { %v2629_v33 = vpop.f32.mrf.mxu3 }
 0x83e   :  { %v2686_v8 = vpop.f32.mrf.mxu2  ;;  %v2630_v50 = vadd.f32 %v2629_v33, %v2611_v56 }
 0x840   :  { %v2649_v51 = vadd.f32 %v2648_v21, %v2630_v50 }
 0x841   :  { %v2653_v22 = vpop.f32.mrf.mxu0 }
 0x842   :  { %v2672_v35 = vpop.f32.mrf.mxu1  ;;  %v2668_v27 = vadd.f32 %v2667_v23, %v2649_v51 }
 0x844   :  { %v2687_v6 = vadd.f32 %v2686_v8, %v2668_v27 }
 0x845   :  { %v2632_v37 = vpop.f32.mrf.mxu3 }
 0x846   :  { %v2689_v38 = vpop.f32.mrf.mxu2  ;;  %v2633_v1 = vadd.f32 %v2632_v37, %v2614_v11 }
 0x848   :  { %v2652_v59 = vadd.f32 %v2651_v31, %v2633_v1 }
 0x849   :  { %v2722_v20 = vpop.f32.mrf.mxu0 }
 0x84a   :  { %v2741_v39 = vpop.f32.mrf.mxu1  ;;  %v2671_v2 = vadd.f32 %v2670_v32, %v2652_v59 }
 0x84c   :  { %v2690_v33 = vadd.f32 %v2689_v38, %v2671_v2 }
 0x84d   :  { %v2634_v40 = vpop.f32.mrf.mxu3 }
 0x84e   :  { %v2691_v18 = vpop.f32.mrf.mxu2  ;;  %v2635_v14 = vadd.f32 %v2634_v40, %v2616_v3 }
 0x850   :  { %v2654_v43 = vadd.f32 %v2653_v22, %v2635_v14 }
 0x851   :  { %v2724_v42 = vpop.f32.mrf.mxu0 }
 0x852   :  { %v2743_v47 = vpop.f32.mrf.mxu1  ;;  %v2673_v8 = vadd.f32 %v2672_v35, %v2654_v43 }
 0x854   :  { %v2692_v40 = vadd.f32 %v2691_v18, %v2673_v8 }
 0x855   :  { %v2703_v48 = vpop.f32.mrf.mxu3 }
 0x856   :  { %v2760_v34 = vpop.f32.mrf.mxu2  ;;  %v2704_v63 = vadd.f32 %v2703_v48, %v2685_v13 }
 0x858   :  { %v2723_v16 = vadd.f32 %v2722_v20, %v2704_v63 }
 0x859   :  { %v2727_v28 = vpop.f32.mrf.mxu0 }
 0x85a   :  { %v2746_v46 = vpop.f32.mrf.mxu1  ;;  %v2742_v7 = vadd.f32 %v2741_v39, %v2723_v16 }
 0x85c   :  { %v2761_v5 = vadd.f32 %v2760_v34, %v2742_v7 }
 0x85d   :  { %v2705_v41 = vpop.f32.mrf.mxu3 }
 0x85e   :  { %v2762_v55 = vpop.f32.mrf.mxu2  ;;  %v2706_v10 = vadd.f32 %v2705_v41, %v2687_v6 }
 0x860   :  { %v2725_v29 = vadd.f32 %v2724_v42, %v2706_v10 }
 0x861   :  { %v2729_v62 = vpop.f32.mrf.mxu0 }
 0x862   :  { %v2748_v15 = vpop.f32.mrf.mxu1  ;;  %v2744_v26 = vadd.f32 %v2743_v47, %v2725_v29 }
 0x864   :  { %v2763_v17 = vadd.f32 %v2762_v55, %v2744_v26 }
 0x865   :  { %v2708_v19 = vpop.f32.mrf.mxu3 }
 0x866   :  { %v2765_v24 = vpop.f32.mrf.mxu2  ;;  %v2709_v37 = vadd.f32 %v2708_v19, %v2690_v33 }
 0x868   :  { %v2728_v39 = vadd.f32 %v2727_v28, %v2709_v37 }
 0x869   :  { %v2798_v57 = vpop.f32.mrf.mxu0 }
 0x86a   :  { %v2817_v21 = vpop.f32.mrf.mxu1  ;;  %v2747_v38 = vadd.f32 %v2746_v46, %v2728_v39 }
 0x86c   :  { %v2766_v35 = vadd.f32 %v2765_v24, %v2747_v38 }
 0x86d   :  { %v2710_v53 = vpop.f32.mrf.mxu3 }
 0x86e   :  { %v2767_v9 = vpop.f32.mrf.mxu2  ;;  %v2711_v22 = vadd.f32 %v2710_v53, %v2692_v40  ;;  %v8222_v40 = vld [vmem:[%s11179_s1 + $0x64] sm:$0xf0] }
 0x870   :  { %v2730_v56 = vadd.f32 %v2729_v62, %v2711_v22  ;;  %v6807_v22 = vld [vmem:[%s11179_s1 + $0x50] sm:$0xf] }
 0x871   :  { %v2800_v48 = vpop.f32.mrf.mxu0 }
 0x872   :  { %v2819_v30 = vpop.f32.mrf.mxu1  ;;  %v2749_v19 = vadd.f32 %v2748_v15, %v2730_v56 }
 0x874   :  { %v2768_v36 = vadd.f32 %v2767_v9, %v2749_v19 }
 0x875   :  { %v2779_v4 = vpop.f32.mrf.mxu3 }
 0x876   :  { %v2780_v23 = vadd.f32 %v2779_v4, %v2761_v5  ;;  %v2836_v11 = vpop.f32.mrf.mxu2 }
 0x878   :  { %v2799_v20 = vadd.f32 %v2798_v57, %v2780_v23 }
 0x879   :  { %v2803_v55 = vpop.f32.mrf.mxu0 }
 0x87a   :  { %v2818_v31 = vadd.f32 %v2817_v21, %v2799_v20  ;;  %v2822_v18 = vpop.f32.mrf.mxu1 }
 0x87c   :  { %v2837_v49 = vadd.f32 %v2836_v11, %v2818_v31  ;;  %v6823_v31 = vld [vmem:[%s11179_s1 + $0x70] sm:$0xf] }
 0x87d   :  { %v2781_v32 = vpop.f32.mrf.mxu3 }
 0x87e   :  { %v2782_v25 = vadd.f32 %v2781_v32, %v2763_v17  ;;  %v2846_v42 = vadd.f32 %v2837_v49, %v9108_v44  ;;  %v2838_v34 = vpop.f32.mrf.mxu2  ;;  %v8223_v17 = vld [vmem:[%s11179_s1 + $0x74] sm:$0xf]  ;;  %v6825_v49 = vld [vmem:[%s11179_s1 + $0x78] sm:$0xf0]  ;;  %v6815_v32 = vld [vmem:[%s11179_s1 + $0x60] sm:$0xf] }
 0x880   :  { %v2801_v41 = vadd.f32 %v2800_v48, %v2782_v25  ;;  %v2852_v47 = vsel %vm111_vm0, %v2846_v42, 0.0  ;;  %v8224_v48 = vld [vmem:[%s11179_s1 + $0x74] sm:$0xf0]  ;;  %v8221_v25 = vld [vmem:[%s11179_s1 + $0x64] sm:$0xf] }
 0x881   :  { %2853 = vadd.xlane.f32.xlu1 %v2852_v47  ;;  %v2805_v62 = vpop.f32.mrf.mxu0  ;;  %v6824_v39 = vor.u32 %v8224_v48, %v6823_v31  ;;  %v8219_v47 = vld [vmem:[%s11179_s1 + $0x54] sm:$0xf] }
 0x882   :  { %v2820_v54 = vadd.f32 %v2819_v30, %v2801_v41  ;;  %v2824_v53 = vpop.f32.mrf.mxu1  ;;  %v6828_v30 = vor.u32 %v8223_v17, %v6825_v49  ;;  %v8220_v41 = vld [vmem:[%s11179_s1 + $0x54] sm:$0xf0] }
 0x883   :  { %3022 = vmatpush.bf16.msra.mxu3 %v6824_v39 }
 0x884   :  { %v2839_v58 = vadd.f32 %v2838_v34, %v2820_v54  ;;  %3041 = vmatpush.bf16.msrb.mxu0 %v6828_v30  ;;  %v6817_v34 = vld [vmem:[%s11179_s1 + $0x68] sm:$0xf0]  ;;  %v6808_v54 = vor.u32 %v8220_v41, %v6807_v22 }
 0x885   :  { %v2784_v28 = vpop.f32.mrf.mxu3  ;;  %v6820_v38 = vor.u32 %v8221_v25, %v6817_v34 }
 0x886   :  { %v2785_v50 = vadd.f32 %v2784_v28, %v2766_v35  ;;  %v2847_v61 = vadd.f32 %v2839_v58, %v9111_v45  ;;  %v2841_v46 = vpop.f32.mrf.mxu2  ;;  %v6809_v35 = vld [vmem:[%s11179_s1 + $0x58] sm:$0xf0]  ;;  %v6799_v28 = vld [vmem:[%s11179_s1 + $0x40] sm:$0xf] }
 0x887   :  { %v6812_v58 = vor.u32 %v8219_v47, %v6809_v35 }
 0x888   :  { %v2804_v13 = vadd.f32 %v2803_v55, %v2785_v50  ;;  %v2855_v44 = vsel %vm111_vm0, %v2847_v61, 0.0  ;;  %3042 = vmatpush.bf16.msrb.mxu0 %v6820_v38  ;;  %v8218_v50 = vld [vmem:[%s11179_s1 + $0x44] sm:$0xf0] }
 0x889   :  { %2856 = vadd.xlane.f32.xlu0 %v2855_v44  ;;  %v6800_v19 = vor.u32 %v8218_v50, %v6799_v28 }
 0x88a   :  { %v2823_v51 = vadd.f32 %v2822_v18, %v2804_v13  ;;  %v6801_v13 = vld [vmem:[%s11179_s1 + $0x48] sm:$0xf0] }
 0x88c   :  { %v2842_v63 = vadd.f32 %v2841_v46, %v2823_v51  ;;  %3043 = vmatpush.bf16.msrb.mxu0 %v6812_v58 }
 0x88d   :  { %v2786_v27 = vpop.f32.mrf.mxu3 }
 0x88e   :  { %v2787_v1 = vadd.f32 %v2786_v27, %v2768_v36  ;;  %v2848_v24 = vadd.f32 %v2842_v63, %v9142_v12  ;;  %v2843_v15 = vpop.f32.mrf.mxu2 }
 0x890   :  { %v2806_v52 = vadd.f32 %v2805_v62, %v2787_v1  ;;  %v2858_v16 = vsel %vm111_vm0, %v2848_v24, 0.0 }
 0x891   :  { %2859 = vadd.xlane.f32.xlu2 %v2858_v16 }
 0x892   :  { %v2825_v45 = vadd.f32 %v2824_v53, %v2806_v52 }
 0x894   :  { %v2844_v6 = vadd.f32 %v2843_v15, %v2825_v45 }
 0x896   :  { %v2849_v59 = vadd.f32 %v2844_v6, %v9145_v60 }
 0x898   :  { %v2861_v3 = vsel %vm111_vm0, %v2849_v59, 0.0 }
 0x899   :  { %2862 = vadd.xlane.f32.xlu1 %v2861_v3 }
 0x8f4   :  { %v2854_v9 = vpop.xlane.xlu1 %2853 }
 0x8f5   :  { %v2864_v7 = vmul.f32 %v2854_v9, %v8834_v0 }
 0x8f7   :  { %v9881_v10 = vsub.f32 %v2846_v42, %v2864_v7  ;;  %v6816_v42 = vor.u32 %v8222_v40, %v6815_v32 }
 0x8f9   :  { %v2872_v12 = vmul.f32 %v9881_v10, %v9881_v10  ;;  %3023 = vmatpush.bf16.msra.mxu3 %v6816_v42 }
 0x8fb   :  { %v2876_v57 = vsel %vm111_vm0, %v2872_v12, 0.0 }
 0x8fc   :  { %v2857_v2 = vpop.xlane.xlu0 %2856  ;;  %2877 = vadd.xlane.f32.xlu0 %v2876_v57 }
 0x8fd   :  { %v2865_v14 = vmul.f32 %v2857_v2, %v8834_v0  ;;  %3024 = vmatpush.bf16.msra.mxu3 %v6808_v54 }
 0x8ff   :  { %v9887_v21 = vsub.f32 %v2847_v61, %v2865_v14  ;;  %v8217_v61 = vld [vmem:[%s11179_s1 + $0x44] sm:$0xf]  ;;  %v8453_v14 = vld [vmem:[%s11190_s7] ss:$0 sm:$0xff] }
 0x900   :  { %v6804_v44 = vor.u32 %v8217_v61, %v6801_v13 }
 0x901   :  { %v2873_v60 = vmul.f32 %v9887_v21, %v9887_v21  ;;  %3025 = vmatpush.bf16.msra.mxu3 %v6800_v19 }
 0x902   :  { %3044 = vmatpush.bf16.msrb.mxu0 %v6804_v44 }
 0x903   :  { %v2879_v5 = vsel %vm111_vm0, %v2873_v60, 0.0 }
 0x904   :  { %2880 = vadd.xlane.f32.xlu2 %v2879_v5  ;;  %v2860_v29 = vpop.xlane.xlu2 %2859 }
 0x905   :  { %v2866_v4 = vmul.f32 %v2860_v29, %v8834_v0 }
 0x907   :  { %v9893_v33 = vsub.f32 %v2848_v24, %v2866_v4 }
 0x909   :  { %v2874_v43 = vmul.f32 %v9893_v33, %v9893_v33 }
 0x90b   :  { %v2882_v23 = vsel %vm111_vm0, %v2874_v43, 0.0 }
 0x90c   :  { %v2863_v11 = vpop.xlane.xlu1 %2862  ;;  %2883 = vadd.xlane.f32.xlu1 %v2882_v23 }
 0x90d   :  { %v2867_v26 = vmul.f32 %v2863_v11, %v8834_v0  ;;  %v8454_v11 = vld [vmem:[%s11191_s8] ss:$0 sm:$0xff] }
 0x90f   :  { %v9899_v37 = vsub.f32 %v2849_v59, %v2867_v26 }
 0x911   :  { %v2875_v20 = vmul.f32 %v9899_v37, %v9899_v37 }
 0x913   :  { %v2885_v8 = vsel %vm111_vm0, %v2875_v20, 0.0 }
 0x914   :  { %2886 = vadd.xlane.f32.xlu0 %v2885_v8 }
 0x96f   :  { %v2878_v56 = vpop.xlane.xlu0 %2877 }
 0x970   :  { %v2888_v55 = vmul.f32 %v2878_v56, %v8834_v0 }
 0x972   :  { %v2892_v18 = vadd.f32 1e-05, %v2888_v55 }
 0x974   :  { %8504 = vrsqrt.f32 %v2892_v18  ;;  %vm2902_vm4 = vweird.f32 %v2892_v18 }
 0x977   :  { %v2881_v46 = vpop.xlane.xlu2 %2880 }
 0x978   :  { %v2889_v51 = vmul.f32 %v2881_v46, %v8834_v0 }
 0x97a   :  { %v8505_v36 = vpop.eup %8504  ;;  %v2893_v63 = vadd.f32 1e-05, %v2889_v51 }
 0x97b   :  { %v2897_v27 = vmul.f32 %v8505_v36, %v2892_v18  ;;  %vm2903_vm3 = vweird.f32 %v8505_v36 }
 0x97c   :  { %8506 = vrsqrt.f32 %v2893_v63  ;;  %vm2904_vm5 = vmor %vm2902_vm4, %vm2903_vm3  ;;  %vm2912_vm7 = vweird.f32 %v2893_v63 }
 0x97d   :  { %v2898_v1 = vmul.f32 %v8505_v36, %v2897_v27 }
 0x97f   :  { %v2899_v24 = vmul.f32 0.5, %v2898_v1  ;;  %v2884_v62 = vpop.xlane.xlu1 %2883 }
 0x980   :  { %v2890_v52 = vmul.f32 %v2884_v62, %v8834_v0 }
 0x981   :  { %v2900_v16 = vsub.f32 1.5, %v2899_v24 }
 0x982   :  { %v8507_v53 = vpop.eup %8506  ;;  %v2894_v45 = vadd.f32 1e-05, %v2890_v52 }
 0x983   :  { %v2901_v15 = vmul.f32 %v8505_v36, %v2900_v16  ;;  %v2907_v6 = vmul.f32 %v8507_v53, %v2893_v63  ;;  %vm2913_vm6 = vweird.f32 %v8507_v53 }
 0x984   :  { %8508 = vrsqrt.f32 %v2894_v45  ;;  %vm2914_vm8 = vmor %vm2912_vm7, %vm2913_vm6  ;;  %vm2922_vm10 = vweird.f32 %v2894_v45 }
 0x985   :  { %v2908_v59 = vmul.f32 %v8507_v53, %v2907_v6  ;;  %v2905_v3 = vsel %vm2904_vm5, %v8505_v36, %v2901_v15 }
 0x986   :  { %v2936_v60 = vmul.f32 %v2905_v3, %v9881_v10 }
 0x987   :  { %v2909_v9 = vmul.f32 0.5, %v2908_v59  ;;  %v2887_v7 = vpop.xlane.xlu0 %2886 }
 0x988   :  { %v2891_v12 = vmul.f32 %v2887_v7, %v8834_v0  ;;  %v2943_v26 = vmul.f32 %v8453_v14, %v2936_v60 }
 0x989   :  { %v2910_v57 = vsub.f32 1.5, %v2909_v9 }
 0x98a   :  { %v8509_v2 = vpop.eup %8508  ;;  %v2895_v5 = vadd.f32 1e-05, %v2891_v12  ;;  %v9964_v10 = vadd.f32 %v8454_v11, %v2943_v26 }
 0x98b   :  { %v2911_v29 = vmul.f32 %v8507_v53, %v2910_v57  ;;  %v2917_v4 = vmul.f32 %v8509_v2, %v2894_v45  ;;  %vm2923_vm9 = vweird.f32 %v8509_v2 }
 0x98c   :  { %8510 = vrsqrt.f32 %v2895_v5  ;;  %vm2924_vm11 = vmor %vm2922_vm10, %vm2923_vm9  ;;  %vm2932_vm13 = vweird.f32 %v2895_v5 }
 0x98d   :  { %v2915_v43 = vsel %vm2914_vm8, %v8507_v53, %v2911_v29  ;;  %v2918_v23 = vmul.f32 %v8509_v2, %v2917_v4 }
 0x98e   :  { %v2937_v20 = vmul.f32 %v2915_v43, %v9887_v21 }
 0x98f   :  { %v2919_v8 = vmul.f32 0.5, %v2918_v23 }
 0x990   :  { %v2944_v31 = vmul.f32 %v8453_v14, %v2937_v20 }
 0x991   :  { %v2920_v48 = vsub.f32 1.5, %v2919_v8 }
 0x992   :  { %v8511_v17 = vpop.eup %8510  ;;  %v9966_v39 = vadd.f32 %v8454_v11, %v2944_v31 }
 0x993   :  { %v2921_v49 = vmul.f32 %v8509_v2, %v2920_v48  ;;  %v2927_v30 = vmul.f32 %v8511_v17, %v2895_v5  ;;  %vm2933_vm12 = vweird.f32 %v8511_v17 }
 0x994   :  { %v2954_v32 = vpack.c.bf16 %v9966_v39, %v9964_v10  ;;  %vm2934_vm14 = vmor %vm2932_vm13, %vm2933_vm12 }
 0x995   :  { %v2928_v40 = vmul.f32 %v8511_v17, %v2927_v30  ;;  %v2925_v21 = vsel %vm2924_vm11, %v8509_v2, %v2921_v49 }
 0x996   :  { %6829 = vmatmul.msk.bf16.vlgmr.msra.gmra.mxu3 %vm111_vm0, %v2954_v32  ;;  %6831 = vmatmul.msk.bf16.vlgmr.msrb.gmra.mxu0 %vm111_vm0, %v2954_v32  ;;  %v2938_v34 = vmul.f32 %v2925_v21, %v9893_v33  ;;  %v6796_v33 = vld [vmem:[%s11181_s2 + $0x2] sm:$0x3] }
 0x997   :  { %v2929_v25 = vmul.f32 0.5, %v2928_v40  ;;  %v2969_v28 = vperm.slane %v6796_v33, 1  ;;  %v2968_v61 = vperm.slane %v6796_v33, 0 }
 0x998   :  { %v2945_v47 = vmul.f32 %v8453_v14, %v2938_v34 }
 0x999   :  { %v2930_v42 = vsub.f32 1.5, %v2929_v25 }
 0x99a   :  { %v9974_v35 = vadd.f32 %v8454_v11, %v2945_v47 }
 0x99b   :  { %v2931_v38 = vmul.f32 %v8511_v17, %v2930_v42 }
 0x99d   :  { %v2935_v22 = vsel %vm2934_vm14, %v8511_v17, %v2931_v38 }
 0x99e   :  { %v2939_v41 = vmul.f32 %v2935_v22, %v9899_v37 }
 0x9a0   :  { %v2946_v54 = vmul.f32 %v8453_v14, %v2939_v41 }
 0x9a2   :  { %v9976_v56 = vadd.f32 %v8454_v11, %v2946_v54 }
 0x9a4   :  { %v2955_v58 = vpack.c.bf16 %v9976_v56, %v9974_v35 }
 0x9a6   :  { %6830 = vmatmul.msk.bf16.gmra.mxu3 %vm111_vm0, %v2955_v58  ;;  %6832 = vmatmul.msk.bf16.gmra.mxu0 %vm111_vm0, %v2955_v58 }
 0xa13   :  { %v3046_v55 = vpop.f32.mrf.mxu0 }
 0xa14   :  { %v3047_v37 = vadd.f32 %v3046_v55, %v2969_v28 }
 0xa16   :  { %v3068_v19 = vpack.c.bf16 %v3047_v37, %v3047_v37 }
 0xa18   :  { %v3191_v51 = vunpack.c.l.b16 %v3068_v19 }
 0xa19   :  { %v3027_v50 = vpop.f32.mrf.mxu3 }
 0xa1a   :  { %v3028_v44 = vadd.f32 %v3027_v50, %v2968_v61 }
 0xa1b   :  { %v3048_v18 = vpop.f32.mrf.mxu0 }
 0xa1c   :  { %v3049_v13 = vadd.f32 %v3048_v18, %v2969_v28  ;;  %v3064_v27 = vpack.c.bf16 %v3028_v44, %v3028_v44  ;;  %v3056_v53 = vmul.f32 0.17677669, %v3028_v44 }
 0xa1e   :  { %v3069_v46 = vpack.c.bf16 %v3049_v13, %v3049_v13  ;;  %v3079_v45 = vunpack.c.l.b16 %v3064_v27  ;;  %v3060_v7 = vpack.c.bf16 %v3056_v53, %v3056_v53 }
 0xa20   :  { %v3192_v36 = vunpack.c.l.b16 %v3069_v46  ;;  %v3074_v60 = vunpack.c.l.b16 %v3060_v7 }
 0xa21   :  { %v3029_v63 = vpop.f32.mrf.mxu3 }
 0xa22   :  { %v9985_v1 = vpack.c.b16 %v3192_v36, %v3191_v51  ;;  %v3030_v24 = vadd.f32 %v3029_v63, %v2968_v61 }
 0xa23   :  { %v3051_v62 = vpop.f32.mrf.mxu0 }
 0xa24   :  { %v3057_v52 = vmul.f32 0.17677669, %v3030_v24  ;;  %v3065_v16 = vpack.c.bf16 %v3030_v24, %v3030_v24  ;;  %3205 = vmatpush.bf16.msrb.mxu2 %v9985_v1  ;;  %v3052_v59 = vadd.f32 %v3051_v62, %v2969_v28 }
 0xa26   :  { %v3080_v15 = vunpack.c.l.b16 %v3065_v16  ;;  %v3061_v6 = vpack.c.bf16 %v3057_v52, %v3057_v52  ;;  %v3070_v2 = vpack.c.bf16 %v3052_v59, %v3052_v59 }
 0xa28   :  { %v3081_v3 = vpack.c.b16 %v3080_v15, %v3079_v45  ;;  %v3075_v57 = vunpack.c.l.b16 %v3061_v6  ;;  %v3219_v4 = vunpack.c.l.b16 %v3070_v2 }
 0xa29   :  { %v3032_v9 = vpop.f32.mrf.mxu3 }
 0xa2a   :  { %3242 = vrot.lane.b32.xlu0 %v3081_v3, %s8561_s30  ;;  %3082 = vrot.lane.b32.xlu2 %v3081_v3, %s8560_s0  ;;  %v3033_v5 = vadd.f32 %v3032_v9, %v2968_v61  ;;  %v3076_v23 = vpack.c.b16 %v3075_v57, %v3074_v60 }
 0xa2b   :  { %v3053_v12 = vpop.f32.mrf.mxu0 }
 0xa2c   :  { %v3054_v14 = vadd.f32 %v3053_v12, %v2969_v28  ;;  %v3066_v26 = vpack.c.bf16 %v3033_v5, %v3033_v5  ;;  %v3058_v17 = vmul.f32 0.17677669, %v3033_v5 }
 0xa2e   :  { %v3071_v29 = vpack.c.bf16 %v3054_v14, %v3054_v14  ;;  %v3111_v49 = vunpack.c.l.b16 %v3066_v26  ;;  %v3062_v21 = vpack.c.bf16 %v3058_v17, %v3058_v17 }
 0xa30   :  { %v3220_v43 = vunpack.c.l.b16 %v3071_v29  ;;  %v3106_v42 = vunpack.c.l.b16 %v3062_v21 }
 0xa31   :  { %v3034_v11 = vpop.f32.mrf.mxu3 }
 0xa32   :  { %v9990_v20 = vpack.c.b16 %v3220_v43, %v3219_v4  ;;  %v3035_v8 = vadd.f32 %v3034_v11, %v2968_v61  ;;  %3240 = vrot.lane.b32.xlu2 %v3076_v23, %s8562_s16 }
 0xa34   :  { %v3059_v31 = vmul.f32 0.17677669, %v3035_v8  ;;  %v3067_v48 = vpack.c.bf16 %v3035_v8, %v3035_v8  ;;  %3233 = vmatpush.bf16.msrb.mxu3 %v9990_v20 }
 0xa36   :  { %v3112_v30 = vunpack.c.l.b16 %v3067_v48  ;;  %v3063_v32 = vpack.c.bf16 %v3059_v31, %v3059_v31 }
 0xa38   :  { %v3113_v40 = vpack.c.b16 %v3112_v30, %v3111_v49  ;;  %v3107_v25 = vunpack.c.l.b16 %v3063_v32 }
 0xa3a   :  { %3114 = vrot.lane.b32.xlu1 %v3113_v40, %s8560_s0  ;;  %3266 = vrot.lane.b32.xlu0 %v3113_v40, %s8561_s30  ;;  %v3108_v34 = vpack.c.b16 %v3107_v25, %v3106_v42 }
 0xa42   :  { %3264 = vrot.lane.b32.xlu1 %v3108_v34, %s8562_s16 }
 0xa84   :  { %v3083_v38 = vpop.permute.xlu2 %3082 }
 0xa85   :  { %v3088_v22 = vsel %vm184_vm1, %v3083_v38, 0 }
 0xa86   :  { %3097 = vmatpush.bf16.xpose.msrb.mxu1 %v3088_v22 }
 0xa8c   :  { %v3241_v54 = vpop.permute.xlu2 %3240 }
 0xa8d   :  { %6833 = vmatmul.msk.bf16.vlgmr.msrb.gmra.mxu1 %vm184_vm1, %v3076_v23 }
 0xa9c   :  { %v3243_v41 = vpop.permute.xlu0 %3242 }
 0xa9d   :  { %v3248_v47 = vsel %vm184_vm1, %v3243_v41, 0 }
 0xa9e   :  { %3257 = vmatpush.bf16.xpose.msra.mxu0 %v3248_v47 }
 0xaa5   :  { %6837 = vmatmul.msk.bf16.vlgmr.msra.gmra.mxu0 %vm184_vm1, %v3241_v54 }
 0xaac   :  { %v3115_v58 = vpop.permute.xlu1 %3114  ;;  %v3267_v33 = vpop.permute.xlu0 %3266 }
 0xaad   :  { %v3120_v55 = vsel %vm184_vm1, %v3115_v58, 0  ;;  %v3272_v28 = vsel %vm184_vm1, %v3267_v33, 0 }
 0xaae   :  { %3129 = vmatpush.bf16.xpose.msra.mxu1 %v3120_v55 }
 0xab4   :  { %v3265_v37 = vpop.permute.xlu1 %3264 }
 0xab5   :  { %6834 = vmatmul.msk.bf16.vlgmr.msra.gmra.mxu1 %vm184_vm1, %v3108_v34 }
 0xab6   :  { %3281 = vmatpush.bf16.xpose.msrb.mxu1 %v3272_v28 }
 0xac5   :  { %6838 = vmatmul.msk.bf16.vlgmr.msrb.gmra.mxu1 %vm184_vm1, %v3265_v37 }
 0xb0a   :  { %v3099_v50 = vpop.f32.mrf.mxu1 }
 0xb0b   :  { %v3136_v61 = vsel %vm237_vm2, %v3099_v50, -inf }
 0xb0c   :  { %3137 = vmax.xlane.f32.xlu2 %v3136_v61 }
 0xb12   :  { %v3101_v18 = vpop.f32.mrf.mxu1 }
 0xb13   :  { %v3139_v19 = vsel %vm237_vm2, %v3101_v18, -inf }
 0xb14   :  { %3140 = vmax.xlane.f32.xlu0 %v3139_v19 }
 0xb22   :  { %v3259_v13 = vpop.f32.mrf.mxu0 }
 0xb23   :  { %v3288_v44 = vsel %vm237_vm2, %v3259_v13, -inf }
 0xb24   :  { %3289 = vmax.xlane.f32.xlu0 %v3288_v44 }
 0xb2a   :  { %v3261_v36 = vpop.f32.mrf.mxu0 }
 0xb2b   :  { %v3291_v27 = vsel %vm237_vm2, %v3261_v36, -inf }
 0xb32   :  { %v3131_v46 = vpop.f32.mrf.mxu1 }
 0xb33   :  { %v3142_v51 = vsel %vm237_vm2, %v3131_v46, -inf }
 0xb34   :  { %3143 = vmax.xlane.f32.xlu1 %v3142_v51 }
 0xb3a   :  { %v3133_v63 = vpop.f32.mrf.mxu1 }
 0xb3b   :  { %v3145_v24 = vsel %vm237_vm2, %v3133_v63, -inf }
 0xb3c   :  { %3292 = vmax.xlane.f32.xlu1 %v3291_v27  ;;  %3146 = vmax.xlane.f32.xlu2 %v3145_v24 }
 0xb42   :  { %v3283_v62 = vpop.f32.mrf.mxu1 }
 0xb43   :  { %v3294_v52 = vsel %vm237_vm2, %v3283_v62, -inf }
 0xb44   :  { %3295 = vmax.xlane.f32.xlu2 %v3294_v52 }
 0xb4a   :  { %v3285_v16 = vpop.f32.mrf.mxu1 }
 0xb4b   :  { %v3297_v53 = vsel %vm237_vm2, %v3285_v16, -inf }
 0xb4c   :  { %3298 = vmax.xlane.f32.xlu0 %v3297_v53 }
 0xb7f   :  { %v3138_v45 = vpop.xlane.xlu2 %3137 }
 0xb80   :  { %v3148_v15 = vsub.f32 %v3099_v50, %v3138_v45 }
 0xb82   :  { %v3152_v6 = vmul.f32 1.442695, %v3148_v15 }
 0xb84   :  { %8512 = vpow2.f32 %v3152_v6 }
 0xb87   :  { %v3141_v9 = vpop.xlane.xlu0 %3140 }
 0xb88   :  { %v3149_v57 = vsub.f32 %v3101_v18, %v3141_v9 }
 0xb8a   :  { %v8513_v59 = vpop.eup %8512  ;;  %v3154_v14 = vmul.f32 1.442695, %v3149_v57 }
 0xb8b   :  { %v3160_v3 = vsel %vm237_vm2, %v8513_v59, 0.0 }
 0xb8c   :  { %3161 = vadd.xlane.f32.xlu1 %v3160_v3 }
 0xb97   :  { %v3290_v7 = vpop.xlane.xlu0 %3289 }
 0xb98   :  { %v3300_v12 = vsub.f32 %v3259_v13, %v3290_v7 }
 0xb9a   :  { %v3304_v2 = vmul.f32 1.442695, %v3300_v12 }
 0xb9c   :  { %8514 = vpow2.f32 %v3304_v2 }
 0xb9d   :  { %8516 = vpow2.f32 %v3154_v14 }
 0xba2   :  { %v10014_v60 = vpop.eup %8514 }
 0xba3   :  { %v3312_v5 = vsel %vm237_vm2, %v10014_v60, 0.0  ;;  %v8517_v4 = vpop.eup %8516 }
 0xba4   :  { %3313 = vadd.xlane.f32.xlu2 %v3312_v5  ;;  %v3163_v11 = vsel %vm237_vm2, %v8517_v4, 0.0 }
 0xba7   :  { %v3144_v29 = vpop.xlane.xlu1 %3143 }
 0xba8   :  { %v3150_v43 = vsub.f32 %v3131_v46, %v3144_v29 }
 0xbaa   :  { %v3156_v23 = vmul.f32 1.442695, %v3150_v43 }
 0xbac   :  { %8518 = vpow2.f32 %v3156_v23  ;;  %3164 = vadd.xlane.f32.xlu2 %v3163_v11 }
 0xbaf   :  { %v3293_v26 = vpop.xlane.xlu1 %3292  ;;  %v3147_v8 = vpop.xlane.xlu2 %3146 }
 0xbb0   :  { %v3301_v31 = vsub.f32 %v3261_v36, %v3293_v26  ;;  %v3151_v48 = vsub.f32 %v3133_v63, %v3147_v8 }
 0xbb2   :  { %v8519_v17 = vpop.eup %8518  ;;  %v3306_v49 = vmul.f32 1.442695, %v3301_v31  ;;  %v3158_v30 = vmul.f32 1.442695, %v3151_v48 }
 0xbb3   :  { %v3166_v32 = vsel %vm237_vm2, %v8519_v17, 0.0 }
 0xbb4   :  { %8520 = vpow2.f32 %v3306_v49  ;;  %3167 = vadd.xlane.f32.xlu0 %v3166_v32 }
 0xbb5   :  { %8522 = vpow2.f32 %v3158_v30 }
 0xbb7   :  { %v3296_v40 = vpop.xlane.xlu2 %3295 }
 0xbb8   :  { %v3302_v21 = vsub.f32 %v3283_v62, %v3296_v40 }
 0xbba   :  { %v8521_v25 = vpop.eup %8520  ;;  %v3308_v42 = vmul.f32 1.442695, %v3302_v21 }
 0xbbb   :  { %v8523_v34 = vpop.eup %8522  ;;  %v3315_v38 = vsel %vm237_vm2, %v8521_v25, 0.0 }
 0xbbc   :  { %8524 = vpow2.f32 %v3308_v42  ;;  %3316 = vadd.xlane.f32.xlu0 %v3315_v38  ;;  %v3169_v22 = vsel %vm237_vm2, %v8523_v34, 0.0  ;;  %v8227_v42 = vld [vmem:[%s11183_s3 + $0x30] sm:$0xff]  ;;  %v8226_v38 = vld [vmem:[%s11183_s3 + $0x28] sm:$0xff] }
 0xbbd   :  { %3170 = vadd.xlane.f32.xlu1 %v3169_v22 }
 0xbbf   :  { %v3299_v41 = vpop.xlane.xlu0 %3298 }
 0xbc0   :  { %v3303_v47 = vsub.f32 %v3285_v16, %v3299_v41 }
 0xbc2   :  { %v8525_v54 = vpop.eup %8524  ;;  %v3310_v58 = vmul.f32 1.442695, %v3303_v47 }
 0xbc3   :  { %v3318_v33 = vsel %vm237_vm2, %v8525_v54, 0.0 }
 0xbc4   :  { %8526 = vpow2.f32 %v3310_v58  ;;  %3319 = vadd.xlane.f32.xlu2 %v3318_v33 }
 0xbca   :  { %v8527_v55 = vpop.eup %8526 }
 0xbcb   :  { %v3321_v28 = vsel %vm237_vm2, %v8527_v55, 0.0 }
 0xbcc   :  { %3322 = vadd.xlane.f32.xlu0 %v3321_v28 }
 0xbd6   :  { %3341 = vrot.lane.b32.xlu1 %v9985_v1, %s8562_s16 }
 0xbdc   :  { %3366 = vrot.lane.b32.xlu2 %v9990_v20, %s8562_s16 }
 0xbff   :  { %v3162_v37 = vpop.xlane.xlu1 %3161 }
 0xc00   :  { %8528 = vrcp.f32 %v3162_v37  ;;  %v8225_v37 = vld [vmem:[%s11183_s3 + $0x20] sm:$0xff] }
 0xc06   :  { %v8529_v18 = vpop.eup %8528 }
 0xc07   :  { %v3176_v19 = vmul.f32 %v8529_v18, %v8513_v59 }
 0xc09   :  { %v3180_v44 = vpack.c.bf16 %v3176_v19, %v3176_v19 }
 0xc0b   :  { %v3186_v63 = vunpack.c.l.b16 %v3180_v44 }
 0xc17   :  { %v3314_v50 = vpop.xlane.xlu2 %3313 }
 0xc1f   :  { %v3165_v61 = vpop.xlane.xlu2 %3164 }
 0xc20   :  { %8530 = vrcp.f32 %v3165_v61 }
 0xc26   :  { %v8531_v13 = vpop.eup %8530 }
 0xc27   :  { %v3177_v46 = vmul.f32 %v8531_v13, %v8517_v4  ;;  %v3168_v51 = vpop.xlane.xlu0 %3167 }
 0xc28   :  { %8532 = vrcp.f32 %v3168_v51 }
 0xc29   :  { %v3181_v36 = vpack.c.bf16 %v3177_v46, %v3177_v46 }
 0xc2b   :  { %v3187_v27 = vunpack.c.l.b16 %v3181_v36 }
 0xc2d   :  { %v3188_v24 = vpack.c.b16 %v3187_v27, %v3186_v63 }
 0xc2e   :  { %v8533_v20 = vpop.eup %8532 }
 0xc2f   :  { %6835 = vmatmul.msk.bf16.vlgmr.msrb.gmra.mxu2 %vm237_vm2, %v3188_v24  ;;  %v3317_v62 = vpop.xlane.xlu0 %3316  ;;  %v3178_v52 = vmul.f32 %v8533_v20, %v8519_v17 }
 0xc30   :  { %v3171_v1 = vpop.xlane.xlu1 %3170 }
 0xc31   :  { %8534 = vrcp.f32 %v3171_v1  ;;  %v3182_v45 = vpack.c.bf16 %v3178_v52, %v3178_v52  ;;  %v8455_v1 = vld [vmem:[%s11182_s4 + $0x1] ss:$0 sm:$0xff] }
 0xc32   :  { %8536 = vrcp.f32 %v3317_v62 }
 0xc33   :  { %8538 = vrcp.f32 %v3314_v50  ;;  %v3214_v3 = vunpack.c.l.b16 %v3182_v45 }
 0xc37   :  { %v8535_v16 = vpop.eup %8534  ;;  %v3320_v53 = vpop.xlane.xlu2 %3319 }
 0xc38   :  { %v3179_v15 = vmul.f32 %v8535_v16, %v8523_v34  ;;  %8540 = vrcp.f32 %v3320_v53  ;;  %v8537_v59 = vpop.eup %8536 }
 0xc39   :  { %v8539_v7 = vpop.eup %8538  ;;  %v3329_v12 = vmul.f32 %v8537_v59, %v8521_v25  ;;  %v8228_v25 = vld [vmem:[%s11183_s3 + $0x38] sm:$0xff] }
 0xc3a   :  { %v3183_v6 = vpack.c.bf16 %v3179_v15, %v3179_v15  ;;  %v3328_v29 = vmul.f32 %v8539_v7, %v10014_v60  ;;  %3456 = vmatpush.bf16.msrb.mxu0 %v8228_v25  ;;  %v8285_v25 = vld [vmem:[%s11186_s9 + $0x3bc] sm:$0xf0] }
 0xc3b   :  { %v3333_v4 = vpack.c.bf16 %v3329_v12, %v3329_v12 }
 0xc3c   :  { %v3215_v9 = vunpack.c.l.b16 %v3183_v6  ;;  %v3332_v23 = vpack.c.bf16 %v3328_v29, %v3328_v29 }
 0xc3d   :  { %v3339_v26 = vunpack.c.l.b16 %v3333_v4 }
 0xc3e   :  { %v3216_v57 = vpack.c.b16 %v3215_v9, %v3214_v3  ;;  %v8541_v5 = vpop.eup %8540  ;;  %v3338_v48 = vunpack.c.l.b16 %v3332_v23  ;;  %3457 = vmatpush.bf16.msrb.mxu0 %v8227_v42  ;;  %v8277_v42 = vld [vmem:[%s11186_s9 + $0x384] sm:$0xf] }
 0xc3f   :  { %v3323_v2 = vpop.xlane.xlu0 %3322  ;;  %v3367_v14 = vpop.permute.xlu2 %3366  ;;  %v3330_v43 = vmul.f32 %v8541_v5, %v8525_v54 }
 0xc40   :  { %8542 = vrcp.f32 %v3323_v2  ;;  %6836 = vmatmul.msk.bf16.vlgmr.msrb.gmra.mxu3 %vm237_vm2, %v3216_v57  ;;  %v3340_v30 = vpack.c.b16 %v3339_v26, %v3338_v48 }
 0xc41   :  { %3379 = vmatpush.bf16.msra.mxu3 %v3367_v14  ;;  %v3334_v8 = vpack.c.bf16 %v3330_v43, %v3330_v43 }
 0xc42   :  { %3458 = vmatpush.bf16.msrb.mxu0 %v8226_v38  ;;  %v7132_v38 = vld [vmem:[%s11186_s9 + $0x3c0] sm:$0xf0] }
 0xc43   :  { %v3363_v32 = vunpack.c.l.b16 %v3334_v8 }
 0xc46   :  { %v8543_v11 = vpop.eup %8542  ;;  %3459 = vmatpush.bf16.msrb.mxu0 %v8225_v37  ;;  %v8269_v37 = vld [vmem:[%s11186_s9 + $0x33c] sm:$0xf0] }
 0xc47   :  { %v3331_v31 = vmul.f32 %v8543_v11, %v8527_v55 }
 0xc48   :  { %v3342_v17 = vpop.permute.xlu1 %3341 }
 0xc49   :  { %v3335_v49 = vpack.c.bf16 %v3331_v31, %v3331_v31  ;;  %3354 = vmatpush.bf16.msra.mxu2 %v3342_v17 }
 0xc4b   :  { %v3364_v40 = vunpack.c.l.b16 %v3335_v49 }
 0xc4c   :  { %6839 = vmatmul.msk.bf16.vlgmr.msra.gmra.mxu2 %vm237_vm2, %v3340_v30 }
 0xc4d   :  { %v3365_v60 = vpack.c.b16 %v3364_v40, %v3363_v32 }
 0xc50   :  { %6840 = vmatmul.msk.bf16.vlgmr.msra.gmra.mxu3 %vm237_vm2, %v3365_v60 }
 0xcb2   :  { %v3207_v21 = vpop.f32.mrf.mxu2 }
 0xcba   :  { %v3209_v22 = vpop.f32.mrf.mxu2 }
 0xcc3   :  { %v3235_v34 = vpop.f32.mrf.mxu3 }
 0xccb   :  { %v3237_v41 = vpop.f32.mrf.mxu3 }
 0xccf   :  { %v3356_v47 = vpop.f32.mrf.mxu2 }
 0xcd3   :  { %v3381_v54 = vpop.f32.mrf.mxu3 }
 0xcd7   :  { %v3358_v58 = vpop.f32.mrf.mxu2 }
 0xcd8   :  { %v8439_v33 = vpack.i.bf16 %v3358_v58, %v3356_v47  ;;  %v7135_v47 = vor.u32 %v8277_v42, %v7132_v38  ;;  %v8278_v58 = vld [vmem:[%s11186_s9 + $0x38c] sm:$0xf] }
 0xcda   :  { %8440 = vrot.lane.b32.xlu0 %v8439_v33, %s8561_s30  ;;  %v7140_v33 = vld [vmem:[%s11186_s9 + $0x3c8] sm:$0xf0]  ;;  %4034 = vmatpush.bf16.msrb.mxu2 %v7135_v47  ;;  %v8279_v47 = vld [vmem:[%s11186_s9 + $0x394] sm:$0xf] }
 0xcdb   :  { %v3383_v55 = vpop.f32.mrf.mxu3 }
 0xcdc   :  { %v8444_v28 = vpack.i.bf16 %v3383_v55, %v3381_v54  ;;  %v7143_v55 = vor.u32 %v8278_v58, %v7140_v33 }
 0xcde   :  { %8445 = vrot.lane.b32.xlu1 %v8444_v28, %s8561_s30  ;;  %v7066_v28 = vld [vmem:[%s11186_s9 + $0x300] sm:$0xf]  ;;  %4072 = vmatpush.bf16.msra.mxu0 %v7143_v55  ;;  %v7154_v55 = vld [vmem:[%s11186_s9 + $0x398] sm:$0xf] }
 0xd4c   :  { %v8441_v50 = vpop.permute.xlu0 %8440 }
 0xd4d   :  { %v8443_v61 = vunpack.i.h.bf16 %v8441_v50  ;;  %v8442_v18 = vunpack.i.l.bf16 %v8441_v50  ;;  %v8261_v50 = vld [vmem:[%s11186_s9 + $0x304] sm:$0xf] }
 0xd4f   :  { %v3403_v19 = vsel %vm184_vm1, %v3209_v22, %v8443_v61  ;;  %v3402_v13 = vsel %vm184_vm1, %v3207_v21, %v8442_v18  ;;  %v7130_v21 = vld [vmem:[%s11186_s9 + $0x380] sm:$0xf]  ;;  %v7138_v22 = vld [vmem:[%s11186_s9 + $0x388] sm:$0xf]  ;;  %v7067_v61 = vor.u32 %v8269_v37, %v7066_v28  ;;  %v7068_v18 = vld [vmem:[%s11186_s9 + $0x340] sm:$0xf0] }
 0xd50   :  { %v3406_v44 = vpack.c.bf16 %v3403_v19, %v3402_v13  ;;  %v8446_v46 = vpop.permute.xlu1 %8445  ;;  %v7074_v19 = vld [vmem:[%s11186_s9 + $0x308] sm:$0xf]  ;;  %v8288_v28 = vld [vmem:[%s11186_s9 + $0x3d4] sm:$0xf0]  ;;  %v7146_v37 = vld [vmem:[%s11186_s9 + $0x390] sm:$0xf] }
 0xd51   :  { %v8448_v51 = vunpack.i.h.bf16 %v8446_v46  ;;  %v8447_v36 = vunpack.i.l.bf16 %v8446_v46  ;;  %v8270_v13 = vld [vmem:[%s11186_s9 + $0x344] sm:$0xf0] }
 0xd52   :  { %6866 = vmatmul.msk.bf16.vlgmr.msrb.gmra.mxu0 %vm111_vm0, %v3406_v44  ;;  %v7071_v44 = vor.u32 %v8261_v50, %v7068_v18  ;;  %v7075_v46 = vor.u32 %v8270_v13, %v7074_v19  ;;  %v7155_v50 = vor.u32 %v8288_v28, %v7154_v55  ;;  %v8280_v18 = vld [vmem:[%s11186_s9 + $0x39c] sm:$0xf] }
 0xd53   :  { %v3405_v63 = vsel %vm184_vm1, %v3237_v41, %v8448_v51  ;;  %v3404_v27 = vsel %vm184_vm1, %v3235_v34, %v8447_v36  ;;  %v7131_v34 = vor.u32 %v8285_v25, %v7130_v21  ;;  %v8286_v41 = vld [vmem:[%s11186_s9 + $0x3c4] sm:$0xf0]  ;;  %v8262_v51 = vld [vmem:[%s11186_s9 + $0x30c] sm:$0xf]  ;;  %v7156_v19 = vld [vmem:[%s11186_s9 + $0x3d8] sm:$0xf0] }
 0xd54   :  { %v3407_v24 = vpack.c.bf16 %v3405_v63, %v3404_v27  ;;  %v7139_v54 = vor.u32 %v8286_v41, %v7138_v22  ;;  %v7076_v36 = vld [vmem:[%s11186_s9 + $0x348] sm:$0xf0]  ;;  %4035 = vmatpush.bf16.msrb.mxu2 %v7071_v44  ;;  %v7002_v27 = vld [vmem:[%s11186_s9 + $0x280] sm:$0xf]  ;;  %v8232_v55 = vld [vmem:[%s11186_s9 + $0x21c] sm:$0xf] }
 0xd55   :  { %4015 = vmatpush.bf16.msra.mxu1 %v7131_v34  ;;  %v7079_v63 = vor.u32 %v8262_v51, %v7076_v36  ;;  %v7159_v36 = vor.u32 %v8280_v18, %v7156_v19  ;;  %v6964_v28 = vld [vmem:[%s11186_s9 + $0x258] sm:$0xf0] }
 0xd56   :  { %4053 = vmatpush.bf16.msrb.mxu3 %v7139_v54  ;;  %v7148_v54 = vld [vmem:[%s11186_s9 + $0x3d0] sm:$0xf0] }
 0xd57   :  { %4073 = vmatpush.bf16.msra.mxu0 %v7079_v63  ;;  %v7151_v33 = vor.u32 %v8279_v47, %v7148_v54  ;;  %v7082_v63 = vld [vmem:[%s11186_s9 + $0x310] sm:$0xf]  ;;  %v8240_v54 = vld [vmem:[%s11186_s9 + $0x254] sm:$0xf0] }
 0xd59   :  { %4016 = vmatpush.bf16.msra.mxu1 %v7067_v61  ;;  %v8287_v61 = vld [vmem:[%s11186_s9 + $0x3cc] sm:$0xf0] }
 0xd5a   :  { %4054 = vmatpush.bf16.msrb.mxu3 %v7075_v46  ;;  %v7147_v51 = vor.u32 %v8287_v61, %v7146_v37  ;;  %v6967_v61 = vor.u32 %v8232_v55, %v6964_v28  ;;  %v6972_v55 = vld [vmem:[%s11186_s9 + $0x260] sm:$0xf0]  ;;  %v6978_v28 = vld [vmem:[%s11186_s9 + $0x228] sm:$0xf] }
 0xd62   :  { %6867 = vmatmul.msk.bf16.gmra.mxu0 %vm111_vm0, %v3407_v24  ;;  %v8253_v24 = vld [vmem:[%s11186_s9 + $0x2bc] sm:$0xf0] }
 0xdcf   :  { %v3461_v20 = vpop.f32.mrf.mxu0 }
 0xdd0   :  { %v3462_v62 = vadd.f32 %v8455_v1, %v3461_v20  ;;  %v7003_v20 = vor.u32 %v8253_v24, %v7002_v27  ;;  %v8271_v27 = vld [vmem:[%s11186_s9 + $0x34c] sm:$0xf0]  ;;  %v10237_v24 = vld [vmem:[%s11184_s5 + $0x1] ss:$0 sm:$0xff] }
 0xdd2   :  { %v3471_v52 = vadd.f32 %v3462_v62, %v9964_v10  ;;  %v7004_v62 = vld [vmem:[%s11186_s9 + $0x2c0] sm:$0xf0]  ;;  %4017 = vmatpush.bf16.msra.mxu1 %v7003_v20  ;;  %v8263_v20 = vld [vmem:[%s11186_s9 + $0x314] sm:$0xf] }
 0xdd4   :  { %v3479_v16 = vsel %vm111_vm0, %v3471_v52, 0.0 }
 0xdd5   :  { %3480 = vadd.xlane.f32.xlu0 %v3479_v16  ;;  %v8254_v16 = vld [vmem:[%s11186_s9 + $0x2c4] sm:$0xf0] }
 0xdd7   :  { %v3463_v53 = vpop.f32.mrf.mxu0 }
 0xdd8   :  { %v3464_v45 = vadd.f32 %v8455_v1, %v3463_v53 }
 0xdda   :  { %v3472_v15 = vadd.f32 %v3464_v45, %v9966_v39 }
 0xddc   :  { %v3482_v6 = vsel %vm111_vm0, %v3472_v15, 0.0 }
 0xddd   :  { %3483 = vadd.xlane.f32.xlu1 %v3482_v6  ;;  %v7012_v6 = vld [vmem:[%s11186_s9 + $0x2c8] sm:$0xf0] }
 0xddf   :  { %v3466_v59 = vpop.f32.mrf.mxu0 }
 0xde0   :  { %v3467_v3 = vadd.f32 %v8455_v1, %v3466_v59 }
 0xde2   :  { %v3473_v9 = vadd.f32 %v3467_v3, %v9974_v35 }
 0xde4   :  { %v3485_v7 = vsel %vm111_vm0, %v3473_v9, 0.0 }
 0xde5   :  { %3486 = vadd.xlane.f32.xlu2 %v3485_v7  ;;  %v6938_v7 = vld [vmem:[%s11186_s9 + $0x200] sm:$0xf] }
 0xde7   :  { %v3468_v12 = vpop.f32.mrf.mxu0 }
 0xde8   :  { %v3469_v57 = vadd.f32 %v8455_v1, %v3468_v12  ;;  %v8245_v1 = vld [vmem:[%s11186_s9 + $0x284] sm:$0xf]  ;;  %v8237_v12 = vld [vmem:[%s11186_s9 + $0x23c] sm:$0xf0] }
 0xde9   :  { %v7007_v53 = vor.u32 %v8245_v1, %v7004_v62  ;;  %v7084_v62 = vld [vmem:[%s11186_s9 + $0x350] sm:$0xf0] }
 0xdea   :  { %v3474_v10 = vadd.f32 %v3469_v57, %v9976_v56  ;;  %v8229_v57 = vld [vmem:[%s11186_s9 + $0x204] sm:$0xf] }
 0xdeb   :  { %4036 = vmatpush.bf16.msrb.mxu2 %v7007_v53  ;;  %v7083_v53 = vor.u32 %v8271_v27, %v7082_v63 }
 0xdec   :  { %v3488_v2 = vsel %vm111_vm0, %v3474_v10, 0.0 }
 0xded   :  { %3489 = vadd.xlane.f32.xlu0 %v3488_v2  ;;  %v6940_v2 = vld [vmem:[%s11186_s9 + $0x240] sm:$0xf0] }
 0xe48   :  { %v3481_v14 = vpop.xlane.xlu0 %3480 }
 0xe49   :  { %v3491_v39 = vmul.f32 %v3481_v14, %v8834_v0  ;;  %v6946_v14 = vld [vmem:[%s11186_s9 + $0x208] sm:$0xf] }
 0xe4b   :  { %v10065_v5 = vsub.f32 %v3471_v52, %v3491_v39  ;;  %v7010_v52 = vld [vmem:[%s11186_s9 + $0x288] sm:$0xf] }
 0xe4c   :  { %v7011_v45 = vor.u32 %v8254_v16, %v7010_v52  ;;  %v8238_v39 = vld [vmem:[%s11186_s9 + $0x244] sm:$0xf0]  ;;  %v7090_v52 = vld [vmem:[%s11186_s9 + $0x318] sm:$0xf] }
 0xe4d   :  { %v3499_v29 = vmul.f32 %v10065_v5, %v10065_v5 }
 0xe4e   :  { %4055 = vmatpush.bf16.msrb.mxu3 %v7011_v45  ;;  %v7087_v45 = vor.u32 %v8263_v20, %v7084_v62  ;;  %v7170_v62 = vld [vmem:[%s11186_s9 + $0x3a8] sm:$0xf] }
 0xe4f   :  { %v3503_v35 = vsel %vm111_vm0, %v3499_v29, 0.0 }
 0xe50   :  { %3504 = vadd.xlane.f32.xlu1 %v3503_v35  ;;  %v3484_v4 = vpop.xlane.xlu1 %3483  ;;  %v6943_v35 = vor.u32 %v8229_v57, %v6940_v2  ;;  %v7018_v57 = vld [vmem:[%s11186_s9 + $0x290] sm:$0xf] }
 0xe51   :  { %v3492_v43 = vmul.f32 %v3484_v4, %v8834_v0  ;;  %v6947_v4 = vor.u32 %v8238_v39, %v6946_v14  ;;  %v8255_v14 = vld [vmem:[%s11186_s9 + $0x2cc] sm:$0xf0]  ;;  %v8247_v39 = vld [vmem:[%s11186_s9 + $0x294] sm:$0xf] }
 0xe52   :  { %4037 = vmatpush.bf16.msrb.mxu2 %v6943_v35  ;;  %v10283_v35 = vld [vmem:[%s11185_s6 + $0x1] ss:$0 sm:$0xff] }
 0xe53   :  { %v10071_v23 = vsub.f32 %v3472_v15, %v3492_v43  ;;  %v8246_v15 = vld [vmem:[%s11186_s9 + $0x28c] sm:$0xf]  ;;  %4056 = vmatpush.bf16.msrb.mxu3 %v6947_v4  ;;  %v7100_v4 = vld [vmem:[%s11186_s9 + $0x360] sm:$0xf0] }
 0xe54   :  { %v7015_v3 = vor.u32 %v8246_v15, %v7012_v6  ;;  %v8230_v43 = vld [vmem:[%s11186_s9 + $0x20c] sm:$0xf]  ;;  %v8272_v15 = vld [vmem:[%s11186_s9 + $0x354] sm:$0xf0]  ;;  %v8264_v6 = vld [vmem:[%s11186_s9 + $0x31c] sm:$0xf] }
 0xe55   :  { %v3500_v56 = vmul.f32 %v10071_v23, %v10071_v23 }
 0xe56   :  { %4074 = vmatpush.bf16.msra.mxu0 %v7015_v3  ;;  %4110 = vmatpush.bf16.msra.mxu2 %v7151_v33 }
 0xe57   :  { %v3506_v11 = vsel %vm111_vm0, %v3500_v56, 0.0  ;;  %v6948_v56 = vld [vmem:[%s11186_s9 + $0x248] sm:$0xf0]  ;;  %4129 = vmatpush.bf16.msra.mxu3 %v7155_v50 }
 0xe58   :  { %3507 = vadd.xlane.f32.xlu2 %v3506_v11  ;;  %v3487_v26 = vpop.xlane.xlu2 %3486  ;;  %v6951_v11 = vor.u32 %v8230_v43, %v6948_v56  ;;  %v7019_v43 = vor.u32 %v8255_v14, %v7018_v57  ;;  %v7098_v14 = vld [vmem:[%s11186_s9 + $0x320] sm:$0xf] }
 0xe59   :  { %v3493_v8 = vmul.f32 %v3487_v26, %v8834_v0 }
 0xe5a   :  { %4075 = vmatpush.bf16.msra.mxu0 %v6951_v11  ;;  %4111 = vmatpush.bf16.msra.mxu2 %v7087_v45  ;;  %v7026_v11 = vld [vmem:[%s11186_s9 + $0x298] sm:$0xf] }
 0xe5b   :  { %v10077_v31 = vsub.f32 %v3473_v9, %v3493_v8 }
 0xe5d   :  { %v3501_v48 = vmul.f32 %v10077_v31, %v10077_v31 }
 0xe5e   :  { %4148 = vmatpush.bf16.msrb.mxu0 %v7159_v36 }
 0xe5f   :  { %v3509_v17 = vsel %vm111_vm0, %v3501_v48, 0.0 }
 0xe60   :  { %v3490_v49 = vpop.xlane.xlu0 %3489  ;;  %3510 = vadd.xlane.f32.xlu0 %v3509_v17 }
 0xe61   :  { %v3494_v30 = vmul.f32 %v3490_v49, %v8834_v0 }
 0xe63   :  { %v10083_v32 = vsub.f32 %v3474_v10, %v3494_v30  ;;  %v6939_v10 = vor.u32 %v8237_v12, %v6938_v7  ;;  %v7091_v7 = vor.u32 %v8272_v15, %v7090_v52  ;;  %v7092_v12 = vld [vmem:[%s11186_s9 + $0x358] sm:$0xf0]  ;;  %v8290_v52 = vld [vmem:[%s11186_s9 + $0x3e4] sm:$0xf0] }
 0xe65   :  { %v3502_v40 = vmul.f32 %v10083_v32, %v10083_v32  ;;  %4018 = vmatpush.bf16.msra.mxu1 %v6939_v10  ;;  %4130 = vmatpush.bf16.msra.mxu3 %v7091_v7 }
 0xe67   :  { %v3512_v60 = vsel %vm111_vm0, %v3502_v40, 0.0 }
 0xe68   :  { %3513 = vadd.xlane.f32.xlu1 %v3512_v60 }
 0xe69   :  { %4091 = vmatpush.bf16.msrb.mxu1 %v7147_v51 }
 0xe6d   :  { %4092 = vmatpush.bf16.msrb.mxu1 %v7083_v53  ;;  %v7171_v53 = vor.u32 %v8290_v52, %v7170_v62  ;;  %v7178_v52 = vld [vmem:[%s11186_s9 + $0x3b0] sm:$0xf] }
 0xe71   :  { %4093 = vmatpush.bf16.msrb.mxu1 %v7019_v43  ;;  %v7106_v43 = vld [vmem:[%s11186_s9 + $0x328] sm:$0xf] }
 0xec3   :  { %v3505_v59 = vpop.xlane.xlu1 %3504 }
 0xec4   :  { %v3515_v9 = vmul.f32 %v3505_v59, %v8834_v0 }
 0xec6   :  { %v3519_v29 = vadd.f32 1e-05, %v3515_v9 }
 0xec8   :  { %8544 = vrsqrt.f32 %v3519_v29  ;;  %vm3529_vm2 = vweird.f32 %v3519_v29 }
 0xecb   :  { %v3508_v26 = vpop.xlane.xlu2 %3507 }
 0xecc   :  { %v3516_v8 = vmul.f32 %v3508_v26, %v8834_v0  ;;  %v8256_v26 = vld [vmem:[%s11186_s9 + $0x2d4] sm:$0xf0] }
 0xece   :  { %v8545_v48 = vpop.eup %8544  ;;  %v10186_v17 = vadd.f32 1e-05, %v3516_v8 }
 0xecf   :  { %v3524_v49 = vmul.f32 %v8545_v48, %v3519_v29  ;;  %vm3530_vm1 = vweird.f32 %v8545_v48  ;;  %v7020_v29 = vld [vmem:[%s11186_s9 + $0x2d0] sm:$0xf0] }
 0xed0   :  { %8546 = vrsqrt.f32 %v10186_v17  ;;  %vm10196_vm15 = vmor %vm3529_vm2, %vm3530_vm1  ;;  %vm3539_vm4 = vweird.f32 %v10186_v17  ;;  %v7023_v56 = vor.u32 %v8247_v39, %v7020_v29  ;;  %v8273_v39 = vld [vmem:[%s11186_s9 + $0x35c] sm:$0xf0]  ;;  %v8265_v29 = vld [vmem:[%s11186_s9 + $0x324] sm:$0xf] }
 0xed1   :  { %v3525_v30 = vmul.f32 %v8545_v48, %v3524_v49  ;;  %v8248_v49 = vld [vmem:[%s11186_s9 + $0x29c] sm:$0xf] }
 0xed2   :  { %4112 = vmatpush.bf16.msra.mxu2 %v7023_v56  ;;  %v8274_v56 = vld [vmem:[%s11186_s9 + $0x364] sm:$0xf0] }
 0xed3   :  { %v3526_v40 = vmul.f32 0.5, %v3525_v30  ;;  %v3511_v60 = vpop.xlane.xlu0 %3510  ;;  %v7028_v30 = vld [vmem:[%s11186_s9 + $0x2d8] sm:$0xf0] }
 0xed4   :  { %v3517_v21 = vmul.f32 %v3511_v60, %v8834_v0 }
 0xed5   :  { %v3527_v25 = vsub.f32 1.5, %v3526_v40  ;;  %v6954_v40 = vld [vmem:[%s11186_s9 + $0x210] sm:$0xf] }
 0xed6   :  { %v10190_v42 = vpop.eup %8546  ;;  %v10192_v34 = vadd.f32 1e-05, %v3517_v21 }
 0xed7   :  { %v3528_v38 = vmul.f32 %v8545_v48, %v3527_v25  ;;  %v3534_v22 = vmul.f32 %v10190_v42, %v10186_v17  ;;  %vm3540_vm3 = vweird.f32 %v10190_v42  ;;  %v7027_v17 = vor.u32 %v8256_v26, %v7026_v11 }
 0xed8   :  { %8548 = vrsqrt.f32 %v10192_v34  ;;  %vm10287_vm5 = vmor %vm3539_vm4, %vm3540_vm3  ;;  %v7031_v25 = vor.u32 %v8248_v49, %v7028_v30  ;;  %vm3549_vm7 = vweird.f32 %v10192_v34  ;;  %v7103_v11 = vor.u32 %v8265_v29, %v7100_v4  ;;  %v8257_v30 = vld [vmem:[%s11186_s9 + $0x2dc] sm:$0xf0]  ;;  %v7050_v29 = vld [vmem:[%s11186_s9 + $0x2b0] sm:$0xf] }
 0xed9   :  { %v3535_v58 = vmul.f32 %v10190_v42, %v3534_v22  ;;  %v3532_v13 = vsel %vm10196_vm15, %v8545_v48, %v3528_v38  ;;  %v8231_v38 = vld [vmem:[%s11186_s9 + $0x214] sm:$0xf]  ;;  %4131 = vmatpush.bf16.msra.mxu3 %v7027_v17  ;;  %v7107_v26 = vor.u32 %v8274_v56, %v7106_v43  ;;  %v7034_v17 = vld [vmem:[%s11186_s9 + $0x2a0] sm:$0xf]  ;;  %v8259_v4 = vld [vmem:[%s11186_s9 + $0x2ec] sm:$0xf0] }
 0xeda   :  { %v3563_v3 = vmul.f32 %v3532_v13, %v10065_v5  ;;  %v7095_v5 = vor.u32 %v8264_v6, %v7092_v12  ;;  %v6956_v22 = vld [vmem:[%s11186_s9 + $0x250] sm:$0xf0] }
 0xedb   :  { %v3536_v44 = vmul.f32 0.5, %v3535_v58  ;;  %v3514_v46 = vpop.xlane.xlu1 %3513  ;;  %v6959_v47 = vor.u32 %v8231_v38, %v6956_v22  ;;  %v8250_v38 = vld [vmem:[%s11186_s9 + $0x2ac] sm:$0xf]  ;;  %v7035_v22 = vor.u32 %v8257_v30, %v7034_v17  ;;  %v8251_v43 = vld [vmem:[%s11186_s9 + $0x2b4] sm:$0xf]  ;;  %v7051_v17 = vor.u32 %v8259_v4, %v7050_v29  ;;  %v8309_v29 = vld [vmem:[%s11187_s11 + $0x480] sm:$0xff] }
 0xedc   :  { %v3518_v1 = vmul.f32 %v3514_v46, %v8834_v0  ;;  %4149 = vmatpush.bf16.msrb.mxu0 %v7095_v5  ;;  %v3570_v60 = vmul.f32 %v10237_v24, %v3563_v3  ;;  %v7052_v56 = vld [vmem:[%s11186_s9 + $0x2f0] sm:$0xf0]  ;;  %v7060_v30 = vld [vmem:[%s11186_s9 + $0x2f8] sm:$0xf0] }
 0xedd   :  { %v3537_v16 = vsub.f32 1.5, %v3536_v44  ;;  %4113 = vmatpush.bf16.msra.mxu2 %v6959_v47  ;;  %v7044_v47 = vld [vmem:[%s11186_s9 + $0x2e8] sm:$0xf0]  ;;  %v8355_v4 = vld [vmem:[%s11187_s11 + $0x5f0] sm:$0xff] }
 0xede   :  { %v10256_v59 = vpop.eup %8548  ;;  %v10259_v9 = vadd.f32 1e-05, %v3518_v1  ;;  %v10336_v19 = vadd.f32 %v10283_v35, %v3570_v60  ;;  %v7164_v1 = vld [vmem:[%s11186_s9 + $0x3e0] sm:$0xf0] }
 0xedf   :  { %v3538_v10 = vmul.f32 %v10190_v42, %v3537_v16  ;;  %v3544_v2 = vmul.f32 %v10256_v59, %v10192_v34  ;;  %vm3550_vm6 = vweird.f32 %v10256_v59  ;;  %v8281_v34 = vld [vmem:[%s11186_s9 + $0x3a4] sm:$0xf] }
 0xee0   :  { %8550 = vrsqrt.f32 %v10259_v9  ;;  %4150 = vmatpush.bf16.msrb.mxu0 %v7031_v25  ;;  %vm3551_vm8 = vmor %vm3549_vm7, %vm3550_vm6  ;;  %v7167_v20 = vor.u32 %v8281_v34, %v7164_v1  ;;  %vm3559_vm10 = vweird.f32 %v10259_v9  ;;  %v7036_v60 = vld [vmem:[%s11186_s9 + $0x2e0] sm:$0xf0]  ;;  %v7042_v25 = vld [vmem:[%s11186_s9 + $0x2a8] sm:$0xf] }
 0xee1   :  { %v3542_v8 = vsel %vm10287_vm5, %v10190_v42, %v3538_v10  ;;  %v3545_v48 = vmul.f32 %v10256_v59, %v3544_v2  ;;  %v8239_v42 = vld [vmem:[%s11186_s9 + $0x24c] sm:$0xf0]  ;;  %v7172_v2 = vld [vmem:[%s11186_s9 + $0x3e8] sm:$0xf0]  ;;  %v7186_v34 = vld [vmem:[%s11186_s9 + $0x3b8] sm:$0xf] }
 0xee2   :  { %v3564_v21 = vmul.f32 %v3542_v8, %v10071_v23  ;;  %v6962_v23 = vld [vmem:[%s11186_s9 + $0x218] sm:$0xf]  ;;  %v6955_v50 = vor.u32 %v8239_v42, %v6954_v40  ;;  %v8266_v8 = vld [vmem:[%s11186_s9 + $0x32c] sm:$0xf]  ;;  %v8249_v40 = vld [vmem:[%s11186_s9 + $0x2a4] sm:$0xf] }
 0xee3   :  { %v3546_v41 = vmul.f32 0.5, %v3545_v48  ;;  %v6963_v33 = vor.u32 %v8240_v54, %v6962_v23  ;;  %v7108_v48 = vld [vmem:[%s11186_s9 + $0x368] sm:$0xf0]  ;;  %v8258_v42 = vld [vmem:[%s11186_s9 + $0x2e4] sm:$0xf0] }
 0xee4   :  { %v3571_v58 = vmul.f32 %v10237_v24, %v3564_v21  ;;  %4094 = vmatpush.bf16.msrb.mxu1 %v6955_v50  ;;  %4151 = vmatpush.bf16.msrb.mxu0 %v6967_v61  ;;  %v7111_v49 = vor.u32 %v8266_v8, %v7108_v48  ;;  %v7039_v21 = vor.u32 %v8249_v40, %v7036_v60  ;;  %v6970_v23 = vld [vmem:[%s11186_s9 + $0x220] sm:$0xf]  ;;  %v8234_v50 = vld [vmem:[%s11186_s9 + $0x22c] sm:$0xf]  ;;  %v8260_v8 = vld [vmem:[%s11186_s9 + $0x2f4] sm:$0xf0] }
 0xee5   :  { %v3547_v37 = vsub.f32 1.5, %v3546_v41  ;;  %4132 = vmatpush.bf16.msra.mxu3 %v6963_v33  ;;  %v7043_v41 = vor.u32 %v8258_v42, %v7042_v25  ;;  %v8241_v54 = vld [vmem:[%s11186_s9 + $0x25c] sm:$0xf0]  ;;  %v8233_v33 = vld [vmem:[%s11186_s9 + $0x224] sm:$0xf] }
 0xee6   :  { %v8551_v18 = vpop.eup %8550  ;;  %v10339_v13 = vadd.f32 %v10283_v35, %v3571_v58  ;;  %v7047_v58 = vor.u32 %v8250_v38, %v7044_v47  ;;  %v6980_v61 = vld [vmem:[%s11186_s9 + $0x268] sm:$0xf0]  ;;  %v8252_v48 = vld [vmem:[%s11186_s9 + $0x2bc] sm:$0xf]  ;;  %v6986_v40 = vld [vmem:[%s11186_s9 + $0x230] sm:$0xf] }
 0xee7   :  { %v3548_v44 = vmul.f32 %v10256_v59, %v3547_v37  ;;  %v3554_v46 = vmul.f32 %v8551_v18, %v10259_v9  ;;  %vm3560_vm9 = vweird.f32 %v8551_v18  ;;  %v7162_v9 = vld [vmem:[%s11186_s9 + $0x3a0] sm:$0xf]  ;;  %v8242_v37 = vld [vmem:[%s11186_s9 + $0x264] sm:$0xf0]  ;;  %v8243_v60 = vld [vmem:[%s11186_s9 + $0x26c] sm:$0xf0] }
 0xee8   :  { %v10346_v51 = vpack.c.bf16 %v10339_v13, %v10336_v19  ;;  %vm3561_vm11 = vmor %vm3559_vm10, %vm3560_vm9  ;;  %v8235_v25 = vld [vmem:[%s11186_s9 + $0x234] sm:$0xf]  ;;  %v6994_v38 = vld [vmem:[%s11186_s9 + $0x238] sm:$0xf] }
 0xee9   :  { %v3555_v36 = vmul.f32 %v8551_v18, %v3554_v46  ;;  %v3552_v63 = vsel %vm3551_vm8, %v10256_v59, %v3548_v44  ;;  %v6979_v44 = vor.u32 %v8242_v37, %v6978_v28  ;;  %v6971_v46 = vor.u32 %v8241_v54, %v6970_v23  ;;  %v6988_v42 = vld [vmem:[%s11186_s9 + $0x270] sm:$0xf0]  ;;  %v6996_v47 = vld [vmem:[%s11186_s9 + $0x278] sm:$0xf0] }
 0xeea   :  { %7192 = vmatmul.msk.bf16.vlgmr.msra.gmra.mxu1 %vm111_vm0, %v10346_v51  ;;  %7194 = vmatmul.msk.bf16.vlgmr.msrb.gmra.mxu2 %vm111_vm0, %v10346_v51  ;;  %v3565_v45 = vmul.f32 %v3552_v63, %v10077_v31  ;;  %v8283_v63 = vld [vmem:[%s11186_s9 + $0x3b4] sm:$0xf]  ;;  %v6991_v23 = vor.u32 %v8235_v25, %v6988_v42  ;;  %v8324_v28 = vld [vmem:[%s11187_s11 + $0x4f8] sm:$0xff] }
 0xeeb   :  { %v3556_v27 = vmul.f32 0.5, %v3555_v36  ;;  %7196 = vmatmul.msk.bf16.vlgmr.msrb.gmra.mxu3 %vm111_vm0, %v10346_v51  ;;  %7198 = vmatmul.msk.bf16.vlgmr.msra.gmra.mxu0 %vm111_vm0, %v10346_v51  ;;  %v6983_v36 = vor.u32 %v8234_v50, %v6980_v61  ;;  %v8299_v37 = vld [vmem:[%s11187_s11 + $0x430] sm:$0xff]  ;;  %v8308_v61 = vld [vmem:[%s11187_s11 + $0x478] sm:$0xff] }
 0xeec   :  { %4186 = vmatpush.bf16.msrb.mxu2 %v7167_v20  ;;  %4205 = vmatpush.bf16.msrb.mxu3 %v7171_v53  ;;  %v3572_v59 = vmul.f32 %v10237_v24, %v3565_v45  ;;  %v8292_v20 = vld [vmem:[%s11186_s9 + $0x3f4] sm:$0xf0]  ;;  %v8284_v53 = vld [vmem:[%s11186_s9 + $0x3bc] sm:$0xf]  ;;  %v8323_v50 = vld [vmem:[%s11187_s11 + $0x4f0] sm:$0xff] }
 0xeed   :  { %v3557_v16 = vsub.f32 1.5, %v3556_v27  ;;  %v7180_v27 = vld [vmem:[%s11186_s9 + $0x3f0] sm:$0xf0]  ;;  %v7187_v62 = vor.u32 %v8292_v20, %v7186_v34  ;;  %v8321_v34 = vld [vmem:[%s11187_s11 + $0x4e0] sm:$0xff]  ;;  %v8314_v20 = vld [vmem:[%s11187_s11 + $0x4a8] sm:$0xff] }
 0xeee   :  { %v10376_v12 = vadd.f32 %v10283_v35, %v3572_v59  ;;  %v7183_v1 = vor.u32 %v8283_v63, %v7180_v27  ;;  %v7114_v59 = vld [vmem:[%s11186_s9 + $0x330] sm:$0xf]  ;;  %v8297_v27 = vld [vmem:[%s11187_s11 + $0x420] sm:$0xff] }
 0xeef   :  { %v3558_v15 = vmul.f32 %v8551_v18, %v3557_v16  ;;  %v8291_v16 = vld [vmem:[%s11186_s9 + $0x3ec] sm:$0xf0] }
 0xef0   :  { %4187 = vmatpush.bf16.msrb.mxu2 %v7103_v11  ;;  %4206 = vmatpush.bf16.msrb.mxu3 %v7107_v26  ;;  %v7179_v45 = vor.u32 %v8291_v16, %v7178_v52  ;;  %v7055_v11 = vor.u32 %v8251_v43, %v7052_v56  ;;  %v7058_v26 = vld [vmem:[%s11186_s9 + $0x2b8] sm:$0xf]  ;;  %v8315_v63 = vld [vmem:[%s11187_s11 + $0x4b0] sm:$0xff]  ;;  %v8305_v16 = vld [vmem:[%s11187_s11 + $0x460] sm:$0xff] }
 0xef1   :  { %v3562_v6 = vsel %vm3561_vm11, %v8551_v18, %v3558_v15  ;;  %v6975_v18 = vor.u32 %v8233_v33, %v6972_v55  ;;  %v7188_v15 = vld [vmem:[%s11186_s9 + $0x3f8] sm:$0xf0] }
 0xef2   :  { %v3566_v3 = vmul.f32 %v3562_v6, %v10083_v32  ;;  %v8289_v32 = vld [vmem:[%s11186_s9 + $0x3dc] sm:$0xf0]  ;;  %v7191_v6 = vor.u32 %v8284_v53, %v7188_v15  ;;  %v8300_v55 = vld [vmem:[%s11187_s11 + $0x438] sm:$0xff]  ;;  %v8319_v15 = vld [vmem:[%s11187_s11 + $0x4d0] sm:$0xff] }
 0xef3   :  { %v7163_v10 = vor.u32 %v8289_v32, %v7162_v9  ;;  %v7116_v32 = vld [vmem:[%s11186_s9 + $0x370] sm:$0xf0]  ;;  %v8320_v52 = vld [vmem:[%s11187_s11 + $0x4d8] sm:$0xff]  ;;  %v8313_v53 = vld [vmem:[%s11187_s11 + $0x4a0] sm:$0xff] }
 0xef4   :  { %v3573_v7 = vmul.f32 %v10237_v24, %v3566_v3  ;;  %v8282_v24 = vld [vmem:[%s11186_s9 + $0x3ac] sm:$0xf]  ;;  %4188 = vmatpush.bf16.msrb.mxu2 %v7039_v21  ;;  %4207 = vmatpush.bf16.msrb.mxu3 %v7043_v41  ;;  %v8275_v3 = vld [vmem:[%s11186_s9 + $0x36c] sm:$0xf0]  ;;  %v7063_v21 = vor.u32 %v8252_v48, %v7060_v30  ;;  %v8236_v41 = vld [vmem:[%s11186_s9 + $0x23c] sm:$0xf] }
 0xef5   :  { %v7175_v5 = vor.u32 %v8282_v24, %v7172_v2  ;;  %4167 = vmatpush.bf16.msra.mxu1 %v7163_v10  ;;  %v7115_v9 = vor.u32 %v8275_v3, %v7114_v59  ;;  %v7122_v24 = vld [vmem:[%s11186_s9 + $0x338] sm:$0xf]  ;;  %v6999_v33 = vor.u32 %v8236_v41, %v6996_v47  ;;  %v8294_v3 = vld [vmem:[%s11187_s11 + $0x408] sm:$0xff]  ;;  %v8329_v48 = vld [vmem:[%s11187_s11 + $0x520] sm:$0xff] }
 0xef6   :  { %v10379_v57 = vadd.f32 %v10283_v35, %v3573_v7  ;;  %v7099_v35 = vor.u32 %v8273_v39, %v7098_v14  ;;  %v8267_v7 = vld [vmem:[%s11186_s9 + $0x334] sm:$0xf]  ;;  %v8276_v10 = vld [vmem:[%s11186_s9 + $0x374] sm:$0xf0]  ;;  %v8268_v14 = vld [vmem:[%s11186_s9 + $0x33c] sm:$0xf] }
 0xef7   :  { %4224 = vmatpush.bf16.msra.mxu0 %v7175_v5  ;;  %v7119_v2 = vor.u32 %v8267_v7, %v7116_v32  ;;  %v7123_v5 = vor.u32 %v8276_v10, %v7122_v24  ;;  %v7124_v39 = vld [vmem:[%s11186_s9 + $0x378] sm:$0xf0]  ;;  %v8303_v7 = vld [vmem:[%s11187_s11 + $0x450] sm:$0xff]  ;;  %v8293_v32 = vld [vmem:[%s11187_s11 + $0x400] sm:$0xff] }
 0xef8   :  { %v10383_v31 = vpack.c.bf16 %v10379_v57, %v10376_v12  ;;  %4189 = vmatpush.bf16.msrb.mxu2 %v6975_v18  ;;  %4208 = vmatpush.bf16.msrb.mxu3 %v6979_v44  ;;  %v8316_v18 = vld [vmem:[%s11187_s11 + $0x4b8] sm:$0xff]  ;;  %v8298_v44 = vld [vmem:[%s11187_s11 + $0x428] sm:$0xff]  ;;  %v8317_v24 = vld [vmem:[%s11187_s11 + $0x4c0] sm:$0xff] }
 0xef9   :  { %4168 = vmatpush.bf16.msra.mxu1 %v7099_v35  ;;  %v7127_v35 = vor.u32 %v8268_v14, %v7124_v39  ;;  %v8312_v59 = vld [vmem:[%s11187_s11 + $0x498] sm:$0xff]  ;;  %v8302_v10 = vld [vmem:[%s11187_s11 + $0x448] sm:$0xff]  ;;  %v8301_v39 = vld [vmem:[%s11187_s11 + $0x440] sm:$0xff] }
 0xefa   :  { %7193 = vmatmul.msk.bf16.gmra.mxu1 %vm111_vm0, %v10383_v31  ;;  %7195 = vmatmul.msk.bf16.gmra.mxu2 %vm111_vm0, %v10383_v31  ;;  %v8356_v14 = vld [vmem:[%s11187_s11 + $0x5f8] sm:$0xff]  ;;  %v8346_v30 = vld [vmem:[%s11187_s11 + $0x5a8] sm:$0xff]  ;;  %v8327_v47 = vld [vmem:[%s11187_s11 + $0x510] sm:$0xff] }
 0xefb   :  { %7197 = vmatmul.msk.bf16.gmra.mxu3 %vm111_vm0, %v10383_v31  ;;  %7199 = vmatmul.msk.bf16.gmra.mxu0 %vm111_vm0, %v10383_v31  ;;  %v8340_v43 = vld [vmem:[%s11187_s11 + $0x578] sm:$0xff] }
 0xefc   :  { %4225 = vmatpush.bf16.msra.mxu0 %v7111_v49  ;;  %v7059_v49 = vor.u32 %v8260_v8, %v7058_v26  ;;  %v8348_v56 = vld [vmem:[%s11187_s11 + $0x5b8] sm:$0xff]  ;;  %v8339_v26 = vld [vmem:[%s11187_s11 + $0x570] sm:$0xff] }
 0xefd   :  { %4169 = vmatpush.bf16.msra.mxu1 %v7035_v22  ;;  %v8244_v22 = vld [vmem:[%s11186_s9 + $0x274] sm:$0xf0]  ;;  %v8347_v8 = vld [vmem:[%s11187_s11 + $0x5b0] sm:$0xff] }
 0xefe   :  { %v6995_v54 = vor.u32 %v8244_v22, %v6994_v38  ;;  %v8337_v38 = vld [vmem:[%s11187_s11 + $0x560] sm:$0xff] }
 0xeff   :  { %v8345_v22 = vld [vmem:[%s11187_s11 + $0x5a0] sm:$0xff] }
 0xf00   :  { %4226 = vmatpush.bf16.msra.mxu0 %v7047_v58  ;;  %v6987_v58 = vor.u32 %v8243_v60, %v6986_v40  ;;  %v8328_v40 = vld [vmem:[%s11187_s11 + $0x518] sm:$0xff] }
 0xf01   :  { %4170 = vmatpush.bf16.msra.mxu1 %v6971_v46  ;;  %v8322_v46 = vld [vmem:[%s11187_s11 + $0x4e8] sm:$0xff]  ;;  %v8352_v60 = vld [vmem:[%s11187_s11 + $0x5d8] sm:$0xff] }
 0xf04   :  { %4227 = vmatpush.bf16.msra.mxu0 %v6983_v36  ;;  %v8307_v36 = vld [vmem:[%s11187_s11 + $0x470] sm:$0xff] }
 0xf0a   :  { %7200 = vmatmul.msk.bf16.vlgmr.msrb.gmra.mxu1 %vm111_vm0, %v10346_v51  ;;  %7202 = vmatmul.msk.bf16.vlgmr.msra.gmra.mxu2 %vm111_vm0, %v10346_v51 }
 0xf0b   :  { %7204 = vmatmul.msk.bf16.vlgmr.msra.gmra.mxu3 %vm111_vm0, %v10346_v51  ;;  %7206 = vmatmul.msk.bf16.vlgmr.msrb.gmra.mxu0 %vm111_vm0, %v10346_v51 }
 0xf0c   :  { %4262 = vmatpush.bf16.msra.mxu2 %v7183_v1  ;;  %4281 = vmatpush.bf16.msra.mxu3 %v7187_v62  ;;  %v8306_v1 = vld [vmem:[%s11187_s11 + $0x468] sm:$0xff]  ;;  %v8296_v62 = vld [vmem:[%s11187_s11 + $0x418] sm:$0xff] }
 0xf0d   :  { %4243 = vmatpush.bf16.msrb.mxu1 %v7179_v45  ;;  %4300 = vmatpush.bf16.msrb.mxu0 %v7191_v6  ;;  %v8295_v45 = vld [vmem:[%s11187_s11 + $0x410] sm:$0xff]  ;;  %v8304_v6 = vld [vmem:[%s11187_s11 + $0x458] sm:$0xff] }
 0xf10   :  { %4263 = vmatpush.bf16.msra.mxu2 %v7119_v2  ;;  %4282 = vmatpush.bf16.msra.mxu3 %v7123_v5  ;;  %v8310_v2 = vld [vmem:[%s11187_s11 + $0x488] sm:$0xff]  ;;  %v8332_v5 = vld [vmem:[%s11187_s11 + $0x538] sm:$0xff] }
 0xf11   :  { %4244 = vmatpush.bf16.msrb.mxu1 %v7115_v9  ;;  %4301 = vmatpush.bf16.msrb.mxu0 %v7127_v35  ;;  %v8311_v9 = vld [vmem:[%s11187_s11 + $0x490] sm:$0xff] }
 0xf12   :  { %v8331_v35 = vld [vmem:[%s11187_s11 + $0x530] sm:$0xff] }
 0xf14   :  { %4264 = vmatpush.bf16.msra.mxu2 %v7055_v11  ;;  %4283 = vmatpush.bf16.msra.mxu3 %v7059_v49  ;;  %v8330_v11 = vld [vmem:[%s11187_s11 + $0x528] sm:$0xff] }
 0xf15   :  { %4245 = vmatpush.bf16.msrb.mxu1 %v7051_v17  ;;  %4302 = vmatpush.bf16.msrb.mxu0 %v7063_v21  ;;  %v8353_v17 = vld [vmem:[%s11187_s11 + $0x5e0] sm:$0xff]  ;;  %v8338_v49 = vld [vmem:[%s11187_s11 + $0x568] sm:$0xff]  ;;  %v10768_v21 = vld [vmem:[%s11188_s10 + $0x10] sm:$0xff] }
 0xf16   :  { %v10777_v41 = vperm.slane %v10768_v21, 0 }
 0xf18   :  { %4265 = vmatpush.bf16.msra.mxu2 %v6991_v23  ;;  %4284 = vmatpush.bf16.msra.mxu3 %v6995_v54  ;;  %v8351_v23 = vld [vmem:[%s11187_s11 + $0x5d0] sm:$0xff]  ;;  %v10786_v54 = vperm.slane %v10768_v21, 3 }
 0xf19   :  { %4246 = vmatpush.bf16.msrb.mxu1 %v6987_v58  ;;  %4303 = vmatpush.bf16.msrb.mxu0 %v6999_v33  ;;  %v8336_v58 = vld [vmem:[%s11187_s11 + $0x558] sm:$0xff] }
 0xf1a   :  { %7201 = vmatmul.msk.bf16.gmra.mxu1 %vm111_vm0, %v10383_v31  ;;  %7203 = vmatmul.msk.bf16.gmra.mxu2 %vm111_vm0, %v10383_v31  ;;  %v8344_v33 = vld [vmem:[%s11187_s11 + $0x598] sm:$0xff] }
 0xf1b   :  { %7205 = vmatmul.msk.bf16.gmra.mxu3 %vm111_vm0, %v10383_v31  ;;  %7207 = vmatmul.msk.bf16.gmra.mxu0 %vm111_vm0, %v10383_v31 }
 0xf2a   :  { %7208 = vmatmul.msk.bf16.vlgmr.msra.gmra.mxu1 %vm111_vm0, %v10346_v51  ;;  %7210 = vmatmul.msk.bf16.vlgmr.msrb.gmra.mxu2 %vm111_vm0, %v10346_v51 }
 0xf2b   :  { %7212 = vmatmul.msk.bf16.vlgmr.msrb.gmra.mxu3 %vm111_vm0, %v10346_v51  ;;  %7214 = vmatmul.msk.bf16.vlgmr.msra.gmra.mxu0 %vm111_vm0, %v10346_v51 }
 0xf2c   :  { %5441 = vmatpush.bf16.msra.mxu1 %v8300_v55  ;;  %5498 = vmatpush.bf16.msra.mxu0 %v8324_v28 }
 0xf2d   :  { %5460 = vmatpush.bf16.msrb.mxu2 %v8308_v61  ;;  %5479 = vmatpush.bf16.msrb.mxu3 %v8316_v18  ;;  %v8350_v61 = vld [vmem:[%s11187_s11 + $0x5c8] sm:$0xff] }
 0xf30   :  { %5442 = vmatpush.bf16.msra.mxu1 %v8299_v37  ;;  %5499 = vmatpush.bf16.msra.mxu0 %v8323_v50  ;;  %v8326_v50 = vld [vmem:[%s11187_s11 + $0x508] sm:$0xff] }
 0xf31   :  { %5461 = vmatpush.bf16.msrb.mxu2 %v8307_v36  ;;  %5480 = vmatpush.bf16.msrb.mxu3 %v8315_v63 }
 0xf34   :  { %5443 = vmatpush.bf16.msra.mxu1 %v8298_v44  ;;  %5500 = vmatpush.bf16.msra.mxu0 %v8322_v46  ;;  %v10803_v46 = vperm.slane %v10768_v21, 1 }
 0xf35   :  { %5462 = vmatpush.bf16.msrb.mxu2 %v8306_v1  ;;  %5481 = vmatpush.bf16.msrb.mxu3 %v8314_v20  ;;  %v10813_v1 = vperm.slane %v10768_v21, 2 }
 0xf38   :  { %5444 = vmatpush.bf16.msra.mxu1 %v8297_v27  ;;  %5501 = vmatpush.bf16.msra.mxu0 %v8321_v34  ;;  %v8335_v27 = vld [vmem:[%s11187_s11 + $0x550] sm:$0xff] }
 0xf39   :  { %5463 = vmatpush.bf16.msrb.mxu2 %v8305_v16  ;;  %5482 = vmatpush.bf16.msrb.mxu3 %v8313_v53  ;;  %v8343_v34 = vld [vmem:[%s11187_s11 + $0x590] sm:$0xff]  ;;  %v8325_v16 = vld [vmem:[%s11187_s11 + $0x500] sm:$0xff] }
 0xf3a   :  { %7209 = vmatmul.msk.bf16.gmra.mxu1 %vm111_vm0, %v10383_v31  ;;  %7211 = vmatmul.msk.bf16.gmra.mxu2 %vm111_vm0, %v10383_v31  ;;  %v8349_v53 = vld [vmem:[%s11187_s11 + $0x5c0] sm:$0xff] }
 0xf3b   :  { %7213 = vmatmul.msk.bf16.gmra.mxu3 %vm111_vm0, %v10383_v31  ;;  %7215 = vmatmul.msk.bf16.gmra.mxu0 %vm111_vm0, %v10383_v31 }
 0xf3c   :  { %5445 = vmatpush.bf16.msra.mxu1 %v8296_v62  ;;  %5502 = vmatpush.bf16.msra.mxu0 %v8320_v52 }
 0xf3d   :  { %5464 = vmatpush.bf16.msrb.mxu2 %v8304_v6  ;;  %5483 = vmatpush.bf16.msrb.mxu3 %v8312_v59 }
 0xf40   :  { %5446 = vmatpush.bf16.msra.mxu1 %v8295_v45  ;;  %5503 = vmatpush.bf16.msra.mxu0 %v8319_v15 }
 0xf41   :  { %5465 = vmatpush.bf16.msrb.mxu2 %v8303_v7  ;;  %5484 = vmatpush.bf16.msrb.mxu3 %v8311_v9 }
 0xf44   :  { %5447 = vmatpush.bf16.msra.mxu1 %v8294_v3  ;;  %v8334_v3 = vld [vmem:[%s11187_s11 + $0x548] sm:$0xff] }
 0xf45   :  { %5466 = vmatpush.bf16.msrb.mxu2 %v8302_v10  ;;  %5485 = vmatpush.bf16.msrb.mxu3 %v8310_v2  ;;  %v8364_v2 = vld [vmem:[%s11187_s11 + $0x638] sm:$0xff] }
 0xf48   :  { %5448 = vmatpush.bf16.msra.mxu1 %v8293_v32 }
 0xf49   :  { %5467 = vmatpush.bf16.msrb.mxu2 %v8301_v39  ;;  %5486 = vmatpush.bf16.msrb.mxu3 %v8309_v29 }
 0xf4a   :  { %7216 = vmatmul.msk.bf16.vlgmr.msrb.gmra.mxu1 %vm111_vm0, %v10346_v51  ;;  %7218 = vmatmul.msk.bf16.vlgmr.msra.gmra.mxu2 %vm111_vm0, %v10346_v51 }
 0xf4b   :  { %7220 = vmatmul.msk.bf16.vlgmr.msra.gmra.mxu3 %vm111_vm0, %v10346_v51  ;;  %7222 = vmatmul.msk.bf16.vlgmr.msrb.gmra.mxu0 %vm111_vm0, %v10346_v51  ;;  %v8318_v51 = vld [vmem:[%s11187_s11 + $0x4c8] sm:$0xff] }
 0xf4c   :  { %5504 = vmatpush.bf16.msra.mxu0 %v8318_v51  ;;  %5517 = vmatpush.bf16.msrb.mxu1 %v8332_v5  ;;  %v8342_v51 = vld [vmem:[%s11187_s11 + $0x588] sm:$0xff]  ;;  %v8388_v5 = vld [vmem:[%s11187_s11 + $0x6f8] sm:$0xff] }
 0xf4d   :  { %5536 = vmatpush.bf16.msra.mxu2 %v8340_v43  ;;  %5555 = vmatpush.bf16.msra.mxu3 %v8348_v56  ;;  %v8333_v43 = vld [vmem:[%s11187_s11 + $0x540] sm:$0xff] }
 0xf4e   :  { %v8341_v56 = vld [vmem:[%s11187_s11 + $0x580] sm:$0xff] }
 0xf50   :  { %5505 = vmatpush.bf16.msra.mxu0 %v8317_v24  ;;  %5518 = vmatpush.bf16.msrb.mxu1 %v8331_v35 }
 0xf51   :  { %5537 = vmatpush.bf16.msra.mxu2 %v8339_v26  ;;  %5556 = vmatpush.bf16.msra.mxu3 %v8347_v8  ;;  %v8363_v8 = vld [vmem:[%s11187_s11 + $0x630] sm:$0xff] }
 0xf54   :  { %5574 = vmatpush.bf16.msrb.mxu0 %v8356_v14  ;;  %5519 = vmatpush.bf16.msrb.mxu1 %v8330_v11 }
 0xf55   :  { %5538 = vmatpush.bf16.msra.mxu2 %v8338_v49  ;;  %5557 = vmatpush.bf16.msra.mxu3 %v8346_v30  ;;  %v8372_v49 = vld [vmem:[%s11187_s11 + $0x678] sm:$0xff] }
 0xf56   :  { %v8380_v30 = vld [vmem:[%s11187_s11 + $0x6b8] sm:$0xff] }
 0xf58   :  { %5575 = vmatpush.bf16.msrb.mxu0 %v8355_v4  ;;  %5520 = vmatpush.bf16.msrb.mxu1 %v8329_v48  ;;  %v8387_v48 = vld [vmem:[%s11187_s11 + $0x6f0] sm:$0xff] }
 0xf59   :  { %5539 = vmatpush.bf16.msra.mxu2 %v8337_v38  ;;  %5558 = vmatpush.bf16.msra.mxu3 %v8345_v22  ;;  %v8386_v38 = vld [vmem:[%s11187_s11 + $0x6e8] sm:$0xff] }
 0xf5a   :  { %7217 = vmatmul.msk.bf16.gmra.mxu1 %vm111_vm0, %v10383_v31  ;;  %7219 = vmatmul.msk.bf16.gmra.mxu2 %vm111_vm0, %v10383_v31 }
 0xf5b   :  { %7221 = vmatmul.msk.bf16.gmra.mxu3 %vm111_vm0, %v10383_v31  ;;  %7223 = vmatmul.msk.bf16.gmra.mxu0 %vm111_vm0, %v10383_v31  ;;  %v8354_v31 = vld [vmem:[%s11187_s11 + $0x5e8] sm:$0xff] }
 0xf5c   :  { %5576 = vmatpush.bf16.msrb.mxu0 %v8354_v31  ;;  %5521 = vmatpush.bf16.msrb.mxu1 %v8328_v40 }
 0xf5d   :  { %5540 = vmatpush.bf16.msra.mxu2 %v8336_v58  ;;  %5559 = vmatpush.bf16.msra.mxu3 %v8344_v33  ;;  %v8371_v33 = vld [vmem:[%s11187_s11 + $0x670] sm:$0xff] }
 0xf60   :  { %5577 = vmatpush.bf16.msrb.mxu0 %v8353_v17  ;;  %5522 = vmatpush.bf16.msrb.mxu1 %v8327_v47 }
 0xf61   :  { %5541 = vmatpush.bf16.msra.mxu2 %v8335_v27  ;;  %5560 = vmatpush.bf16.msra.mxu3 %v8343_v34  ;;  %v8378_v27 = vld [vmem:[%s11187_s11 + $0x6a8] sm:$0xff] }
 0xf64   :  { %5578 = vmatpush.bf16.msrb.mxu0 %v8352_v60  ;;  %5523 = vmatpush.bf16.msrb.mxu1 %v8326_v50 }
 0xf65   :  { %5542 = vmatpush.bf16.msra.mxu2 %v8334_v3  ;;  %5561 = vmatpush.bf16.msra.mxu3 %v8342_v51 }
 0xf67   :  { %v4020_v25 = vpop.f32.mrf.mxu1 }
 0xf68   :  { %v4077_v42 = vpop.f32.mrf.mxu0  ;;  %5579 = vmatpush.bf16.msrb.mxu0 %v8351_v23  ;;  %v4021_v28 = vadd.f32 %v4020_v25, %v10777_v41  ;;  %5524 = vmatpush.bf16.msrb.mxu1 %v8325_v16 }
 0xf69   :  { %v4078_v18 = vadd.f32 %v4077_v42, %v10786_v54  ;;  %5543 = vmatpush.bf16.msra.mxu2 %v8333_v43  ;;  %5562 = vmatpush.bf16.msra.mxu3 %v8341_v56  ;;  %v8362_v42 = vld [vmem:[%s11187_s11 + $0x628] sm:$0xff] }
 0xf6a   :  { %v4315_v62 = vmax.f32 %v4021_v28, 0.0  ;;  %v8358_v56 = vld [vmem:[%s11187_s11 + $0x608] sm:$0xff] }
 0xf6b   :  { %v4318_v45 = vmax.f32 %v4078_v18, 0.0 }
 0xf6c   :  { %5580 = vmatpush.bf16.msrb.mxu0 %v8350_v61  ;;  %v8385_v61 = vld [vmem:[%s11187_s11 + $0x6e0] sm:$0xff] }
 0xf6d   :  { %v4039_v55 = vpop.f32.mrf.mxu2 }
 0xf6e   :  { %v4058_v37 = vpop.f32.mrf.mxu3  ;;  %v4040_v6 = vadd.f32 %v4039_v55, %v10803_v46  ;;  %v8379_v55 = vld [vmem:[%s11187_s11 + $0x6b0] sm:$0xff] }
 0xf6f   :  { %v4022_v44 = vpop.f32.mrf.mxu1  ;;  %v4059_v7 = vadd.f32 %v4058_v37, %v10813_v1 }
 0xf70   :  { %v4023_v36 = vadd.f32 %v4022_v44, %v10777_v41  ;;  %v4079_v63 = vpop.f32.mrf.mxu0  ;;  %5581 = vmatpush.bf16.msrb.mxu0 %v8349_v53  ;;  %v4316_v29 = vmax.f32 %v4040_v6, 0.0  ;;  %v8360_v53 = vld [vmem:[%s11187_s11 + $0x618] sm:$0xff] }
 0xf71   :  { %v4080_v20 = vadd.f32 %v4079_v63, %v10786_v54  ;;  %v4317_v11 = vmax.f32 %v4059_v7, 0.0  ;;  %v8377_v7 = vld [vmem:[%s11187_s11 + $0x6a0] sm:$0xff] }
 0xf72   :  { %v4331_v52 = vmax.f32 %v4023_v36, 0.0 }
 0xf73   :  { %v4334_v15 = vmax.f32 %v4080_v20, 0.0 }
 0xf74   :  { %v4379_v59 = vpack.c.bf16 %v4331_v52, %v4315_v62 }
 0xf75   :  { %v4382_v9 = vpack.c.bf16 %v4334_v15, %v4318_v45  ;;  %v4041_v32 = vpop.f32.mrf.mxu2  ;;  %v8384_v45 = vld [vmem:[%s11187_s11 + $0x6d8] sm:$0xff] }
 0xf76   :  { %v4042_v24 = vadd.f32 %v4041_v32, %v10803_v46  ;;  %v4060_v10 = vpop.f32.mrf.mxu3  ;;  %5449 = vmatmul.bf16.vlgmr.msra.gmra.mxu1 %v4379_v59 }
 0xf77   :  { %v4061_v14 = vadd.f32 %v4060_v10, %v10813_v1  ;;  %5506 = vmatmul.bf16.vlgmr.msra.gmra.mxu0 %v4382_v9  ;;  %v4025_v39 = vpop.f32.mrf.mxu1  ;;  %5593 = vmatpush.bf16.msra.mxu1 %v8364_v2  ;;  %v8359_v10 = vld [vmem:[%s11187_s11 + $0x610] sm:$0xff] }
 0xf78   :  { %v4332_v35 = vmax.f32 %v4042_v24, 0.0  ;;  %v4082_v4 = vpop.f32.mrf.mxu0  ;;  %5650 = vmatpush.bf16.msra.mxu0 %v8388_v5  ;;  %v4026_v60 = vadd.f32 %v4025_v39, %v10777_v41  ;;  %v8383_v2 = vld [vmem:[%s11187_s11 + $0x6d0] sm:$0xff]  ;;  %v10910_v5 = vperm.slane %v10768_v21, 7  ;;  %v8368_v39 = vld [vmem:[%s11187_s11 + $0x658] sm:$0xff] }
 0xf79   :  { %v4333_v31 = vmax.f32 %v4061_v14, 0.0  ;;  %v4083_v22 = vadd.f32 %v4082_v4, %v10786_v54 }
 0xf7a   :  { %v4380_v26 = vpack.c.bf16 %v4332_v35, %v4316_v29  ;;  %v4347_v37 = vmax.f32 %v4026_v60, 0.0  ;;  %v8376_v29 = vld [vmem:[%s11187_s11 + $0x698] sm:$0xff] }
 0xf7b   :  { %v4381_v17 = vpack.c.bf16 %v4333_v31, %v4317_v11  ;;  %5594 = vmatpush.bf16.msra.mxu1 %v8363_v8  ;;  %v4350_v18 = vmax.f32 %v4083_v22, 0.0  ;;  %v8382_v11 = vld [vmem:[%s11187_s11 + $0x6c8] sm:$0xff]  ;;  %v10927_v8 = vperm.slane %v10768_v21, 5  ;;  %v8381_v22 = vld [vmem:[%s11187_s11 + $0x6c0] sm:$0xff] }
 0xf7c   :  { %5468 = vmatmul.bf16.vlgmr.msrb.gmra.mxu2 %v4380_v26  ;;  %5651 = vmatpush.bf16.msra.mxu0 %v8387_v48 }
 0xf7d   :  { %5487 = vmatmul.bf16.vlgmr.msrb.gmra.mxu3 %v4381_v17  ;;  %v4044_v40 = vpop.f32.mrf.mxu2  ;;  %5612 = vmatpush.bf16.msrb.mxu2 %v8372_v49  ;;  %v8367_v49 = vld [vmem:[%s11187_s11 + $0x650] sm:$0xff] }
 0xf7e   :  { %v4063_v25 = vpop.f32.mrf.mxu3  ;;  %5631 = vmatpush.bf16.msrb.mxu3 %v8380_v30  ;;  %v4045_v36 = vadd.f32 %v4044_v40, %v10803_v46  ;;  %v8375_v30 = vld [vmem:[%s11187_s11 + $0x690] sm:$0xff]  ;;  %v10937_v40 = vperm.slane %v10768_v21, 6 }
 0xf7f   :  { %v4027_v47 = vpop.f32.mrf.mxu1  ;;  %5595 = vmatpush.bf16.msra.mxu1 %v8362_v42  ;;  %v4064_v34 = vadd.f32 %v4063_v25, %v10813_v1 }
 0xf80   :  { %v4028_v23 = vadd.f32 %v4027_v47, %v10777_v41  ;;  %v4084_v58 = vpop.f32.mrf.mxu0  ;;  %5652 = vmatpush.bf16.msra.mxu0 %v8386_v38  ;;  %v8361_v41 = vld [vmem:[%s11187_s11 + $0x620] sm:$0xff]  ;;  %v4348_v59 = vmax.f32 %v4045_v36, 0.0 }
 0xf81   :  { %v4085_v28 = vadd.f32 %v4084_v58, %v10786_v54  ;;  %5613 = vmatpush.bf16.msrb.mxu2 %v8371_v33  ;;  %v8370_v54 = vld [vmem:[%s11187_s11 + $0x668] sm:$0xff]  ;;  %v4349_v9 = vmax.f32 %v4064_v34, 0.0  ;;  %v8357_v38 = vld [vmem:[%s11187_s11 + $0x600] sm:$0xff] }
 0xf82   :  { %v4363_v50 = vmax.f32 %v4028_v23, 0.0  ;;  %5632 = vmatpush.bf16.msrb.mxu3 %v8379_v55  ;;  %v8366_v33 = vld [vmem:[%s11187_s11 + $0x648] sm:$0xff] }
 0xf83   :  { %v4366_v44 = vmax.f32 %v4085_v28, 0.0  ;;  %5596 = vmatpush.bf16.msra.mxu1 %v8361_v41  ;;  %v8374_v55 = vld [vmem:[%s11187_s11 + $0x688] sm:$0xff] }
 0xf84   :  { %v4395_v63 = vpack.c.bf16 %v4363_v50, %v4347_v37  ;;  %5653 = vmatpush.bf16.msra.mxu0 %v8385_v61 }
 0xf85   :  { %v4046_v20 = vpop.f32.mrf.mxu2  ;;  %v4398_v62 = vpack.c.bf16 %v4366_v44, %v4350_v18  ;;  %5614 = vmatpush.bf16.msrb.mxu2 %v8370_v54  ;;  %v8396_v18 = vld [vmem:[%s11187_s11 + $0x738] sm:$0xff] }
 0xf86   :  { %v4047_v52 = vadd.f32 %v4046_v20, %v10803_v46  ;;  %v4065_v16 = vpop.f32.mrf.mxu3  ;;  %5454 = vmatmul.bf16.gmra.mxu1 %v4395_v63  ;;  %5633 = vmatpush.bf16.msrb.mxu3 %v8378_v27  ;;  %v8369_v46 = vld [vmem:[%s11187_s11 + $0x660] sm:$0xff]  ;;  %v8420_v44 = vld [vmem:[%s11187_s11 + $0x7f8] sm:$0xff] }
 0xf87   :  { %v4066_v15 = vadd.f32 %v4065_v16, %v10813_v1  ;;  %5511 = vmatmul.bf16.gmra.mxu0 %v4398_v62  ;;  %v4096_v6 = vpop.f32.mrf.mxu1  ;;  %5597 = vmatpush.bf16.msra.mxu1 %v8360_v53  ;;  %v10901_v1 = vperm.slane %v10768_v21, 4  ;;  %v8365_v20 = vld [vmem:[%s11187_s11 + $0x640] sm:$0xff] }
 0xf88   :  { %v4364_v3 = vmax.f32 %v4047_v52, 0.0  ;;  %v4153_v51 = vpop.f32.mrf.mxu0  ;;  %5654 = vmatpush.bf16.msra.mxu0 %v8384_v45  ;;  %v8373_v62 = vld [vmem:[%s11187_s11 + $0x680] sm:$0xff]  ;;  %v8395_v45 = vld [vmem:[%s11187_s11 + $0x730] sm:$0xff] }
 0xf89   :  { %v4365_v32 = vmax.f32 %v4066_v15, 0.0  ;;  %5615 = vmatpush.bf16.msrb.mxu2 %v8369_v46  ;;  %v4097_v4 = vadd.f32 %v4096_v6, %v10901_v1  ;;  %v4154_v31 = vadd.f32 %v4153_v51, %v10910_v5  ;;  %v8419_v15 = vld [vmem:[%s11187_s11 + $0x7f0] sm:$0xff] }
 0xf8a   :  { %v4396_v24 = vpack.c.bf16 %v4364_v3, %v4348_v59  ;;  %5634 = vmatpush.bf16.msrb.mxu3 %v8377_v7  ;;  %v8404_v59 = vld [vmem:[%s11187_s11 + $0x778] sm:$0xff] }
 0xf8b   :  { %v4397_v14 = vpack.c.bf16 %v4365_v32, %v4349_v9  ;;  %5598 = vmatpush.bf16.msra.mxu1 %v8359_v10  ;;  %v4319_v25 = vmax.f32 %v4097_v4, 0.0  ;;  %v4322_v47 = vmax.f32 %v4154_v31, 0.0  ;;  %v8412_v3 = vld [vmem:[%s11187_s11 + $0x7b8] sm:$0xff]  ;;  %v8394_v9 = vld [vmem:[%s11187_s11 + $0x728] sm:$0xff] }
 0xf8c   :  { %5473 = vmatmul.bf16.gmra.mxu2 %v4396_v24  ;;  %5655 = vmatpush.bf16.msra.mxu0 %v8383_v2  ;;  %v8418_v32 = vld [vmem:[%s11187_s11 + $0x7e8] sm:$0xff] }
 0xf8d   :  { %5492 = vmatmul.bf16.gmra.mxu3 %v4397_v14  ;;  %v4115_v35 = vpop.f32.mrf.mxu2  ;;  %5616 = vmatpush.bf16.msrb.mxu2 %v8368_v39  ;;  %v8403_v39 = vld [vmem:[%s11187_s11 + $0x770] sm:$0xff] }
 0xf8e   :  { %v4134_v43 = vpop.f32.mrf.mxu3  ;;  %5635 = vmatpush.bf16.msrb.mxu3 %v8376_v29  ;;  %v4116_v21 = vadd.f32 %v4115_v35, %v10927_v8  ;;  %v8411_v29 = vld [vmem:[%s11187_s11 + $0x7b0] sm:$0xff] }
 0xf8f   :  { %v4098_v26 = vpop.f32.mrf.mxu1  ;;  %5599 = vmatpush.bf16.msra.mxu1 %v8358_v56  ;;  %v4135_v28 = vadd.f32 %v4134_v43, %v10937_v40  ;;  %v8417_v56 = vld [vmem:[%s11187_s11 + $0x7e0] sm:$0xff] }
 0xf90   :  { %v4099_v48 = vadd.f32 %v4098_v26, %v10901_v1  ;;  %v4155_v17 = vpop.f32.mrf.mxu0  ;;  %5656 = vmatpush.bf16.msra.mxu0 %v8382_v11  ;;  %v4320_v54 = vmax.f32 %v4116_v21, 0.0 }
 0xf91   :  { %v4156_v60 = vadd.f32 %v4155_v17, %v10910_v5  ;;  %5617 = vmatpush.bf16.msrb.mxu2 %v8367_v49  ;;  %v4321_v52 = vmax.f32 %v4135_v28, 0.0  ;;  %v8410_v17 = vld [vmem:[%s11187_s11 + $0x7a8] sm:$0xff] }
 0xf92   :  { %v4335_v42 = vmax.f32 %v4099_v48, 0.0  ;;  %5636 = vmatpush.bf16.msrb.mxu3 %v8375_v30 }
 0xf93   :  { %v4338_v23 = vmax.f32 %v4156_v60, 0.0  ;;  %5600 = vmatpush.bf16.msra.mxu1 %v8357_v38  ;;  %v8392_v38 = vld [vmem:[%s11187_s11 + $0x718] sm:$0xff] }
 0xf94   :  { %v4383_v58 = vpack.c.bf16 %v4335_v42, %v4319_v25  ;;  %5657 = vmatpush.bf16.msra.mxu0 %v8381_v22  ;;  %v8416_v22 = vld [vmem:[%s11187_s11 + $0x7d8] sm:$0xff] }
 0xf95   :  { %v4386_v37 = vpack.c.bf16 %v4338_v23, %v4322_v47  ;;  %v4117_v50 = vpop.f32.mrf.mxu2  ;;  %5618 = vmatpush.bf16.msrb.mxu2 %v8366_v33  ;;  %v11021_v23 = vld [vmem:[%s11188_s10 + $0x18] sm:$0xff] }
 0xf96   :  { %v4118_v41 = vadd.f32 %v4117_v50, %v10927_v8  ;;  %v4136_v61 = vpop.f32.mrf.mxu3  ;;  %5525 = vmatmul.bf16.vlgmr.msrb.gmra.mxu1 %v4383_v58  ;;  %5637 = vmatpush.bf16.msrb.mxu3 %v8374_v55  ;;  %v8401_v55 = vld [vmem:[%s11187_s11 + $0x760] sm:$0xff]  ;;  %v11030_v50 = vperm.slane %v11021_v23, 0 }
 0xf97   :  { %v4137_v36 = vadd.f32 %v4136_v61, %v10937_v40  ;;  %5582 = vmatmul.bf16.vlgmr.msrb.gmra.mxu0 %v4386_v37  ;;  %v4101_v63 = vpop.f32.mrf.mxu1  ;;  %5669 = vmatpush.bf16.msrb.mxu1 %v8396_v18  ;;  %v8391_v61 = vld [vmem:[%s11187_s11 + $0x710] sm:$0xff] }
 0xf98   :  { %v4336_v27 = vmax.f32 %v4118_v41, 0.0  ;;  %v4158_v34 = vpop.f32.mrf.mxu0  ;;  %5726 = vmatpush.bf16.msrb.mxu0 %v8420_v44  ;;  %v4102_v46 = vadd.f32 %v4101_v63, %v10901_v1  ;;  %v8415_v18 = vld [vmem:[%s11187_s11 + $0x7d0] sm:$0xff]  ;;  %v11039_v44 = vperm.slane %v11021_v23, 3  ;;  %v8400_v63 = vld [vmem:[%s11187_s11 + $0x758] sm:$0xff] }
 0xf99   :  { %v4337_v16 = vmax.f32 %v4137_v36, 0.0  ;;  %5619 = vmatpush.bf16.msrb.mxu2 %v8365_v20  ;;  %v4159_v24 = vadd.f32 %v4158_v34, %v10910_v5 }
 0xf9a   :  { %v4384_v53 = vpack.c.bf16 %v4336_v27, %v4320_v54  ;;  %5638 = vmatpush.bf16.msrb.mxu3 %v8373_v62  ;;  %v4351_v4 = vmax.f32 %v4102_v46, 0.0  ;;  %v8408_v54 = vld [vmem:[%s11187_s11 + $0x798] sm:$0xff]  ;;  %v8390_v62 = vld [vmem:[%s11187_s11 + $0x708] sm:$0xff] }
 0xf9b   :  { %v4385_v6 = vpack.c.bf16 %v4337_v16, %v4321_v52  ;;  %5670 = vmatpush.bf16.msrb.mxu1 %v8395_v45  ;;  %v4354_v11 = vmax.f32 %v4159_v24, 0.0  ;;  %v8414_v52 = vld [vmem:[%s11187_s11 + $0x7c8] sm:$0xff]  ;;  %v11056_v45 = vperm.slane %v11021_v23, 1  ;;  %v8413_v24 = vld [vmem:[%s11187_s11 + $0x7c0] sm:$0xff] }
 0xf9c   :  { %5544 = vmatmul.bf16.vlgmr.msra.gmra.mxu2 %v4384_v53  ;;  %5727 = vmatpush.bf16.msrb.mxu0 %v8419_v15 }
 0xf9d   :  { %5563 = vmatmul.bf16.vlgmr.msra.gmra.mxu3 %v4385_v6  ;;  %v4120_v51 = vpop.f32.mrf.mxu2  ;;  %5688 = vmatpush.bf16.msra.mxu2 %v8404_v59  ;;  %v8399_v59 = vld [vmem:[%s11187_s11 + $0x750] sm:$0xff] }
 0xf9e   :  { %v4139_v7 = vpop.f32.mrf.mxu3  ;;  %5707 = vmatpush.bf16.msra.mxu3 %v8412_v3  ;;  %v4121_v26 = vadd.f32 %v4120_v51, %v10927_v8  ;;  %v8407_v3 = vld [vmem:[%s11187_s11 + $0x790] sm:$0xff]  ;;  %v3663_v51 = vperm.slane %v11021_v23, 2 }
 0xf9f   :  { %v4103_v10 = vpop.f32.mrf.mxu1  ;;  %5671 = vmatpush.bf16.msrb.mxu1 %v8394_v9  ;;  %v4140_v49 = vadd.f32 %v4139_v7, %v10937_v40 }
 0xfa0   :  { %v4104_v2 = vadd.f32 %v4103_v10, %v10901_v1  ;;  %v4160_v14 = vpop.f32.mrf.mxu0  ;;  %5728 = vmatpush.bf16.msrb.mxu0 %v8418_v32  ;;  %v8393_v1 = vld [vmem:[%s11187_s11 + $0x720] sm:$0xff]  ;;  %v4352_v21 = vmax.f32 %v4121_v26, 0.0 }
 0xfa1   :  { %v4161_v35 = vadd.f32 %v4160_v14, %v10910_v5  ;;  %5689 = vmatpush.bf16.msra.mxu2 %v8403_v39  ;;  %v8402_v5 = vld [vmem:[%s11187_s11 + $0x768] sm:$0xff]  ;;  %v4353_v28 = vmax.f32 %v4140_v49, 0.0  ;;  %v8389_v32 = vld [vmem:[%s11187_s11 + $0x700] sm:$0xff] }
 0xfa2   :  { %v4367_v43 = vmax.f32 %v4104_v2, 0.0  ;;  %5708 = vmatpush.bf16.msra.mxu3 %v8411_v29  ;;  %v8398_v29 = vld [vmem:[%s11187_s11 + $0x748] sm:$0xff]  ;;  %v8397_v49 = vld [vmem:[%s11187_s11 + $0x740] sm:$0xff] }
 0xfa3   :  { %v4370_v31 = vmax.f32 %v4161_v35, 0.0  ;;  %5672 = vmatpush.bf16.msrb.mxu1 %v8393_v1  ;;  %v8406_v35 = vld [vmem:[%s11187_s11 + $0x788] sm:$0xff] }
 0xfa4   :  { %v4399_v48 = vpack.c.bf16 %v4367_v43, %v4351_v4  ;;  %5729 = vmatpush.bf16.msrb.mxu0 %v8417_v56 }
 0xfa5   :  { %v4122_v30 = vpop.f32.mrf.mxu2  ;;  %v4402_v60 = vpack.c.bf16 %v4370_v31, %v4354_v11  ;;  %5690 = vmatpush.bf16.msra.mxu2 %v8402_v5 }
 0xfa6   :  { %v4123_v25 = vadd.f32 %v4122_v30, %v10927_v8  ;;  %v4141_v42 = vpop.f32.mrf.mxu3  ;;  %5530 = vmatmul.bf16.gmra.mxu1 %v4399_v48  ;;  %5709 = vmatpush.bf16.msra.mxu3 %v8410_v17  ;;  %v8405_v30 = vld [vmem:[%s11187_s11 + $0x780] sm:$0xff] }
 0xfa7   :  { %v4142_v47 = vadd.f32 %v4141_v42, %v10937_v40  ;;  %5587 = vmatmul.bf16.gmra.mxu0 %v4402_v60  ;;  %v4172_v8 = vpop.f32.mrf.mxu1  ;;  %5673 = vmatpush.bf16.msrb.mxu1 %v8392_v38  ;;  %v8409_v40 = vld [vmem:[%s11187_s11 + $0x7a0] sm:$0xff] }
 0xfa8   :  { %v4368_v58 = vmax.f32 %v4123_v25, 0.0  ;;  %v4229_v33 = vpop.f32.mrf.mxu0  ;;  %5730 = vmatpush.bf16.msrb.mxu0 %v8416_v22  ;;  %v4173_v34 = vadd.f32 %v4172_v8, %v11030_v50 }
 0xfa9   :  { %v4369_v37 = vmax.f32 %v4142_v47, 0.0  ;;  %5691 = vmatpush.bf16.msra.mxu2 %v8401_v55  ;;  %v4230_v16 = vadd.f32 %v4229_v33, %v11039_v44 }
 0xfaa   :  { %v4400_v41 = vpack.c.bf16 %v4368_v58, %v4352_v21  ;;  %5710 = vmatpush.bf16.msra.mxu3 %v8409_v40  ;;  %v4323_v7 = vmax.f32 %v4173_v34, 0.0 }
 0xfab   :  { %v4401_v36 = vpack.c.bf16 %v4369_v37, %v4353_v28  ;;  %5674 = vmatpush.bf16.msrb.mxu1 %v8391_v61  ;;  %v4326_v10 = vmax.f32 %v4230_v16, 0.0 }
 0xfac   :  { %5549 = vmatmul.bf16.gmra.mxu2 %v4400_v41  ;;  %5731 = vmatpush.bf16.msrb.mxu0 %v8415_v18 }
 0xfad   :  { %5568 = vmatmul.bf16.gmra.mxu3 %v4401_v36  ;;  %v4191_v27 = vpop.f32.mrf.mxu2  ;;  %5692 = vmatpush.bf16.msra.mxu2 %v8400_v63 }
 0xfae   :  { %v4210_v20 = vpop.f32.mrf.mxu3  ;;  %5711 = vmatpush.bf16.msra.mxu3 %v8408_v54  ;;  %v4192_v14 = vadd.f32 %v4191_v27, %v11056_v45 }
 0xfaf   :  { %v4174_v53 = vpop.f32.mrf.mxu1  ;;  %5675 = vmatpush.bf16.msrb.mxu1 %v8390_v62  ;;  %v4211_v4 = vadd.f32 %v4210_v20, %v3663_v51 }
 0xfb0   :  { %v4175_v15 = vadd.f32 %v4174_v53, %v11030_v50  ;;  %v4231_v6 = vpop.f32.mrf.mxu0  ;;  %5732 = vmatpush.bf16.msrb.mxu0 %v8414_v52  ;;  %v4324_v48 = vmax.f32 %v4192_v14, 0.0  ;;  %v3667_v14 = vperm.slane %v11021_v23, 6 }
 0xfb1   :  { %v4232_v46 = vadd.f32 %v4231_v6, %v11039_v44  ;;  %5693 = vmatpush.bf16.msra.mxu2 %v8399_v59  ;;  %v4325_v60 = vmax.f32 %v4211_v4, 0.0  ;;  %v3665_v59 = vperm.slane %v11021_v23, 4 }
 0xfb2   :  { %v4339_v9 = vmax.f32 %v4175_v15, 0.0  ;;  %5712 = vmatpush.bf16.msra.mxu3 %v8407_v3 }
 0xfb3   :  { %v4342_v2 = vmax.f32 %v4232_v46, 0.0  ;;  %5676 = vmatpush.bf16.msrb.mxu1 %v8389_v32  ;;  %v3668_v46 = vperm.slane %v11021_v23, 7 }
 0xfb4   :  { %v4387_v39 = vpack.c.bf16 %v4339_v9, %v4323_v7  ;;  %5733 = vmatpush.bf16.msrb.mxu0 %v8413_v24  ;;  %v3666_v24 = vperm.slane %v11021_v23, 5 }
 0xfb5   :  { %v4390_v43 = vpack.c.bf16 %v4342_v2, %v4326_v10  ;;  %v4193_v1 = vpop.f32.mrf.mxu2  ;;  %5694 = vmatpush.bf16.msra.mxu2 %v8398_v29 }
 0xfb6   :  { %v4194_v56 = vadd.f32 %v4193_v1, %v11056_v45  ;;  %v4212_v11 = vpop.f32.mrf.mxu3  ;;  %5601 = vmatmul.bf16.vlgmr.msra.gmra.mxu1 %v4387_v39  ;;  %5713 = vmatpush.bf16.msra.mxu3 %v8406_v35 }
 0xfb7   :  { %v4213_v31 = vadd.f32 %v4212_v11, %v3663_v51  ;;  %5658 = vmatmul.bf16.vlgmr.msra.gmra.mxu0 %v4390_v43  ;;  %v4177_v26 = vpop.f32.mrf.mxu1 }
 0xfb8   :  { %v4340_v5 = vmax.f32 %v4194_v56, 0.0  ;;  %v4234_v17 = vpop.f32.mrf.mxu0  ;;  %v4178_v47 = vadd.f32 %v4177_v26, %v11030_v50 }
 0xfb9   :  { %v4341_v25 = vmax.f32 %v4213_v31, 0.0  ;;  %5695 = vmatpush.bf16.msra.mxu2 %v8397_v49  ;;  %v4235_v21 = vadd.f32 %v4234_v17, %v11039_v44 }
 0xfba   :  { %v4388_v42 = vpack.c.bf16 %v4340_v5, %v4324_v48  ;;  %5714 = vmatpush.bf16.msra.mxu3 %v8405_v30  ;;  %v4355_v28 = vmax.f32 %v4178_v47, 0.0 }
 0xfbb   :  { %v4389_v38 = vpack.c.bf16 %v4341_v25, %v4325_v60  ;;  %v4358_v41 = vmax.f32 %v4235_v21, 0.0 }
 0xfbc   :  { %5620 = vmatmul.bf16.vlgmr.msrb.gmra.mxu2 %v4388_v42 }
 0xfbd   :  { %5639 = vmatmul.bf16.vlgmr.msrb.gmra.mxu3 %v4389_v38  ;;  %v4196_v22 = vpop.f32.mrf.mxu2 }
 0xfbe   :  { %v4215_v8 = vpop.f32.mrf.mxu3  ;;  %v4197_v18 = vadd.f32 %v4196_v22, %v11056_v45 }
 0xfbf   :  { %v4179_v58 = vpop.f32.mrf.mxu1  ;;  %v4216_v63 = vadd.f32 %v4215_v8, %v3663_v51 }
 0xfc0   :  { %v4180_v33 = vadd.f32 %v4179_v58, %v11030_v50  ;;  %v4236_v55 = vpop.f32.mrf.mxu0  ;;  %v4356_v52 = vmax.f32 %v4197_v18, 0.0 }
 0xfc1   :  { %v4237_v40 = vadd.f32 %v4236_v55, %v11039_v44  ;;  %v4357_v53 = vmax.f32 %v4216_v63, 0.0 }
 0xfc2   :  { %v4371_v37 = vmax.f32 %v4180_v33, 0.0 }
 0xfc3   :  { %v4374_v61 = vmax.f32 %v4237_v40, 0.0 }
 0xfc4   :  { %v4403_v36 = vpack.c.bf16 %v4371_v37, %v4355_v28 }
 0xfc5   :  { %v4406_v54 = vpack.c.bf16 %v4374_v61, %v4358_v41  ;;  %v4198_v27 = vpop.f32.mrf.mxu2 }
 0xfc6   :  { %v4199_v34 = vadd.f32 %v4198_v27, %v11056_v45  ;;  %v4217_v20 = vpop.f32.mrf.mxu3  ;;  %5606 = vmatmul.bf16.gmra.mxu1 %v4403_v36 }
 0xfc7   :  { %v4218_v62 = vadd.f32 %v4217_v20, %v3663_v51  ;;  %5663 = vmatmul.bf16.gmra.mxu0 %v4406_v54  ;;  %v4248_v50 = vpop.f32.mrf.mxu1 }
 0xfc8   :  { %v4372_v16 = vmax.f32 %v4199_v34, 0.0  ;;  %v4305_v44 = vpop.f32.mrf.mxu0  ;;  %v4249_v45 = vadd.f32 %v4248_v50, %v3665_v59 }
 0xfc9   :  { %v4373_v15 = vmax.f32 %v4218_v62, 0.0  ;;  %v4306_v32 = vadd.f32 %v4305_v44, %v3668_v46 }
 0xfca   :  { %v4404_v6 = vpack.c.bf16 %v4372_v16, %v4356_v52  ;;  %v4327_v29 = vmax.f32 %v4249_v45, 0.0 }
 0xfcb   :  { %v4405_v3 = vpack.c.bf16 %v4373_v15, %v4357_v53  ;;  %v4330_v4 = vmax.f32 %v4306_v32, 0.0 }
 0xfcc   :  { %5625 = vmatmul.bf16.gmra.mxu2 %v4404_v6 }
 0xfcd   :  { %5644 = vmatmul.bf16.gmra.mxu3 %v4405_v3  ;;  %v4267_v7 = vpop.f32.mrf.mxu2 }
 0xfce   :  { %v4286_v9 = vpop.f32.mrf.mxu3  ;;  %v4268_v1 = vadd.f32 %v4267_v7, %v3666_v24 }
 0xfcf   :  { %v4250_v51 = vpop.f32.mrf.mxu1  ;;  %v4287_v11 = vadd.f32 %v4286_v9, %v3667_v14 }
 0xfd0   :  { %v4251_v10 = vadd.f32 %v4250_v51, %v3665_v59  ;;  %v4307_v2 = vpop.f32.mrf.mxu0  ;;  %v4328_v30 = vmax.f32 %v4268_v1, 0.0 }
 0xfd1   :  { %v4308_v39 = vadd.f32 %v4307_v2, %v3668_v46  ;;  %v4329_v23 = vmax.f32 %v4287_v11, 0.0 }
 0xfd2   :  { %v4343_v35 = vmax.f32 %v4251_v10, 0.0 }
 0xfd3   :  { %v4346_v43 = vmax.f32 %v4308_v39, 0.0 }
 0xfd4   :  { %v4391_v56 = vpack.c.bf16 %v4343_v35, %v4327_v29 }
 0xfd5   :  { %v4394_v31 = vpack.c.bf16 %v4346_v43, %v4330_v4  ;;  %v4269_v26 = vpop.f32.mrf.mxu2 }
 0xfd6   :  { %v4270_v48 = vadd.f32 %v4269_v26, %v3666_v24  ;;  %v4288_v5 = vpop.f32.mrf.mxu3  ;;  %5677 = vmatmul.bf16.vlgmr.msrb.gmra.mxu1 %v4391_v56 }
 0xfd7   :  { %v4289_v17 = vadd.f32 %v4288_v5, %v3667_v14  ;;  %5734 = vmatmul.bf16.vlgmr.msrb.gmra.mxu0 %v4394_v31  ;;  %v4253_v49 = vpop.f32.mrf.mxu1 }
 0xfd8   :  { %v4344_v60 = vmax.f32 %v4270_v48, 0.0  ;;  %v4310_v25 = vpop.f32.mrf.mxu0  ;;  %v4254_v8 = vadd.f32 %v4253_v49, %v3665_v59 }
 0xfd9   :  { %v4345_v42 = vmax.f32 %v4289_v17, 0.0  ;;  %v4311_v58 = vadd.f32 %v4310_v25, %v3668_v46 }
 0xfda   :  { %v4392_v38 = vpack.c.bf16 %v4344_v60, %v4328_v30  ;;  %v4359_v37 = vmax.f32 %v4254_v8, 0.0 }
 0xfdb   :  { %v4393_v22 = vpack.c.bf16 %v4345_v42, %v4329_v23  ;;  %v4362_v61 = vmax.f32 %v4311_v58, 0.0 }
 0xfdc   :  { %5696 = vmatmul.bf16.vlgmr.msra.gmra.mxu2 %v4392_v38 }
 0xfdd   :  { %5715 = vmatmul.bf16.vlgmr.msra.gmra.mxu3 %v4393_v22  ;;  %v4272_v47 = vpop.f32.mrf.mxu2 }
 0xfde   :  { %v4291_v21 = vpop.f32.mrf.mxu3  ;;  %v4273_v36 = vadd.f32 %v4272_v47, %v3666_v24 }
 0xfdf   :  { %v4255_v33 = vpop.f32.mrf.mxu1  ;;  %v4292_v54 = vadd.f32 %v4291_v21, %v3667_v14 }
 0xfe0   :  { %v4256_v55 = vadd.f32 %v4255_v33, %v3665_v59  ;;  %v4312_v40 = vpop.f32.mrf.mxu0  ;;  %v4360_v52 = vmax.f32 %v4273_v36, 0.0 }
 0xfe1   :  { %v4313_v28 = vadd.f32 %v4312_v40, %v3668_v46  ;;  %v4361_v44 = vmax.f32 %v4292_v54, 0.0  ;;  %v8458_v46 = vld [vmem:[%s11189_s12 + $0x1] ss:$0 sm:$0xff] }
 0xfe2   :  { %v4375_v41 = vmax.f32 %v4256_v55, 0.0 }
 0xfe3   :  { %v4378_v18 = vmax.f32 %v4313_v28, 0.0 }
 0xfe4   :  { %v4407_v63 = vpack.c.bf16 %v4375_v41, %v4359_v37 }
 0xfe5   :  { %v4410_v27 = vpack.c.bf16 %v4378_v18, %v4362_v61  ;;  %v4274_v34 = vpop.f32.mrf.mxu2 }
 0xfe6   :  { %v4275_v20 = vadd.f32 %v4274_v34, %v3666_v24  ;;  %v4293_v62 = vpop.f32.mrf.mxu3  ;;  %5682 = vmatmul.bf16.gmra.mxu1 %v4407_v63 }
 0xfe7   :  { %v4294_v50 = vadd.f32 %v4293_v62, %v3667_v14  ;;  %5739 = vmatmul.bf16.gmra.mxu0 %v4410_v27 }
 0xfe8   :  { %v4376_v16 = vmax.f32 %v4275_v20, 0.0 }
 0xfe9   :  { %v4377_v53 = vmax.f32 %v4294_v50, 0.0 }
 0xfea   :  { %v4408_v15 = vpack.c.bf16 %v4376_v16, %v4360_v52 }
 0xfeb   :  { %v4409_v6 = vpack.c.bf16 %v4377_v53, %v4361_v44 }
 0xfec   :  { %5701 = vmatmul.bf16.gmra.mxu2 %v4408_v15 }
 0xfed   :  { %5720 = vmatmul.bf16.gmra.mxu3 %v4409_v6 }
 0xff3   :  { %v5450_v59 = vpop.f32.mrf.mxu1 }
 0xff4   :  { %v5507_v3 = vpop.f32.mrf.mxu0  ;;  %v5451_v9 = vadd.f32 %v8458_v46, %v5450_v59 }
 0xffb   :  { %v5452_v7 = vpop.f32.mrf.mxu1 }
 0xffc   :  { %v5509_v45 = vpop.f32.mrf.mxu0  ;;  %v5453_v29 = vadd.f32 %v8458_v46, %v5452_v7 }
 0xfff   :  { %v5469_v32 = vpop.f32.mrf.mxu2 }
0x1000   :  { %v5470_v51 = vadd.f32 %v5469_v32, %v5451_v9  ;;  %v5488_v24 = vpop.f32.mrf.mxu3 }
0x1002   :  { %v5489_v10 = vadd.f32 %v5488_v24, %v5470_v51 }
0x1003   :  { %v5455_v2 = vpop.f32.mrf.mxu1 }
0x1004   :  { %v5512_v14 = vpop.f32.mrf.mxu0  ;;  %v5508_v39 = vadd.f32 %v5507_v3, %v5489_v10  ;;  %v5456_v26 = vadd.f32 %v8458_v46, %v5455_v2 }
0x1007   :  { %v5471_v35 = vpop.f32.mrf.mxu2 }
0x1008   :  { %v5472_v4 = vadd.f32 %v5471_v35, %v5453_v29  ;;  %v5490_v43 = vpop.f32.mrf.mxu3 }
0x100a   :  { %v5491_v1 = vadd.f32 %v5490_v43, %v5472_v4 }
0x100b   :  { %v5457_v56 = vpop.f32.mrf.mxu1 }
0x100c   :  { %v5514_v11 = vpop.f32.mrf.mxu0  ;;  %v5510_v31 = vadd.f32 %v5509_v45, %v5491_v1  ;;  %v5458_v23 = vadd.f32 %v8458_v46, %v5457_v56 }
0x100f   :  { %v5474_v48 = vpop.f32.mrf.mxu2 }
0x1010   :  { %v5475_v5 = vadd.f32 %v5474_v48, %v5456_v26  ;;  %v5493_v17 = vpop.f32.mrf.mxu3 }
0x1012   :  { %v5494_v49 = vadd.f32 %v5493_v17, %v5475_v5 }
0x1013   :  { %v5526_v30 = vpop.f32.mrf.mxu1 }
0x1014   :  { %v5583_v60 = vpop.f32.mrf.mxu0  ;;  %v5513_v25 = vadd.f32 %v5512_v14, %v5494_v49  ;;  %v5527_v53 = vadd.f32 %v5526_v30, %v5508_v39 }
0x1017   :  { %v5476_v42 = vpop.f32.mrf.mxu2 }
0x1018   :  { %v5477_v38 = vadd.f32 %v5476_v42, %v5458_v23  ;;  %v5495_v22 = vpop.f32.mrf.mxu3 }
0x101a   :  { %v5496_v47 = vadd.f32 %v5495_v22, %v5477_v38 }
0x101b   :  { %v5528_v8 = vpop.f32.mrf.mxu1 }
0x101c   :  { %v5585_v21 = vpop.f32.mrf.mxu0  ;;  %v5515_v58 = vadd.f32 %v5514_v11, %v5496_v47  ;;  %v5529_v45 = vadd.f32 %v5528_v8, %v5510_v31 }
0x101f   :  { %v5545_v33 = vpop.f32.mrf.mxu2 }
0x1020   :  { %v5564_v55 = vpop.f32.mrf.mxu3  ;;  %v5546_v6 = vadd.f32 %v5545_v33, %v5527_v53 }
0x1022   :  { %v5565_v7 = vadd.f32 %v5564_v55, %v5546_v6 }
0x1023   :  { %v5531_v40 = vpop.f32.mrf.mxu1 }
0x1024   :  { %v5588_v28 = vpop.f32.mrf.mxu0  ;;  %v5584_v51 = vadd.f32 %v5583_v60, %v5565_v7  ;;  %v5532_v4 = vadd.f32 %v5531_v40, %v5513_v25 }
0x1027   :  { %v5547_v37 = vpop.f32.mrf.mxu2 }
0x1028   :  { %v5566_v41 = vpop.f32.mrf.mxu3  ;;  %v5548_v32 = vadd.f32 %v5547_v37, %v5529_v45 }
0x102a   :  { %v5567_v14 = vadd.f32 %v5566_v41, %v5548_v32 }
0x102b   :  { %v5533_v61 = vpop.f32.mrf.mxu1 }
0x102c   :  { %v5590_v18 = vpop.f32.mrf.mxu0  ;;  %v5586_v39 = vadd.f32 %v5585_v21, %v5567_v14  ;;  %v5534_v49 = vadd.f32 %v5533_v61, %v5515_v58 }
0x102f   :  { %v5550_v36 = vpop.f32.mrf.mxu2 }
0x1030   :  { %v5569_v63 = vpop.f32.mrf.mxu3  ;;  %v5551_v1 = vadd.f32 %v5550_v36, %v5532_v4 }
0x1032   :  { %v5570_v48 = vadd.f32 %v5569_v63, %v5551_v1 }
0x1033   :  { %v5602_v54 = vpop.f32.mrf.mxu1 }
0x1034   :  { %v5659_v27 = vpop.f32.mrf.mxu0  ;;  %v5603_v10 = vadd.f32 %v5602_v54, %v5584_v51  ;;  %v5589_v38 = vadd.f32 %v5588_v28, %v5570_v48 }
0x1037   :  { %v5552_v34 = vpop.f32.mrf.mxu2 }
0x1038   :  { %v5571_v20 = vpop.f32.mrf.mxu3  ;;  %v5553_v42 = vadd.f32 %v5552_v34, %v5534_v49 }
0x103a   :  { %v5572_v55 = vadd.f32 %v5571_v20, %v5553_v42 }
0x103b   :  { %v5604_v62 = vpop.f32.mrf.mxu1 }
0x103c   :  { %v5661_v50 = vpop.f32.mrf.mxu0  ;;  %v5605_v26 = vadd.f32 %v5604_v62, %v5586_v39  ;;  %v5591_v58 = vadd.f32 %v5590_v18, %v5572_v55  ;;  %v8423_v55 = vld [vmem:[%s11193_s13 + $0x10] sm:$0xff] }
0x103f   :  { %v5621_v52 = vpop.f32.mrf.mxu2 }
0x1040   :  { %v5640_v16 = vpop.f32.mrf.mxu3  ;;  %v5622_v29 = vadd.f32 %v5621_v52, %v5603_v10 }
0x1042   :  { %v5641_v56 = vadd.f32 %v5640_v16, %v5622_v29 }
0x1043   :  { %v5607_v44 = vpop.f32.mrf.mxu1 }
0x1044   :  { %v5664_v3 = vpop.f32.mrf.mxu0  ;;  %v5660_v17 = vadd.f32 %v5659_v27, %v5641_v56  ;;  %v5608_v25 = vadd.f32 %v5607_v44, %v5589_v38 }
0x1047   :  { %v5623_v15 = vpop.f32.mrf.mxu2 }
0x1048   :  { %v5642_v59 = vpop.f32.mrf.mxu3  ;;  %v5624_v5 = vadd.f32 %v5623_v15, %v5605_v26 }
0x104a   :  { %v5643_v22 = vadd.f32 %v5642_v59, %v5624_v5 }
0x104b   :  { %v5609_v46 = vpop.f32.mrf.mxu1 }
0x104c   :  { %v5666_v2 = vpop.f32.mrf.mxu0  ;;  %v5662_v40 = vadd.f32 %v5661_v50, %v5643_v22  ;;  %v5610_v52 = vadd.f32 %v5609_v46, %v5591_v58 }
0x104f   :  { %v5626_v9 = vpop.f32.mrf.mxu2 }
0x1050   :  { %v5645_v24 = vpop.f32.mrf.mxu3  ;;  %v5627_v21 = vadd.f32 %v5626_v9, %v5608_v25 }
0x1052   :  { %v5646_v61 = vadd.f32 %v5645_v24, %v5627_v21  ;;  %v8422_v21 = vld [vmem:[%s11193_s13 + $0x8] sm:$0xff] }
0x1053   :  { %v5678_v35 = vpop.f32.mrf.mxu1 }
0x1054   :  { %v5735_v31 = vpop.f32.mrf.mxu0  ;;  %v5679_v30 = vadd.f32 %v5678_v35, %v5660_v17  ;;  %v5665_v20 = vadd.f32 %v5664_v3, %v5646_v61 }
0x1057   :  { %v5628_v43 = vpop.f32.mrf.mxu2 }
0x1058   :  { %v5647_v11 = vpop.f32.mrf.mxu3  ;;  %v5629_v44 = vadd.f32 %v5628_v43, %v5610_v52 }
0x105b   :  { %v5680_v60 = vpop.f32.mrf.mxu1 }
0x105c   :  { %v5681_v41 = vadd.f32 %v5680_v60, %v5662_v40  ;;  %v5737_v63 = vpop.f32.mrf.mxu0 }
0x105f   :  { %v5697_v23 = vpop.f32.mrf.mxu2 }
0x1060   :  { %v5698_v47 = vadd.f32 %v5697_v23, %v5679_v30  ;;  %v5716_v8 = vpop.f32.mrf.mxu3 }
0x1062   :  { %v5717_v33 = vadd.f32 %v5716_v8, %v5698_v47 }
0x1063   :  { %v5683_v34 = vpop.f32.mrf.mxu1 }
0x1064   :  { %v5736_v37 = vadd.f32 %v5735_v31, %v5717_v33  ;;  %v5684_v50 = vadd.f32 %v5683_v34, %v5665_v20  ;;  %v5740_v45 = vpop.f32.mrf.mxu0  ;;  %v8424_v33 = vld [vmem:[%s11193_s13 + $0x18] sm:$0xff] }
0x1065   :  { %5903 = vmatpush.bf16.msra.mxu1 %v8424_v33 }
0x1066   :  { %v5745_v36 = vadd.f32 %v5736_v37, %v10336_v19  ;;  %v5648_v19 = vadd.f32 %v5647_v11, %v5629_v44 }
0x1067   :  { %v5699_v54 = vpop.f32.mrf.mxu2 }
0x1068   :  { %v5700_v27 = vadd.f32 %v5699_v54, %v5681_v41  ;;  %v5718_v62 = vpop.f32.mrf.mxu3  ;;  %v5753_v28 = vsel %vm111_vm0, %v5745_v36, 0.0  ;;  %v5667_v51 = vadd.f32 %v5666_v2, %v5648_v19 }
0x1069   :  { %5754 = vadd.xlane.f32.xlu2 %v5753_v28  ;;  %5904 = vmatpush.bf16.msra.mxu1 %v8423_v55 }
0x106a   :  { %v5719_v16 = vadd.f32 %v5718_v62, %v5700_v27 }
0x106b   :  { %v5685_v32 = vpop.f32.mrf.mxu1 }
0x106c   :  { %v5738_v53 = vadd.f32 %v5737_v63, %v5719_v16  ;;  %v5686_v46 = vadd.f32 %v5685_v32, %v5667_v51  ;;  %v5742_v4 = vpop.f32.mrf.mxu0 }
0x106d   :  { %5905 = vmatpush.bf16.msra.mxu1 %v8422_v21 }
0x106e   :  { %v5746_v15 = vadd.f32 %v5738_v53, %v10339_v13 }
0x106f   :  { %v5702_v6 = vpop.f32.mrf.mxu2 }
0x1070   :  { %v5703_v59 = vadd.f32 %v5702_v6, %v5684_v50  ;;  %v5721_v7 = vpop.f32.mrf.mxu3  ;;  %v5756_v18 = vsel %vm111_vm0, %v5746_v15, 0.0 }
0x1071   :  { %5757 = vadd.xlane.f32.xlu0 %v5756_v18 }
0x1072   :  { %v5722_v9 = vadd.f32 %v5721_v7, %v5703_v59 }
0x1074   :  { %v5741_v24 = vadd.f32 %v5740_v45, %v5722_v9  ;;  %v8459_v9 = vld [vmem:[%s11190_s7 + $0x1] ss:$0 sm:$0xff] }
0x1076   :  { %v5747_v10 = vadd.f32 %v5741_v24, %v10376_v12 }
0x1077   :  { %v5704_v3 = vpop.f32.mrf.mxu2 }
0x1078   :  { %v5705_v14 = vadd.f32 %v5704_v3, %v5686_v46  ;;  %v5759_v29 = vsel %vm111_vm0, %v5747_v10, 0.0  ;;  %v5723_v13 = vpop.f32.mrf.mxu3 }
0x1079   :  { %5760 = vadd.xlane.f32.xlu1 %v5759_v29 }
0x107a   :  { %v5724_v35 = vadd.f32 %v5723_v13, %v5705_v14 }
0x107c   :  { %v5743_v43 = vadd.f32 %v5742_v4, %v5724_v35 }
0x107e   :  { %v5748_v1 = vadd.f32 %v5743_v43, %v10379_v57 }
0x1080   :  { %v5762_v39 = vsel %vm111_vm0, %v5748_v1, 0.0 }
0x1081   :  { %5763 = vadd.xlane.f32.xlu2 %v5762_v39 }
0x10dc   :  { %v5755_v56 = vpop.xlane.xlu2 %5754 }
0x10dd   :  { %v5765_v2 = vmul.f32 %v5755_v56, %v8834_v0 }
0x10df   :  { %v11109_v11 = vsub.f32 %v5745_v36, %v5765_v2  ;;  %v8421_v36 = vld [vmem:[%s11193_s13] sm:$0xff] }
0x10e0   :  { %5906 = vmatpush.bf16.msra.mxu1 %v8421_v36 }
0x10e1   :  { %v5773_v12 = vmul.f32 %v11109_v11, %v11109_v11 }
0x10e3   :  { %v5777_v26 = vsel %vm111_vm0, %v5773_v12, 0.0 }
0x10e4   :  { %v5758_v48 = vpop.xlane.xlu0 %5757  ;;  %5778 = vadd.xlane.f32.xlu0 %v5777_v26 }
0x10e5   :  { %v5766_v5 = vmul.f32 %v5758_v48, %v8834_v0 }
0x10e7   :  { %v11115_v17 = vsub.f32 %v5746_v15, %v5766_v5 }
0x10e9   :  { %v5774_v57 = vmul.f32 %v11115_v17, %v11115_v17 }
0x10eb   :  { %v5780_v31 = vsel %vm111_vm0, %v5774_v57, 0.0 }
0x10ec   :  { %v5761_v49 = vpop.xlane.xlu1 %5760  ;;  %5781 = vadd.xlane.f32.xlu1 %v5780_v31 }
0x10ed   :  { %v5767_v30 = vmul.f32 %v5761_v49, %v8834_v0 }
0x10ef   :  { %v11121_v60 = vsub.f32 %v5747_v10, %v5767_v30 }
0x10f1   :  { %v5775_v23 = vmul.f32 %v11121_v60, %v11121_v60 }
0x10f3   :  { %v5783_v42 = vsel %vm111_vm0, %v5775_v23, 0.0 }
0x10f4   :  { %5784 = vadd.xlane.f32.xlu2 %v5783_v42  ;;  %v5764_v38 = vpop.xlane.xlu2 %5763 }
0x10f5   :  { %v5768_v22 = vmul.f32 %v5764_v38, %v8834_v0 }
0x10f7   :  { %v11127_v47 = vsub.f32 %v5748_v1, %v5768_v22 }
0x10f9   :  { %v5776_v8 = vmul.f32 %v11127_v47, %v11127_v47 }
0x10fb   :  { %v5786_v25 = vsel %vm111_vm0, %v5776_v8, 0.0  ;;  %v8461_v8 = vld [vmem:[%s11192_s14] ss:$0 sm:$0xff] }
0x10fc   :  { %5787 = vadd.xlane.f32.xlu0 %v5786_v25 }
0x1157   :  { %v5779_v40 = vpop.xlane.xlu0 %5778 }
0x1158   :  { %v5789_v37 = vmul.f32 %v5779_v40, %v8834_v0 }
0x115a   :  { %v5793_v41 = vadd.f32 1e-05, %v5789_v37 }
0x115c   :  { %8552 = vrsqrt.f32 %v5793_v41  ;;  %vm5803_vm13 = vweird.f32 %v5793_v41 }
0x115f   :  { %v5782_v63 = vpop.xlane.xlu1 %5781 }
0x1160   :  { %v5790_v54 = vmul.f32 %v5782_v63, %v8834_v0 }
0x1162   :  { %v8553_v58 = vpop.eup %8552  ;;  %v5794_v61 = vadd.f32 1e-05, %v5790_v54 }
0x1163   :  { %v5798_v27 = vmul.f32 %v8553_v58, %v5793_v41  ;;  %vm5804_vm12 = vweird.f32 %v8553_v58 }
0x1164   :  { %8554 = vrsqrt.f32 %v5794_v61  ;;  %vm5805_vm14 = vmor %vm5803_vm13, %vm5804_vm12  ;;  %vm5813_vm2 = vweird.f32 %v5794_v61 }
0x1165   :  { %v5799_v62 = vmul.f32 %v8553_v58, %v5798_v27 }
0x1167   :  { %v5800_v28 = vmul.f32 0.5, %v5799_v62  ;;  %v5785_v34 = vpop.xlane.xlu2 %5784 }
0x1168   :  { %v5791_v52 = vmul.f32 %v5785_v34, %v8834_v0 }
0x1169   :  { %v5801_v16 = vsub.f32 1.5, %v5800_v28 }
0x116a   :  { %v8555_v44 = vpop.eup %8554  ;;  %v5795_v20 = vadd.f32 1e-05, %v5791_v52 }
0x116b   :  { %v5802_v53 = vmul.f32 %v8553_v58, %v5801_v16  ;;  %v5808_v50 = vmul.f32 %v8555_v44, %v5794_v61  ;;  %vm5814_vm1 = vweird.f32 %v8555_v44 }
0x116c   :  { %8556 = vrsqrt.f32 %v5795_v20  ;;  %vm5815_vm15 = vmor %vm5813_vm2, %vm5814_vm1  ;;  %vm5823_vm4 = vweird.f32 %v5795_v20 }
0x116d   :  { %v5809_v15 = vmul.f32 %v8555_v44, %v5808_v50  ;;  %v5806_v6 = vsel %vm5805_vm14, %v8553_v58, %v5802_v53 }
0x116e   :  { %v5837_v32 = vmul.f32 %v5806_v6, %v11109_v11 }
0x116f   :  { %v5810_v19 = vmul.f32 0.5, %v5809_v15  ;;  %v5788_v59 = vpop.xlane.xlu0 %5787 }
0x1170   :  { %v5792_v7 = vmul.f32 %v5788_v59, %v8834_v0  ;;  %v8460_v0 = vld [vmem:[%s11191_s8 + $0x1] ss:$0 sm:$0xff]  ;;  %v5844_v14 = vmul.f32 %v8459_v9, %v5837_v32 }
0x1171   :  { %v5811_v18 = vsub.f32 1.5, %v5810_v19 }
0x1172   :  { %v8557_v45 = vpop.eup %8556  ;;  %v5796_v51 = vadd.f32 1e-05, %v5792_v7  ;;  %v5851_v1 = vadd.f32 %v8460_v0, %v5844_v14 }
0x1173   :  { %v5812_v24 = vmul.f32 %v8555_v44, %v5811_v18  ;;  %v5818_v46 = vmul.f32 %v8557_v45, %v5795_v20  ;;  %vm5824_vm3 = vweird.f32 %v8557_v45 }
0x1174   :  { %8558 = vrsqrt.f32 %v5796_v51  ;;  %vm5825_vm5 = vmor %vm5823_vm4, %vm5824_vm3  ;;  %vm5833_vm7 = vweird.f32 %v5796_v51 }
0x1175   :  { %v5816_v10 = vsel %vm5815_vm15, %v8555_v44, %v5812_v24  ;;  %v5819_v3 = vmul.f32 %v8557_v45, %v5818_v46 }
0x1176   :  { %v5838_v29 = vmul.f32 %v5816_v10, %v11115_v17 }
0x1177   :  { %v5820_v13 = vmul.f32 0.5, %v5819_v3 }
0x1178   :  { %v5845_v35 = vmul.f32 %v8459_v9, %v5838_v29 }
0x1179   :  { %v5821_v4 = vsub.f32 1.5, %v5820_v13 }
0x117a   :  { %v8559_v43 = vpop.eup %8558  ;;  %v5852_v39 = vadd.f32 %v8460_v0, %v5845_v35 }
0x117b   :  { %v5822_v56 = vmul.f32 %v8557_v45, %v5821_v4  ;;  %v5828_v2 = vmul.f32 %v8559_v43, %v5796_v51  ;;  %vm5834_vm6 = vweird.f32 %v8559_v43 }
0x117c   :  { %v5855_v11 = vpack.c.bf16 %v5852_v39, %v5851_v1  ;;  %vm5835_vm8 = vmor %vm5833_vm7, %vm5834_vm6 }
0x117d   :  { %v5829_v12 = vmul.f32 %v8559_v43, %v5828_v2  ;;  %v5826_v26 = vsel %vm5825_vm5, %v8557_v45, %v5822_v56 }
0x117e   :  { %8011 = vmatmul.msk.bf16.vlgmr.msra.gmra.mxu1 %vm111_vm0, %v5855_v11  ;;  %v5839_v17 = vmul.f32 %v5826_v26, %v11121_v60 }
0x117f   :  { %v5830_v48 = vmul.f32 0.5, %v5829_v12 }
0x1180   :  { %v5846_v30 = vmul.f32 %v8459_v9, %v5839_v17 }
0x1181   :  { %v5831_v5 = vsub.f32 1.5, %v5830_v48 }
0x1182   :  { %v5853_v42 = vadd.f32 %v8460_v0, %v5846_v30 }
0x1183   :  { %v5832_v57 = vmul.f32 %v8559_v43, %v5831_v5 }
0x1185   :  { %v5836_v31 = vsel %vm5835_vm8, %v8559_v43, %v5832_v57 }
0x1186   :  { %v5840_v49 = vmul.f32 %v5836_v31, %v11127_v47 }
0x1188   :  { %v5847_v23 = vmul.f32 %v8459_v9, %v5840_v49 }
0x118a   :  { %v5854_v38 = vadd.f32 %v8460_v0, %v5847_v23 }
0x118c   :  { %v5856_v22 = vpack.c.bf16 %v5854_v38, %v5853_v42 }
0x118e   :  { %8012 = vmatmul.msk.bf16.gmra.mxu1 %vm111_vm0, %v5856_v22 }
0x11fb   :  { %v5908_v25 = vpop.f32.mrf.mxu1 }
0x11fc   :  { %v5909_v33 = vadd.f32 %v8461_v8, %v5908_v25 }
0x11fe   :  { %5918 = vst.msk [vmem:[%s11194_s15] sm:$0xff] %vm111_vm0, %v5909_v33 }
0x1203   :  { %v5910_v60 = vpop.f32.mrf.mxu1 }
0x1204   :  { %v5911_v47 = vadd.f32 %v8461_v8, %v5910_v60 }
0x1206   :  { %5919 = vst.msk [vmem:[%s11194_s15 + $0x8] sm:$0xff] %vm111_vm0, %v5911_v47 }
0x120b   :  { %v5913_v55 = vpop.f32.mrf.mxu1 }
0x120c   :  { %v5914_v21 = vadd.f32 %v8461_v8, %v5913_v55 }
0x120e   :  { %5920 = vst.msk [vmem:[%s11194_s15 + $0x10] sm:$0xff] %vm111_vm0, %v5914_v21 }
0x1213   :  { %v5915_v40 = vpop.f32.mrf.mxu1 }
0x1214   :  { %v5916_v37 = vadd.f32 %v8461_v8, %v5915_v40 }
0x1216   :  { %5921 = vst.msk [vmem:[%s11194_s15 + $0x18] sm:$0xff] %vm111_vm0, %v5916_v37 }

</bundles_post_ra>
